<compile_context>
chip_gen: v7x
topology: tpu7x:2x2x1
jax: 0.10.0
libtpu: 0.0.40
codegen_flags: <defaults>
</compile_context>

<pallas_src>
import functools

import jax
import jax.numpy as jnp
from jax.experimental import pallas as pl
from jax.experimental.pallas import tpu as pltpu


def _conv_pool_bn_relu_kernel(patches_ref, w_ref, b_ref, g_ref, beta_ref, o_ref,
                              sum_ref, ssq_ref, *, n, bt, ho, wo, k, eps):
    # patches_ref : (Bt, R, Kc)        VMEM  bf16 im2col patches for Bt images
    # w_ref       : (Kc, C_pad)        VMEM  bf16 conv weight (resident)
    # b_ref       : (1, C_pad)         VMEM  f32 conv bias
    # g_ref       : (1, C_pad)         VMEM  f32 BN gamma
    # beta_ref    : (1, C_pad)         VMEM  f32 BN beta
    # o_ref       : (N, Hp, Wp, C_pad) VMEM  f32 output slab (resident across grid)
    # sum_ref     : (1, C_pad)         VMEM  f32 running per-channel sum (BN stats)
    # ssq_ref     : (1, C_pad)         VMEM  f32 running per-channel sum of squares
    step = pl.program_id(0)
    c = o_ref.shape[-1]
    hp, wp = ho - k + 1, wo - k + 1

    @pl.when(step == 0)
    def _():
        sum_ref[...] = jnp.zeros_like(sum_ref)
        ssq_ref[...] = jnp.zeros_like(ssq_ref)

    step_sum = jnp.zeros((1, c), jnp.float32)
    step_ssq = jnp.zeros((1, c), jnp.float32)
    for img in range(bt):                                    # static, Bt is small
        # ---- Conv2d (stride=1): one bf16 MXU matmul per image, f32 accumulation ----
        conv = jnp.dot(patches_ref[img], w_ref[...],
                       preferred_element_type=jnp.float32)               # (R, C_pad)
        conv = (conv + b_ref[...]).reshape(ho, wo, c)                    # channels on lanes

        # ---- MaxPool2d (kernel=k, stride=1), separable: W direction then H direction ----
        row = conv[:, 0:wp, :]
        for kw in range(1, k):
            row = jnp.maximum(row, conv[:, kw:kw + wp, :])               # (Ho, Wp, C)
        pooled = row[0:hp, :, :]
        for kh in range(1, k):
            pooled = jnp.maximum(pooled, row[kh:kh + hp, :, :])          # (Hp, Wp, C)

        o_ref[step * bt + img] = pooled                                  # stage pre-BN values

        # ---- BN batch statistics accumulated while `pooled` is still live ----
        step_sum = step_sum + jnp.sum(pooled, axis=(0, 1))[None, :]
        step_ssq = step_ssq + jnp.sum(pooled * pooled, axis=(0, 1))[None, :]

    sum_ref[...] += step_sum
    ssq_ref[...] += step_ssq

    # ---- Last step: finalize BatchNorm2d (training-mode batch stats) + ReLU ----
    @pl.when(step == pl.num_programs(0) - 1)
    def _():
        inv_cnt = 1.0 / (n * hp * wp)
        mean = sum_ref[...] * inv_cnt                                    # (1, C_pad)
        # TODO(synk): E[x^2]-E[x]^2 can cancel when |mean| >> std; switch to Welford-style
        # merging of per-step centered sums if that regime matters.
        var = ssq_ref[...] * inv_cnt - mean * mean                       # biased variance
        scale = g_ref[...] * jax.lax.rsqrt(var + eps)                    # gamma * inv_std
        shift = beta_ref[...] - mean * scale
        o_ref[...] = jnp.maximum(o_ref[...] * scale + shift, 0.0)        # BN + ReLU


def _largest_divisor_leq(n, cap):
    cap = int(max(1, min(n, cap)))
    for d in range(cap, 0, -1):
        if n % d == 0:
            return d
    return 1


def conv_module_forward(x, w, b, gamma, beta, *, stride=1, padding=0, eps=1e-5):
    """Pallas implementation of ConvModule.forward (fresh module => BN uses batch stats)."""
    # TODO(synk): only stride=1 (the module default) is implemented in-kernel.
    assert stride == 1, "only stride=1 (module default) is implemented"
    x = x.astype(jnp.float32)
    w = w.astype(jnp.float32)
    n, cin, h, wd = x.shape
    cout, cin_w, k, _ = w.shape
    assert cin_w == cin
    if padding:
        x = jnp.pad(x, ((0, 0), (0, 0), (padding, padding), (padding, padding)))
        h += 2 * padding
        wd += 2 * padding
    ho, wo = h - k + 1, wd - k + 1        # conv output (stride=1, VALID after padding)
    hp, wp = ho - k + 1, wo - k + 1       # maxpool output (kernel=k, stride=1)
    assert hp > 0 and wp > 0

    LANE = 128
    kc = cin * k * k
    r = ho * wo
    c_pad = ((cout + LANE - 1) // LANE) * LANE    # lane-dense output channel dim

    # im2col (single XLA op). Output channel ordering is (ci, kh, kw), matching the OIHW
    # weight reshape below.
    # TODO(synk): for large Cin (>=32), do K*K shifted per-tap matmuls in-kernel on the
    # raw NHWC activation instead of materializing the K^2-inflated patch tensor in HBM.
    patches = jax.lax.conv_general_dilated_patches(
        x, (k, k), (1, 1), "VALID",
        dimension_numbers=("NCHW", "OIHW", "NCHW"))            # (N, Cin*K*K, Ho, Wo)
    patches = jnp.moveaxis(patches, 1, -1).reshape(n, r, kc)   # (N, R, Kc), no padding
    patches = patches.astype(jnp.bfloat16)                     # bf16 feed for the MXU

    w_mat = jnp.pad(w.reshape(cout, kc).T,
                    ((0, 0), (0, c_pad - cout))).astype(jnp.bfloat16)
    b_row = jnp.pad(b.astype(jnp.float32)[None, :], ((0, 0), (0, c_pad - cout)))
    g_row = jnp.pad(gamma.astype(jnp.float32)[None, :], ((0, 0), (0, c_pad - cout)))
    beta_row = jnp.pad(beta.astype(jnp.float32)[None, :], ((0, 0), (0, c_pad - cout)))

    # Images per grid step: largest divisor of N whose patch block stays under ~2 MiB
    # (the BlockSpec pipeline double-buffers it).
    per_image_bytes = r * kc * 2
    bt = _largest_divisor_leq(n, (2 * 1024 * 1024) // max(per_image_bytes, 1))

    # TODO(synk): the whole-output-resident accumulator does not scale to v7x's 64 MiB VMEM
    # at large N*Hp*Wp; split into a two-pass (conv+pool+partial stats, then BN+ReLU)
    # pipeline with a "parallel" batch axis once the slab exceeds ~24 MiB.
    out_bytes = n * hp * wp * c_pad * 4
    need = out_bytes + 2 * bt * per_image_bytes + kc * c_pad * 2 + 8 * c_pad * 4
    vmem_limit = int(min(max(2 * need, 16 * 1024 * 1024), 96 * 1024 * 1024))

    kernel = functools.partial(_conv_pool_bn_relu_kernel,
                               n=n, bt=bt, ho=ho, wo=wo, k=k, eps=eps)
    out = pl.pallas_call(
        kernel,
        out_shape=jax.ShapeDtypeStruct((n, hp, wp, c_pad), jnp.float32),
        grid_spec=pltpu.PrefetchScalarGridSpec(
            num_scalar_prefetch=0,
            grid=(n // bt,),
            in_specs=[
                # patches: Bt images per grid step (pipelined); last two block dims equal
                # the full array dims, so no (8,128) HBM padding is required.
                pl.BlockSpec((bt, r, kc), lambda i: (i, 0, 0)),
                # small parameter tiles, resident across the grid
                pl.BlockSpec((kc, c_pad), lambda i: (0, 0)),
                pl.BlockSpec((1, c_pad), lambda i: (0, 0)),
                pl.BlockSpec((1, c_pad), lambda i: (0, 0)),
                pl.BlockSpec((1, c_pad), lambda i: (0, 0)),
            ],
            # whole output slab resident in VMEM across the grid (accumulator pattern);
            # lane-dense last dim (C_pad multiple of 128).
            out_specs=pl.BlockSpec((n, hp, wp, c_pad), lambda i: (0, 0, 0, 0)),
            scratch_shapes=[pltpu.VMEM((1, c_pad), jnp.float32),   # per-channel sum
                            pltpu.VMEM((1, c_pad), jnp.float32)],  # per-channel sum of squares
        ),
        compiler_params=pltpu.CompilerParams(
            # BN batch statistics + resident output couple the step axis -> "arbitrary".
            dimension_semantics=("arbitrary",),
            vmem_limit_bytes=vmem_limit,
        ),
    )(patches, w_mat, b_row, g_row, beta_row)

    # (N, Hp, Wp, C_pad) -> NCHW, dropping padded channels.
    # TODO(synk): drop this transpose if the downstream consumer accepts NHWC directly.
    return jnp.transpose(out[..., :cout], (0, 3, 1, 2))


def _reference_forward(x, w, b, gamma, beta, *, padding=0, eps=1e-5):
    """Pure-JAX reference mirroring the PyTorch forward (training-mode BN)."""
    if padding:
        x = jnp.pad(x, ((0, 0), (0, 0), (padding, padding), (padding, padding)))
    k = w.shape[-1]
    conv = jax.lax.conv_general_dilated(
        x, w, window_strides=(1, 1), padding="VALID",
        dimension_numbers=("NCHW", "OIHW", "NCHW"),
        precision=jax.lax.Precision.HIGHEST)
    conv = conv + b[None, :, None, None]
    pool = jax.lax.reduce_window(conv, -jnp.inf, jax.lax.max,
                                 (1, 1, k, k), (1, 1, 1, 1), "VALID")
    mean = jnp.mean(pool, axis=(0, 2, 3), keepdims=True)
    var = jnp.mean((pool - mean) ** 2, axis=(0, 2, 3), keepdims=True)
    y = (gamma[None, :, None, None] * (pool - mean) / jnp.sqrt(var + eps)
         + beta[None, :, None, None])
    return jnp.maximum(y, 0.0)


if __name__ == "__main__":
    # Small shapes consistent with ConvModule: kernel_size=3, stride=1, padding=0.
    batch, in_channels, out_channels, spatial, ksize = 2, 3, 4, 16, 3

    key = jax.random.PRNGKey(0)
    kx, kw, kb, kg, kbeta = jax.random.split(key, 5)
    x = jax.random.normal(kx, (batch, in_channels, spatial, spatial), jnp.float32)
    w = jax.random.normal(kw, (out_channels, in_channels, ksize, ksize), jnp.float32) * 0.1
    b = jax.random.normal(kb, (out_channels,), jnp.float32) * 0.1
    gamma = 1.0 + 0.1 * jax.random.normal(kg, (out_channels,), jnp.float32)
    beta = 0.1 * jax.random.normal(kbeta, (out_channels,), jnp.float32)

    # Snap x/w to bf16-representable values so the correctness check is insensitive to
    # the bf16 MXU feed (accumulation stays f32 on both sides).
    x = x.astype(jnp.bfloat16).astype(jnp.float32)
    w = w.astype(jnp.bfloat16).astype(jnp.float32)

    out = conv_module_forward(x, w, b, gamma, beta, stride=1, padding=0)
    out = jax.block_until_ready(out)

    ref = jax.block_until_ready(_reference_forward(x, w, b, gamma, beta, padding=0))
    assert out.shape == ref.shape == (batch, out_channels, spatial - 4, spatial - 4)
    assert jnp.allclose(out, ref, atol=1e-4, rtol=1e-4), \
        f"max abs err {jnp.max(jnp.abs(out - ref))}"

    print("KERNEL_OK")
</pallas_src>

<mosaic_0001>
module attributes {stable_mosaic.version = 11 : i64} {
  func.func @_conv_pool_bn_relu_kernel(%arg0: i32, %arg1: memref<2x196x27xbf16, #tpu.memory_space<vmem>>, %arg2: memref<27x128xbf16, #tpu.memory_space<vmem>>, %arg3: memref<1x128xf32, #tpu.memory_space<vmem>>, %arg4: memref<1x128xf32, #tpu.memory_space<vmem>>, %arg5: memref<1x128xf32, #tpu.memory_space<vmem>>, %arg6: memref<2x12x12x128xf32, #tpu.memory_space<vmem>>, %arg7: memref<1x128xf32, #tpu.memory_space<vmem>>, %arg8: memref<1x128xf32, #tpu.memory_space<vmem>>) attributes {dimension_semantics = [#tpu.dimension_semantics<arbitrary>], iteration_bounds = array<i64: 1>, scalar_prefetch = 0 : i64, scratch_operands = 2 : i64, tpu.core_type = #tpu.core_type<tc>, window_params = [{transform_indices = @transform_0, window_bounds = array<i64: 2, 196, 27>}, {pipeline_mode = #tpu.pipeline_mode<synchronous>, transform_indices = @transform_1, window_bounds = array<i64: 27, 128>}, {pipeline_mode = #tpu.pipeline_mode<synchronous>, transform_indices = @transform_2, window_bounds = array<i64: 1, 128>}, {pipeline_mode = #tpu.pipeline_mode<synchronous>, transform_indices = @transform_3, window_bounds = array<i64: 1, 128>}, {pipeline_mode = #tpu.pipeline_mode<synchronous>, transform_indices = @transform_4, window_bounds = array<i64: 1, 128>}, {pipeline_mode = #tpu.pipeline_mode<synchronous>, transform_indices = @transform_5, window_bounds = array<i64: 2, 12, 12, 128>}]} {
    %c0_i32 = arith.constant 0 : i32
    %0 = arith.cmpi eq, %arg0, %c0_i32 : i32
    %1 = arith.extui %0 : i1 to i32
    %c0_i32_0 = arith.constant 0 : i32
    %2 = arith.cmpi ne, %1, %c0_i32_0 : i32
    scf.if %2 {
      %cst_38 = arith.constant 0.000000e+00 : f32
      %76 = vector.broadcast %cst_38 : f32 to vector<1x128xf32>
      %c0_39 = arith.constant 0 : index
      %c0_40 = arith.constant 0 : index
      %77 = vector.load %arg7[%c0_39, %c0_40] : memref<1x128xf32, #tpu.memory_space<vmem>>, vector<1x128xf32>
      tpu.vector_store %arg7[%c0_39, %c0_40], %76 {strides = array<i32>} : memref<1x128xf32, #tpu.memory_space<vmem>>, vector<1x128xf32>,
      %cst_41 = arith.constant 0.000000e+00 : f32
      %78 = vector.broadcast %cst_41 : f32 to vector<1x128xf32>
      %c0_42 = arith.constant 0 : index
      %c0_43 = arith.constant 0 : index
      %79 = vector.load %arg8[%c0_42, %c0_43] : memref<1x128xf32, #tpu.memory_space<vmem>>, vector<1x128xf32>
      tpu.vector_store %arg8[%c0_42, %c0_43], %78 {strides = array<i32>} : memref<1x128xf32, #tpu.memory_space<vmem>>, vector<1x128xf32>,
    } else {
    }
    %cst = arith.constant 0.000000e+00 : f32
    %3 = vector.broadcast %cst : f32 to vector<1x128xf32>
    %cst_1 = arith.constant 0.000000e+00 : f32
    %4 = vector.broadcast %cst_1 : f32 to vector<1x128xf32>
    %c0 = arith.constant 0 : index
    %c0_2 = arith.constant 0 : index
    %c0_3 = arith.constant 0 : index
    %5 = vector.load %arg1[%c0, %c0_2, %c0_3] : memref<2x196x27xbf16, #tpu.memory_space<vmem>>, vector<1x196x27xbf16>
    %6 = vector.shape_cast %5 : vector<1x196x27xbf16> to vector<196x27xbf16>
    %c0_4 = arith.constant 0 : index
    %c0_5 = arith.constant 0 : index
    %7 = vector.load %arg2[%c0_4, %c0_5] : memref<27x128xbf16, #tpu.memory_space<vmem>>, vector<27x128xbf16>
    %cst_6 = arith.constant dense<0.000000e+00> : vector<196x128xf32>
    %8 = tpu.matmul %6, %7, %cst_6 {dimension_numbers = #tpu.dot_dimension_numbers<[1], [0], [0], [1], [0, 0, 1, 1], [], []>} : vector<196x27xbf16>, vector<27x128xbf16>, vector<196x128xf32> -> vector<196x128xf32>
    %c0_7 = arith.constant 0 : index
    %c0_8 = arith.constant 0 : index
    %9 = vector.load %arg3[%c0_7, %c0_8] : memref<1x128xf32, #tpu.memory_space<vmem>>, vector<1x128xf32>
    %10 = vector.broadcast %9 : vector<1x128xf32> to vector<196x128xf32>
    %11 = arith.addf %8, %10 : vector<196x128xf32>
    %12 = vector.shape_cast %11 : vector<196x128xf32> to vector<14x14x128xf32>
    %13 = vector.extract_strided_slice %12 {offsets = [0, 0, 0], sizes = [14, 12, 128], strides = [1, 1, 1]} : vector<14x14x128xf32> to vector<14x12x128xf32>
    %14 = vector.extract_strided_slice %12 {offsets = [0, 1, 0], sizes = [14, 12, 128], strides = [1, 1, 1]} : vector<14x14x128xf32> to vector<14x12x128xf32>
    %15 = arith.maximumf %13, %14 : vector<14x12x128xf32>
    %16 = vector.extract_strided_slice %12 {offsets = [0, 2, 0], sizes = [14, 12, 128], strides = [1, 1, 1]} : vector<14x14x128xf32> to vector<14x12x128xf32>
    %17 = arith.maximumf %15, %16 : vector<14x12x128xf32>
    %18 = vector.extract_strided_slice %17 {offsets = [0, 0, 0], sizes = [12, 12, 128], strides = [1, 1, 1]} : vector<14x12x128xf32> to vector<12x12x128xf32>
    %19 = vector.extract_strided_slice %17 {offsets = [1, 0, 0], sizes = [12, 12, 128], strides = [1, 1, 1]} : vector<14x12x128xf32> to vector<12x12x128xf32>
    %20 = arith.maximumf %18, %19 : vector<12x12x128xf32>
    %21 = vector.extract_strided_slice %17 {offsets = [2, 0, 0], sizes = [12, 12, 128], strides = [1, 1, 1]} : vector<14x12x128xf32> to vector<12x12x128xf32>
    %22 = arith.maximumf %20, %21 : vector<12x12x128xf32>
    %c2_i32 = arith.constant 2 : i32
    %23 = arith.muli %arg0, %c2_i32 : i32
    %c0_i32_9 = arith.constant 0 : i32
    %24 = arith.addi %23, %c0_i32_9 : i32
    %25 = arith.index_cast %24 : i32 to index
    %c0_10 = arith.constant 0 : index
    %c0_11 = arith.constant 0 : index
    %c0_12 = arith.constant 0 : index
    %26 = vector.load %arg6[%25, %c0_10, %c0_11, %c0_12] : memref<2x12x12x128xf32, #tpu.memory_space<vmem>>, vector<1x12x12x128xf32>
    %27 = vector.shape_cast %26 : vector<1x12x12x128xf32> to vector<12x12x128xf32>
    %28 = vector.shape_cast %22 : vector<12x12x128xf32> to vector<1x12x12x128xf32>
    tpu.vector_store %arg6[%25, %c0_10, %c0_11, %c0_12], %28 {strides = array<i32>} : memref<2x12x12x128xf32, #tpu.memory_space<vmem>>, vector<1x12x12x128xf32>,
    %cst_13 = arith.constant dense<0.000000e+00> : vector<128xf32>
    %29 = vector.multi_reduction <add>, %22, %cst_13 [0, 1] : vector<12x12x128xf32> to vector<128xf32>
    %30 = vector.shape_cast %29 : vector<128xf32> to vector<1x128xf32>
    %31 = arith.addf %3, %30 : vector<1x128xf32>
    %32 = arith.mulf %22, %22 : vector<12x12x128xf32>
    %cst_14 = arith.constant dense<0.000000e+00> : vector<128xf32>
    %33 = vector.multi_reduction <add>, %32, %cst_14 [0, 1] : vector<12x12x128xf32> to vector<128xf32>
    %34 = vector.shape_cast %33 : vector<128xf32> to vector<1x128xf32>
    %35 = arith.addf %4, %34 : vector<1x128xf32>
    %c1 = arith.constant 1 : index
    %c0_15 = arith.constant 0 : index
    %c0_16 = arith.constant 0 : index
    %36 = vector.load %arg1[%c1, %c0_15, %c0_16] : memref<2x196x27xbf16, #tpu.memory_space<vmem>>, vector<1x196x27xbf16>
    %37 = vector.shape_cast %36 : vector<1x196x27xbf16> to vector<196x27xbf16>
    %c0_17 = arith.constant 0 : index
    %c0_18 = arith.constant 0 : index
    %38 = vector.load %arg2[%c0_17, %c0_18] : memref<27x128xbf16, #tpu.memory_space<vmem>>, vector<27x128xbf16>
    %cst_19 = arith.constant dense<0.000000e+00> : vector<196x128xf32>
    %39 = tpu.matmul %37, %38, %cst_19 {dimension_numbers = #tpu.dot_dimension_numbers<[1], [0], [0], [1], [0, 0, 1, 1], [], []>} : vector<196x27xbf16>, vector<27x128xbf16>, vector<196x128xf32> -> vector<196x128xf32>
    %c0_20 = arith.constant 0 : index
    %c0_21 = arith.constant 0 : index
    %40 = vector.load %arg3[%c0_20, %c0_21] : memref<1x128xf32, #tpu.memory_space<vmem>>, vector<1x128xf32>
    %41 = vector.broadcast %40 : vector<1x128xf32> to vector<196x128xf32>
    %42 = arith.addf %39, %41 : vector<196x128xf32>
    %43 = vector.shape_cast %42 : vector<196x128xf32> to vector<14x14x128xf32>
    %44 = vector.extract_strided_slice %43 {offsets = [0, 0, 0], sizes = [14, 12, 128], strides = [1, 1, 1]} : vector<14x14x128xf32> to vector<14x12x128xf32>
    %45 = vector.extract_strided_slice %43 {offsets = [0, 1, 0], sizes = [14, 12, 128], strides = [1, 1, 1]} : vector<14x14x128xf32> to vector<14x12x128xf32>
    %46 = arith.maximumf %44, %45 : vector<14x12x128xf32>
    %47 = vector.extract_strided_slice %43 {offsets = [0, 2, 0], sizes = [14, 12, 128], strides = [1, 1, 1]} : vector<14x14x128xf32> to vector<14x12x128xf32>
    %48 = arith.maximumf %46, %47 : vector<14x12x128xf32>
    %49 = vector.extract_strided_slice %48 {offsets = [0, 0, 0], sizes = [12, 12, 128], strides = [1, 1, 1]} : vector<14x12x128xf32> to vector<12x12x128xf32>
    %50 = vector.extract_strided_slice %48 {offsets = [1, 0, 0], sizes = [12, 12, 128], strides = [1, 1, 1]} : vector<14x12x128xf32> to vector<12x12x128xf32>
    %51 = arith.maximumf %49, %50 : vector<12x12x128xf32>
    %52 = vector.extract_strided_slice %48 {offsets = [2, 0, 0], sizes = [12, 12, 128], strides = [1, 1, 1]} : vector<14x12x128xf32> to vector<12x12x128xf32>
    %53 = arith.maximumf %51, %52 : vector<12x12x128xf32>
    %c2_i32_22 = arith.constant 2 : i32
    %54 = arith.muli %arg0, %c2_i32_22 : i32
    %c1_i32 = arith.constant 1 : i32
    %55 = arith.addi %54, %c1_i32 : i32
    %56 = arith.index_cast %55 : i32 to index
    %c0_23 = arith.constant 0 : index
    %c0_24 = arith.constant 0 : index
    %c0_25 = arith.constant 0 : index
    %57 = vector.load %arg6[%56, %c0_23, %c0_24, %c0_25] : memref<2x12x12x128xf32, #tpu.memory_space<vmem>>, vector<1x12x12x128xf32>
    %58 = vector.shape_cast %57 : vector<1x12x12x128xf32> to vector<12x12x128xf32>
    %59 = vector.shape_cast %53 : vector<12x12x128xf32> to vector<1x12x12x128xf32>
    tpu.vector_store %arg6[%56, %c0_23, %c0_24, %c0_25], %59 {strides = array<i32>} : memref<2x12x12x128xf32, #tpu.memory_space<vmem>>, vector<1x12x12x128xf32>,
    %cst_26 = arith.constant dense<0.000000e+00> : vector<128xf32>
    %60 = vector.multi_reduction <add>, %53, %cst_26 [0, 1] : vector<12x12x128xf32> to vector<128xf32>
    %61 = vector.shape_cast %60 : vector<128xf32> to vector<1x128xf32>
    %62 = arith.addf %31, %61 : vector<1x128xf32>
    %63 = arith.mulf %53, %53 : vector<12x12x128xf32>
    %cst_27 = arith.constant dense<0.000000e+00> : vector<128xf32>
    %64 = vector.multi_reduction <add>, %63, %cst_27 [0, 1] : vector<12x12x128xf32> to vector<128xf32>
    %65 = vector.shape_cast %64 : vector<128xf32> to vector<1x128xf32>
    %66 = arith.addf %35, %65 : vector<1x128xf32>
    %c0_28 = arith.constant 0 : index
    %c0_29 = arith.constant 0 : index
    %67 = vector.load %arg7[%c0_28, %c0_29] : memref<1x128xf32, #tpu.memory_space<vmem>>, vector<1x128xf32>
    %68 = arith.addf %67, %62 : vector<1x128xf32>
    %c0_30 = arith.constant 0 : index
    %c0_31 = arith.constant 0 : index
    %69 = vector.load %arg7[%c0_30, %c0_31] : memref<1x128xf32, #tpu.memory_space<vmem>>, vector<1x128xf32>
    tpu.vector_store %arg7[%c0_30, %c0_31], %68 {strides = array<i32>} : memref<1x128xf32, #tpu.memory_space<vmem>>, vector<1x128xf32>,
    %c0_32 = arith.constant 0 : index
    %c0_33 = arith.constant 0 : index
    %70 = vector.load %arg8[%c0_32, %c0_33] : memref<1x128xf32, #tpu.memory_space<vmem>>, vector<1x128xf32>
    %71 = arith.addf %70, %66 : vector<1x128xf32>
    %c0_34 = arith.constant 0 : index
    %c0_35 = arith.constant 0 : index
    %72 = vector.load %arg8[%c0_34, %c0_35] : memref<1x128xf32, #tpu.memory_space<vmem>>, vector<1x128xf32>
    tpu.vector_store %arg8[%c0_34, %c0_35], %71 {strides = array<i32>} : memref<1x128xf32, #tpu.memory_space<vmem>>, vector<1x128xf32>,
    %c0_i32_36 = arith.constant 0 : i32
    %73 = arith.cmpi eq, %arg0, %c0_i32_36 : i32
    %74 = arith.extui %73 : i1 to i32
    %c0_i32_37 = arith.constant 0 : i32
    %75 = arith.cmpi ne, %74, %c0_i32_37 : i32
    scf.if %75 {
      %c0_38 = arith.constant 0 : index
      %c0_39 = arith.constant 0 : index
      %76 = vector.load %arg7[%c0_38, %c0_39] : memref<1x128xf32, #tpu.memory_space<vmem>>, vector<1x128xf32>
      %cst_40 = arith.constant 0.00347222225 : f32
      %77 = vector.broadcast %cst_40 : f32 to vector<1x128xf32>
      %78 = arith.mulf %76, %77 : vector<1x128xf32>
      %c0_41 = arith.constant 0 : index
      %c0_42 = arith.constant 0 : index
      %79 = vector.load %arg8[%c0_41, %c0_42] : memref<1x128xf32, #tpu.memory_space<vmem>>, vector<1x128xf32>
      %cst_43 = arith.constant 0.00347222225 : f32
      %80 = vector.broadcast %cst_43 : f32 to vector<1x128xf32>
      %81 = arith.mulf %79, %80 : vector<1x128xf32>
      %82 = arith.mulf %78, %78 : vector<1x128xf32>
      %83 = arith.subf %81, %82 : vector<1x128xf32>
      %c0_44 = arith.constant 0 : index
      %c0_45 = arith.constant 0 : index
      %84 = vector.load %arg4[%c0_44, %c0_45] : memref<1x128xf32, #tpu.memory_space<vmem>>, vector<1x128xf32>
      %cst_46 = arith.constant 9.99999974E-6 : f32
      %85 = vector.broadcast %cst_46 : f32 to vector<1x128xf32>
      %86 = arith.addf %83, %85 : vector<1x128xf32>
      %87 = math.rsqrt %86 : vector<1x128xf32>
      %88 = arith.mulf %84, %87 : vector<1x128xf32>
      %c0_47 = arith.constant 0 : index
      %c0_48 = arith.constant 0 : index
      %89 = vector.load %arg5[%c0_47, %c0_48] : memref<1x128xf32, #tpu.memory_space<vmem>>, vector<1x128xf32>
      %90 = arith.mulf %78, %88 : vector<1x128xf32>
      %91 = arith.subf %89, %90 : vector<1x128xf32>
      %c0_49 = arith.constant 0 : index
      %c0_50 = arith.constant 0 : index
      %c0_51 = arith.constant 0 : index
      %c0_52 = arith.constant 0 : index
      %92 = vector.load %arg6[%c0_49, %c0_50, %c0_51, %c0_52] : memref<2x12x12x128xf32, #tpu.memory_space<vmem>>, vector<2x12x12x128xf32>
      %93 = vector.shape_cast %88 : vector<1x128xf32> to vector<1x1x1x128xf32>
      %94 = vector.broadcast %93 : vector<1x1x1x128xf32> to vector<2x12x12x128xf32>
      %95 = arith.mulf %92, %94 : vector<2x12x12x128xf32>
      %96 = vector.shape_cast %91 : vector<1x128xf32> to vector<1x1x1x128xf32>
      %97 = vector.broadcast %96 : vector<1x1x1x128xf32> to vector<2x12x12x128xf32>
      %98 = arith.addf %95, %97 : vector<2x12x12x128xf32>
      %cst_53 = arith.constant 0.000000e+00 : f32
      %99 = vector.broadcast %cst_53 : f32 to vector<2x12x12x128xf32>
      %100 = arith.maximumf %98, %99 : vector<2x12x12x128xf32>
      %c0_54 = arith.constant 0 : index
      %c0_55 = arith.constant 0 : index
      %c0_56 = arith.constant 0 : index
      %c0_57 = arith.constant 0 : index
      %101 = vector.load %arg6[%c0_54, %c0_55, %c0_56, %c0_57] : memref<2x12x12x128xf32, #tpu.memory_space<vmem>>, vector<2x12x12x128xf32>
      tpu.vector_store %arg6[%c0_54, %c0_55, %c0_56, %c0_57], %100 {strides = array<i32>} : memref<2x12x12x128xf32, #tpu.memory_space<vmem>>, vector<2x12x12x128xf32>,
    } else {
    }
    return
  }
  func.func @transform_0(%arg0: i32) -> (i32, i32, i32) {
    %c0_i32 = arith.constant 0 : i32
    %c0_i32_0 = arith.constant 0 : i32
    %c0_i32_1 = arith.constant 0 : i32
    return %arg0, %c0_i32, %c0_i32_0 : i32, i32, i32
  }
  func.func @transform_1(%arg0: i32) -> (i32, i32) {
    %c0_i32 = arith.constant 0 : i32
    %c0_i32_0 = arith.constant 0 : i32
    %c0_i32_1 = arith.constant 0 : i32
    return %c0_i32, %c0_i32_0 : i32, i32
  }
  func.func @transform_2(%arg0: i32) -> (i32, i32) {
    %c0_i32 = arith.constant 0 : i32
    %c0_i32_0 = arith.constant 0 : i32
    %c0_i32_1 = arith.constant 0 : i32
    return %c0_i32, %c0_i32_0 : i32, i32
  }
  func.func @transform_3(%arg0: i32) -> (i32, i32) {
    %c0_i32 = arith.constant 0 : i32
    %c0_i32_0 = arith.constant 0 : i32
    %c0_i32_1 = arith.constant 0 : i32
    return %c0_i32, %c0_i32_0 : i32, i32
  }
  func.func @transform_4(%arg0: i32) -> (i32, i32) {
    %c0_i32 = arith.constant 0 : i32
    %c0_i32_0 = arith.constant 0 : i32
    %c0_i32_1 = arith.constant 0 : i32
    return %c0_i32, %c0_i32_0 : i32, i32
  }
  func.func @transform_5(%arg0: i32) -> (i32, i32, i32, i32) {
    %c0_i32 = arith.constant 0 : i32
    %c0_i32_0 = arith.constant 0 : i32
    %c0_i32_1 = arith.constant 0 : i32
    %c0_i32_2 = arith.constant 0 : i32
    %c0_i32_3 = arith.constant 0 : i32
    return %c0_i32, %c0_i32_0, %c0_i32_1, %c0_i32_2 : i32, i32, i32, i32
  }
}

</mosaic_0001>

<bundles_post_ra>
// kernel: tpu_custom_call.1
= control target key start
LH: loop header
LB: loop body
LE: loop exit
PB: predicated region body
PF: predicated region fallthrough
CT: control target
= control target key end

     0   :  { %vm177_vm0 = vcmask 1044480   ;;  %vm178_vm1 = vcmask 1045504   ;;  %v5589_v0 = vmov 0.0   ;;  %v5590_v2 = vmov 65535   ;;  %s8917_s1 = inlined_call_operand.vmem [shape: bf16[27,128], index: 1, kind: input, shape index: {}]   ;;  %s8918_s0 = inlined_call_operand.vmem [shape: bf16[2,196,27], index: 0, kind: input, shape index: {}]   ;;  %s8919_s2 = inlined_call_operand.vmem [shape: f32[1,128], index: 2, kind: input, shape index: {}]   ;;  %s8920_s5 = inlined_call_operand.vmem [shape: f32[2,12,12,128], index: 5, kind: output, shape index: {}]   ;;  %s8921_s3 = inlined_call_operand.vmem [shape: f32[1,128], index: 3, kind: input, shape index: {}]   ;;  %s8922_s4 = inlined_call_operand.vmem [shape: f32[1,128], index: 4, kind: input, shape index: {}]  }
   0x1   :  { %5437 = vmatprep.subr.bf16.mxu0 %v5589_v0  ;;  %25 = vst [vmem:[#allocation2] sm:$0x1] %v5589_v0  ;;  %26 = vst [vmem:[#allocation3] sm:$0x1] %v5589_v0  ;;  %5493 = vmatprep.subr.bf16.mxu1 %v5589_v0  ;;  %v5553_v1 = vld [vmem:[%s8917_s1] sm:$0xff]   ;;  %v179_v3 = vsel %vm177_vm0, 4294967295, %v5590_v2  ;;  %v349_v38 = vlaneseq }
   0x2   :  { %v5554_v4 = vld [vmem:[%s8917_s1] sm:$0xff]   ;;  %v180_v5 = vsel %vm178_vm1, %v179_v3, 0  ;;  %5438 = vmatpush3.bf16.msra.mxu0 %v5553_v1  ;;  %v5555_v6 = vld [vmem:[%s8917_s1 + $0x8] sm:$0x3f]   ;;  %vm5591_vm2 = vmmov 0   ;;  %vm137_vm3 = vcmask 220160  }
   0x3   :  { %5494 = vmatpush3.bf16.msra.mxu1 %v5554_v4  ;;  %5439 = vmatprep.subr.bf16.mxu0 %v5589_v0  ;;  %v5556_v7 = vld [vmem:[%s8917_s1 + $0x8] sm:$0x3f]   ;;  %v182_v8 = vand.u32 %v5555_v6, %v180_v5  ;;  %v5557_v10 = vld [vmem:[%s8918_s0] sm:$0xff]   ;;  %v5561_v14 = vld [vmem:[%s8918_s0 + $0x10] sm:$0xff]   ;;  %v5592_v36 = vmov 1983009808  }
   0x4   :  { %5495 = vmatprep.subr.bf16.mxu1 %v5589_v0  ;;  %v2655_v9 = vand.u32 %v5556_v7, %v180_v5  ;;  %5441 = vmatprep.mubr.msk.bf16.mxu0 %vm5591_vm2, %v5589_v0  ;;  %v5558_v11 = vld [vmem:[%s8918_s0 + $0x64] sm:$0xff]   ;;  %v5560_v13 = vld [vmem:[%s8918_s0 + $0x6c] sm:$0xff]   ;;  %v5562_v15 = vld [vmem:[%s8918_s0 + $0x74] sm:$0xff]   ;;  %v347_v37 = vunpack.c.l.s4 %v5592_v36  ;;  %v5797_v40 = vshrl.u32 %v349_v38, 7  ;;  %vm859_vm4 = vcmask 1040384  }
   0x5   :  { %5497 = vmatprep.mubr.msk.bf16.mxu1 %vm5591_vm2, %v5589_v0  ;;  %v5559_v12 = vld [vmem:[%s8918_s0 + $0x8] sm:$0xff]   ;;  %v5563_v16 = vld [vmem:[%s8918_s0 + $0x18] sm:$0xff]   ;;  %v5565_v18 = vld [vmem:[%s8918_s0 + $0x20] sm:$0xff]   ;;  %vm860_vm5 = vcmask 1042434   ;;  %vm862_vm7 = vcmask 1044484   ;;  %vm864_vm9 = vcmask 1046534  }
   0x6   :  { %5440 = vmatpush3.bf16.msra.mxu0 %v182_v8  ;;  %v5564_v17 = vld [vmem:[%s8918_s0 + $0x7c] sm:$0xff]   ;;  %v5566_v19 = vld [vmem:[%s8918_s0 + $0x84] sm:$0xff]   ;;  %v5568_v21 = vld [vmem:[%s8918_s0 + $0x8c] sm:$0xff]   ;;  %v348_v39 = vunpack.c.0.s8 %v347_v37  ;;  %8955 = vst [vmem:[#allocation4_spill] sm:$0xff] %v5797_v40  ;;  %vm1951_vm11 = vcmask 1043456  }
   0x7   :  { %5496 = vmatpush3.bf16.msra.mxu1 %v2655_v9  ;;  %v5567_v20 = vld [vmem:[%s8918_s0 + $0x28] sm:$0xff]   ;;  %v5569_v22 = vld [vmem:[%s8918_s0 + $0x30] sm:$0xff]   ;;  %v5571_v24 = vld [vmem:[%s8918_s0 + $0x38] sm:$0xff]  }
   0x8   :  { %v5570_v23 = vld [vmem:[%s8918_s0 + $0x94] sm:$0xff]   ;;  %v5572_v25 = vld [vmem:[%s8918_s0 + $0x9c] sm:$0xff]   ;;  %v5574_v27 = vld [vmem:[%s8918_s0 + $0xa4] sm:$0xff]   ;;  %v5805_v42 = vsub.s32 %v348_v39, %v5797_v40 }
   0x9   :  { %5442 = vmatmul.mubr.msk.bf16.vlgmr.msra.gmra.mrb[0].mxu0 %vm137_vm3, %v5557_v10  ;;  %v5573_v26 = vld [vmem:[%s8918_s0 + $0x40] sm:$0xff]   ;;  %v5575_v28 = vld [vmem:[%s8918_s0 + $0x48] sm:$0xff]   ;;  %v5577_v30 = vld [vmem:[%s8918_s0 + $0x50] sm:$0xff]  }
   0xa   :  { %5498 = vmatmul.mubr.msk.bf16.vlgmr.msra.gmra.mrb[0].mxu1 %vm137_vm3, %v5558_v11  ;;  %5445 = vmatprep.mubr.msk.bf16.mxu0 %vm5591_vm2, %v5589_v0  ;;  %v5576_v29 = vld [vmem:[%s8918_s0 + $0xac] sm:$0xff]   ;;  %v5578_v31 = vld [vmem:[%s8918_s0 + $0xb4] sm:$0xff]   ;;  %v5580_v33 = vld [vmem:[%s8918_s0 + $0xbc] sm:$0xff]  }
   0xb   :  { %5501 = vmatprep.mubr.msk.bf16.mxu1 %vm5591_vm2, %v5589_v0  ;;  %v5579_v32 = vld [vmem:[%s8918_s0 + $0x58] sm:$0xff]   ;;  %v5581_v34 = vld [vmem:[%s8918_s0 + $0x60] ss:$0 sps:$4 sm:$0x33]   ;;  %vm861_vm6 = vmor %vm859_vm4, %vm860_vm5 }
   0xc   :  { %v5582_v35 = vld [vmem:[%s8918_s0 + $0xc4] ss:$0 sps:$4 sm:$0x33]   ;;  %v5802_v41 = vld [vmem:[%s8919_s2] ss:$0 sm:$0xff]  ;;  %vm863_vm8 = vmor %vm861_vm6, %vm862_vm7 }
   0xd   :  { %vm5816_vm10 = vmor %vm863_vm8, %vm864_vm9 }
  0x11   :  { %5446 = vmatmul.mubr.msk.bf16.gmra.mrb[4].mxu0 %vm137_vm3, %v5559_v12 }
  0x12   :  { %5502 = vmatmul.mubr.msk.bf16.gmra.mrb[4].mxu1 %vm137_vm3, %v5560_v13  ;;  %5449 = vmatprep.mubr.msk.bf16.mxu0 %vm5591_vm2, %v5589_v0 }
  0x13   :  { %5505 = vmatprep.mubr.msk.bf16.mxu1 %vm5591_vm2, %v5589_v0 }
  0x19   :  { %5450 = vmatmul.mubr.msk.bf16.gmra.mrb[8].mxu0 %vm137_vm3, %v5561_v14 }
  0x1a   :  { %5506 = vmatmul.mubr.msk.bf16.gmra.mrb[8].mxu1 %vm137_vm3, %v5562_v15  ;;  %5453 = vmatprep.mubr.msk.bf16.mxu0 %vm5591_vm2, %v5589_v0 }
  0x1b   :  { %5509 = vmatprep.mubr.msk.bf16.mxu1 %vm5591_vm2, %v5589_v0 }
  0x21   :  { %5454 = vmatmul.mubr.msk.bf16.gmra.mrb[12].mxu0 %vm137_vm3, %v5563_v16 }
  0x22   :  { %5510 = vmatmul.mubr.msk.bf16.gmra.mrb[12].mxu1 %vm137_vm3, %v5564_v17  ;;  %5457 = vmatprep.mubr.msk.bf16.mxu0 %vm5591_vm2, %v5589_v0 }
  0x23   :  { %5513 = vmatprep.mubr.msk.bf16.mxu1 %vm5591_vm2, %v5589_v0 }
  0x29   :  { %5458 = vmatmul.mubr.msk.bf16.gmra.mrb[16].mxu0 %vm137_vm3, %v5565_v18 }
  0x2a   :  { %5514 = vmatmul.mubr.msk.bf16.gmra.mrb[16].mxu1 %vm137_vm3, %v5566_v19  ;;  %5461 = vmatprep.mubr.msk.bf16.mxu0 %vm5591_vm2, %v5589_v0 }
  0x2b   :  { %5517 = vmatprep.mubr.msk.bf16.mxu1 %vm5591_vm2, %v5589_v0 }
  0x31   :  { %5462 = vmatmul.mubr.msk.bf16.gmra.mrb[20].mxu0 %vm137_vm3, %v5567_v20 }
  0x32   :  { %5518 = vmatmul.mubr.msk.bf16.gmra.mrb[20].mxu1 %vm137_vm3, %v5568_v21  ;;  %5465 = vmatprep.mubr.msk.bf16.mxu0 %vm5591_vm2, %v5589_v0 }
  0x33   :  { %5521 = vmatprep.mubr.msk.bf16.mxu1 %vm5591_vm2, %v5589_v0 }
  0x39   :  { %5466 = vmatmul.mubr.msk.bf16.gmra.mrb[24].mxu0 %vm137_vm3, %v5569_v22 }
  0x3a   :  { %5522 = vmatmul.mubr.msk.bf16.gmra.mrb[24].mxu1 %vm137_vm3, %v5570_v23  ;;  %5469 = vmatprep.mubr.msk.bf16.mxu0 %vm5591_vm2, %v5589_v0 }
  0x3b   :  { %5525 = vmatprep.mubr.msk.bf16.mxu1 %vm5591_vm2, %v5589_v0 }
  0x41   :  { %5470 = vmatmul.mubr.msk.bf16.gmra.mrb[28].mxu0 %vm137_vm3, %v5571_v24 }
  0x42   :  { %5526 = vmatmul.mubr.msk.bf16.gmra.mrb[28].mxu1 %vm137_vm3, %v5572_v25  ;;  %5473 = vmatprep.mubr.msk.bf16.mxu0 %vm5591_vm2, %v5589_v0 }
  0x43   :  { %5529 = vmatprep.mubr.msk.bf16.mxu1 %vm5591_vm2, %v5589_v0 }
  0x49   :  { %5474 = vmatmul.mubr.msk.bf16.gmra.mrb[32].mxu0 %vm137_vm3, %v5573_v26 }
  0x4a   :  { %5530 = vmatmul.mubr.msk.bf16.gmra.mrb[32].mxu1 %vm137_vm3, %v5574_v27  ;;  %5477 = vmatprep.mubr.msk.bf16.mxu0 %vm5591_vm2, %v5589_v0 }
  0x4b   :  { %5533 = vmatprep.mubr.msk.bf16.mxu1 %vm5591_vm2, %v5589_v0 }
  0x51   :  { %5478 = vmatmul.mubr.msk.bf16.gmra.mrb[36].mxu0 %vm137_vm3, %v5575_v28 }
  0x52   :  { %5534 = vmatmul.mubr.msk.bf16.gmra.mrb[36].mxu1 %vm137_vm3, %v5576_v29  ;;  %5481 = vmatprep.mubr.msk.bf16.mxu0 %vm5591_vm2, %v5589_v0 }
  0x53   :  { %5537 = vmatprep.mubr.msk.bf16.mxu1 %vm5591_vm2, %v5589_v0 }
  0x59   :  { %5482 = vmatmul.mubr.msk.bf16.gmra.mrb[40].mxu0 %vm137_vm3, %v5577_v30 }
  0x5a   :  { %5538 = vmatmul.mubr.msk.bf16.gmra.mrb[40].mxu1 %vm137_vm3, %v5578_v31  ;;  %5485 = vmatprep.mubr.msk.bf16.mxu0 %vm5591_vm2, %v5589_v0 }
  0x5b   :  { %5541 = vmatprep.mubr.msk.bf16.mxu1 %vm5591_vm2, %v5589_v0 }
  0x61   :  { %5486 = vmatmul.mubr.msk.bf16.gmra.mrb[44].mxu0 %vm137_vm3, %v5579_v32 }
  0x62   :  { %5542 = vmatmul.mubr.msk.bf16.gmra.mrb[44].mxu1 %vm137_vm3, %v5580_v33  ;;  %5489 = vmatprep.mubr.msk.bf16.mxu0 %vm5591_vm2, %v5589_v0 }
  0x63   :  { %5545 = vmatprep.mubr.msk.bf16.mxu1 %vm5591_vm2, %v5589_v0 }
  0x69   :  { %5490 = vmatmul.mubr.msk.bf16.gmra.mrb[48].mxu0 %vm137_vm3, %v5581_v34 }
  0x6a   :  { %5546 = vmatmul.mubr.msk.bf16.gmra.mrb[48].mxu1 %vm137_vm3, %v5582_v35 }
  0xdc   :  { %v218_v43 = vpop.f32.mrb[0].mxu0 }
  0xdd   :  { %v219_v44 = vadd.f32 %v5802_v41, %v218_v43  ;;  %v2691_v45 = vpop.f32.mrb[0].mxu1  ;;  %v5443_v46 = vpop.f32.mrb[1].mxu0 }
  0xde   :  { %v2692_v47 = vadd.f32 %v5802_v41, %v2691_v45  ;;  %v5499_v48 = vpop.f32.mrb[1].mxu1  ;;  %v221_v49 = vpop.f32.mrb[2].mxu0 }
  0xdf   :  { %v345_v50 = vcombine.high %v219_v44, %v219_v44  ;;  %v352_v51 = vrot.slane %v219_v44, %v5805_v42  ;;  %v222_v52 = vadd.f32 %v5802_v41, %v221_v49  ;;  %v2694_v53 = vpop.f32.mrb[2].mxu1  ;;  %v5444_v54 = vpop.f32.mrb[3].mxu0 }
  0xe0   :  { %v2818_v55 = vcombine.high %v2692_v47, %v2692_v47  ;;  %v2825_v56 = vrot.slane %v2692_v47, %v5805_v42  ;;  %v5813_v57 = vadd.f32 %v5802_v41, %v2694_v53  ;;  %v5500_v58 = vpop.f32.mrb[3].mxu1 }
  0xe1   :  { %v359_v59 = vrot.slane %v345_v50, %v5805_v42  ;;  %v360_v60 = vcombine.high %v352_v51, %v352_v51  ;;  %v5277_v61 = vrot.slane %v352_v51, 9  ;;  %v362_v62 = vcombine.high %v222_v52, %v222_v52 }
  0xe2   :  { %v2832_v0 = vrot.slane %v2818_v55, %v5805_v42  ;;  %v2833_v1 = vcombine.high %v2825_v56, %v2825_v56  ;;  %v5357_v2 = vrot.slane %v2825_v56, 9  ;;  %v5822_v3 = vrot.slane %v222_v52, %v5805_v42 }
  0xe3   :  { %v5824_v4 = vcombine.high %v359_v59, %v359_v59  ;;  %v868_v5 = vrot.slane %v360_v60, 7  ;;  %v871_v6 = vrot.slane %v359_v59, 7  ;;  %v5827_v7 = vrot.slane %v362_v62, %v5805_v42 }
  0xe4   :  { %v5829_v8 = vcombine.high %v2832_v0, %v2832_v0  ;;  %v3334_v9 = vrot.slane %v2833_v1, 7  ;;  %v3337_v10 = vrot.slane %v2832_v0, 7  ;;  %v5833_v11 = vcombine.high %v5822_v3, %v5822_v3  ;;  %v226_v12 = vpop.f32.mrb[4].mxu0 }
  0xe5   :  { %v869_v13 = vsel %vm5816_vm10, %v5277_v61, %v868_v5  ;;  %v870_v14 = vrot.slane %v868_v5, 2  ;;  %v873_v15 = vrot.slane %v871_v6, 2  ;;  %v874_v16 = vrot.slane %v5824_v4, 7  ;;  %v2699_v17 = vpop.f32.mrb[4].mxu1  ;;  %v5447_v18 = vpop.f32.mrb[5].mxu0 }
  0xe6   :  { %v1216_v19 = vmax.f32 %v352_v51, %v869_v13  ;;  %v3335_v20 = vsel %vm5816_vm10, %v5357_v2, %v3334_v9  ;;  %v3336_v21 = vrot.slane %v3334_v9, 2  ;;  %v3339_v22 = vrot.slane %v3337_v10, 2  ;;  %v5503_v23 = vpop.f32.mrb[5].mxu1  ;;  %v5840_v24 = vpop.f32.mrb[6].mxu0 }
  0xe7   :  { %v872_v25 = vsel %vm5816_vm10, %v870_v14, %v871_v6  ;;  %v875_v26 = vsel %vm5816_vm10, %v873_v15, %v874_v16  ;;  %v3340_v27 = vrot.slane %v5829_v8, 7  ;;  %v3682_v28 = vmax.f32 %v2825_v56, %v3335_v20  ;;  %v5847_v29 = vpop.f32.mrb[6].mxu1  ;;  %v5448_v30 = vpop.f32.mrb[7].mxu0 }
  0xe8   :  { %v1217_v31 = vmax.f32 %v360_v60, %v872_v25  ;;  %v1218_v32 = vmax.f32 %v359_v59, %v875_v26  ;;  %v5849_v33 = vmax.f32 %v1216_v19, %v360_v60  ;;  %v3338_v34 = vsel %vm5816_vm10, %v3336_v21, %v3337_v10  ;;  %v5504_v35 = vpop.f32.mrb[7].mxu1 }
  0xe9   :  { %v3341_v36 = vsel %vm5816_vm10, %v3339_v22, %v3340_v27  ;;  %v3683_v37 = vmax.f32 %v2833_v1, %v3338_v34  ;;  %v5855_v38 = vmax.f32 %v3682_v28, %v2833_v1  ;;  %v5859_v39 = vcombine.high %v5827_v7, %v5827_v7 }
  0xea   :  { %v5861_v43 = vmax.f32 %v1217_v31, %v359_v59  ;;  %v5864_v44 = vmax.f32 %v1218_v32, %v5824_v4  ;;  %v3684_v45 = vmax.f32 %v2832_v0, %v3341_v36  ;;  %v876_v46 = vrot.slane %v874_v16, 2 }
  0xeb   :  { %v5866_v47 = vmax.f32 %v3683_v37, %v2832_v0  ;;  %v877_v48 = vrot.slane %v5822_v3, 7  ;;  %v880_v49 = vrot.slane %v5833_v11, 7  ;;  %v883_v50 = vrot.slane %v5827_v7, 7 }
  0xec   :  { %v5872_v51 = vmax.f32 %v3684_v45, %v5829_v8  ;;  %v5278_v52 = vrot.slane %v5859_v39, 9  ;;  %v2835_v53 = vcombine.high %v5813_v57, %v5813_v57  ;;  %v2842_v54 = vrot.slane %v5813_v57, %v5805_v42  ;;  %v5879_v55 = vpop.f32.mrb[8].mxu0 }
  0xed   :  { %v878_v56 = vsel %vm5816_vm10, %v876_v46, %v877_v48  ;;  %v879_v58 = vrot.slane %v877_v48, 2  ;;  %v882_v59 = vrot.slane %v880_v49, 2  ;;  %v3342_v60 = vrot.slane %v3340_v27, 2  ;;  %v5883_v61 = vpop.f32.mrb[8].mxu1  ;;  %v5451_v62 = vpop.f32.mrb[9].mxu0 }
  0xee   :  { %v1219_v0 = vmax.f32 %v5824_v4, %v878_v56  ;;  %v2849_v1 = vrot.slane %v2835_v53, %v5805_v42  ;;  %v2850_v2 = vcombine.high %v2842_v54, %v2842_v54  ;;  %v3343_v5 = vrot.slane %v2842_v54, 7  ;;  %v5507_v6 = vpop.f32.mrb[9].mxu1  ;;  %v5887_v9 = vpop.f32.mrb[10].mxu0 }
  0xef   :  { %v881_v57 = vsel %vm5816_vm10, %v879_v58, %v880_v49  ;;  %v884_v10 = vsel %vm5816_vm10, %v882_v59, %v883_v50  ;;  %v227_v13 = vadd.f32 %v5802_v41, %v226_v12  ;;  %v2700_v14 = vadd.f32 %v5802_v41, %v2699_v17  ;;  %v5895_v15 = vpop.f32.mrb[10].mxu1  ;;  %v5452_v4 = vpop.f32.mrb[11].mxu0 }
  0xf0   :  { %v1220_v16 = vmax.f32 %v5822_v3, %v881_v57  ;;  %v1221_v18 = vmax.f32 %v5833_v11, %v884_v10  ;;  %v5900_v19 = vmax.f32 %v1219_v0, %v5822_v3  ;;  %v5902_v20 = vcombine.high %v2849_v1, %v2849_v1  ;;  %v5508_v21 = vpop.f32.mrb[11].mxu1 }
  0xf1   :  { %v3344_v22 = vsel %vm5816_vm10, %v3342_v60, %v3343_v5  ;;  %v3345_v23 = vrot.slane %v3343_v5, 2  ;;  %v3346_v12 = vrot.slane %v2850_v2, 7  ;;  %v3349_v25 = vrot.slane %v2849_v1, 7 }
  0xf2   :  { %v5907_v17 = vmax.f32 %v1220_v16, %v5833_v11  ;;  %v5910_v26 = vmax.f32 %v1221_v18, %v5827_v7  ;;  %v5358_v27 = vrot.slane %v5902_v20, 9  ;;  %v3685_v3 = vmax.f32 %v5829_v8, %v3344_v22 }
  0xf3   :  { %v3347_v28 = vsel %vm5816_vm10, %v3345_v23, %v3346_v12  ;;  %v3348_v30 = vrot.slane %v3346_v12, 2  ;;  %v379_v31 = vcombine.high %v227_v13, %v227_v13  ;;  %v386_v32 = vrot.slane %v227_v13, %v5805_v42 }
  0xf4   :  { %v3686_v34 = vmax.f32 %v2842_v54, %v3347_v28  ;;  %v5917_v35 = vmax.f32 %v3685_v3, %v2842_v54  ;;  %v2852_v36 = vcombine.high %v2700_v14, %v2700_v14  ;;  %v5920_v11 = vrot.slane %v2700_v14, %v5805_v42  ;;  %v5922_v7 = vpop.f32.mrb[12].mxu0 }
  0xf5   :  { %v3350_v37 = vsel %vm5816_vm10, %v3348_v30, %v3349_v25  ;;  %v393_v8 = vrot.slane %v379_v31, %v5805_v42  ;;  %v394_v45 = vcombine.high %v386_v32, %v386_v32  ;;  %v887_v46 = vrot.slane %v386_v32, 7  ;;  %v5927_v48 = vpop.f32.mrb[12].mxu1  ;;  %v5455_v49 = vpop.f32.mrb[13].mxu0 }
  0xf6   :  { %v3687_v50 = vmax.f32 %v2850_v2, %v3350_v37  ;;  %v5929_v53 = vmax.f32 %v3686_v34, %v2850_v2  ;;  %v5932_v54 = vrot.slane %v2852_v36, %v5805_v42  ;;  %v2867_v56 = vcombine.high %v5920_v11, %v5920_v11  ;;  %v5511_v58 = vpop.f32.mrb[13].mxu1  ;;  %v5936_v59 = vpop.f32.mrb[14].mxu0 }
  0xf7   :  { %v5938_v60 = vcombine.high %v393_v8, %v393_v8  ;;  %v888_v62 = vsel %vm5816_vm10, %v5278_v52, %v887_v46  ;;  %v889_v0 = vrot.slane %v887_v46, 2  ;;  %v890_v5 = vrot.slane %v394_v45, 7  ;;  %v5942_v6 = vpop.f32.mrb[14].mxu1  ;;  %v5456_v2 = vpop.f32.mrb[15].mxu0 }
  0xf8   :  { %v5944_v57 = vmax.f32 %v3687_v50, %v2849_v1  ;;  %v893_v10 = vrot.slane %v393_v8, 7  ;;  %v1222_v13 = vmax.f32 %v5859_v39, %v888_v62  ;;  %v5949_v14 = vcombine.high %v5932_v54, %v5932_v54  ;;  %v5512_v4 = vpop.f32.mrb[15].mxu1 }
  0xf9   :  { %v891_v16 = vsel %vm5816_vm10, %v889_v0, %v890_v5  ;;  %v892_v18 = vrot.slane %v890_v5, 2  ;;  %v896_v52 = vrot.slane %v5938_v60, 7  ;;  %v3353_v21 = vrot.slane %v5920_v11, 7 }
  0xfa   :  { %v895_v22 = vrot.slane %v893_v10, 2  ;;  %v1223_v23 = vmax.f32 %v386_v32, %v891_v16  ;;  %v5955_v1 = vmax.f32 %v1222_v13, %v386_v32  ;;  %v3356_v12 = vrot.slane %v2867_v56, 7 }
  0xfb   :  { %v894_v39 = vsel %vm5816_vm10, %v892_v18, %v893_v10  ;;  %v3354_v25 = vsel %vm5816_vm10, %v5358_v27, %v3353_v21  ;;  %v3355_v3 = vrot.slane %v3353_v21, 2  ;;  %v3359_v28 = vrot.slane %v5932_v54, 7 }
  0xfc   :  { %v897_v30 = vsel %vm5816_vm10, %v895_v22, %v896_v52  ;;  %v1224_v31 = vmax.f32 %v394_v45, %v894_v39  ;;  %v5964_v34 = vmax.f32 %v1223_v23, %v394_v45  ;;  %v1384_v32 = vmax.f32 %v5849_v33, %v5955_v1  ;;  %v5968_v36 = vpop.f32.mrb[16].mxu0 }
  0xfd   :  { %8958 = vst [vmem:[#allocation5_spill] sm:$0xff] %v5968_v36  ;;  %v1225_v37 = vmax.f32 %v393_v8, %v897_v30  ;;  %v3357_v46 = vsel %vm5816_vm10, %v3355_v3, %v3356_v12  ;;  %v3358_v49 = vrot.slane %v3356_v12, 2  ;;  %v3361_v27 = vrot.slane %v3359_v28, 2  ;;  %v5972_v50 = vpop.f32.mrb[16].mxu1  ;;  %v5459_v58 = vpop.f32.mrb[17].mxu0 }
  0xfe   :  { %8959 = vst [vmem:[#allocation6_spill] sm:$0xff] %v5972_v50  ;;  %v5974_v62 = vmax.f32 %v1224_v31, %v393_v8  ;;  %v3362_v0 = vrot.slane %v5949_v14, 7  ;;  %v3688_v5 = vmax.f32 %v5902_v20, %v3354_v25  ;;  %v5515_v2 = vpop.f32.mrb[17].mxu1  ;;  %v5980_v10 = vpop.f32.mrb[18].mxu0  ;;  %v3689_v16 = vmax.f32 %v5920_v11, %v3357_v46 }
  0xff   :  { %8960 = vst [vmem:[#allocation7_spill] sm:$0xff] %v5980_v10  ;;  %v5983_v13 = vmax.f32 %v1225_v37, %v5938_v60  ;;  %v3360_v4 = vsel %vm5816_vm10, %v3358_v49, %v3359_v28  ;;  %v230_v8 = vadd.f32 %v5802_v41, %v5840_v24  ;;  %v5990_v18 = vpop.f32.mrb[18].mxu1  ;;  %v5460_v21 = vpop.f32.mrb[19].mxu0  ;;  %v898_v46 = vrot.slane %v896_v52, 2 }
 0x100   :  { %8961 = vst [vmem:[#allocation8_spill] sm:$0xff] %v5990_v18  ;;  %v3363_v22 = vsel %vm5816_vm10, %v3361_v27, %v3362_v0  ;;  %v3690_v23 = vmax.f32 %v2867_v56, %v3360_v4  ;;  %v5997_v12 = vmax.f32 %v3688_v5, %v5920_v11  ;;  %v5516_v39 = vpop.f32.mrb[19].mxu1  ;;  %v6002_v24 = vmax.f32 %v3689_v16, %v2867_v56 }
 0x101   :  { %v3691_v3 = vmax.f32 %v5932_v54, %v3363_v22  ;;  %v396_v28 = vcombine.high %v230_v8, %v230_v8  ;;  %v403_v37 = vrot.slane %v230_v8, %v5805_v42  ;;  %v2703_v56 = vadd.f32 %v5802_v41, %v5847_v29 }
 0x102   :  { %v6005_v30 = vmax.f32 %v3690_v23, %v5932_v54  ;;  %v3364_v2 = vrot.slane %v3362_v0, 2 }
 0x103   :  { %v6011_v11 = vmax.f32 %v3691_v3, %v5949_v14  ;;  %v410_v27 = vrot.slane %v396_v28, %v5805_v42  ;;  %v411_v58 = vcombine.high %v403_v37, %v403_v37  ;;  %v899_v5 = vrot.slane %v403_v37, 7 }
 0x104   :  { %v2869_v8 = vcombine.high %v2703_v56, %v2703_v56  ;;  %v2876_v29 = vrot.slane %v2703_v56, %v5805_v42  ;;  %v235_v28 = vadd.f32 %v5802_v41, %v5879_v55 }
 0x105   :  { %v6022_v4 = vcombine.high %v410_v27, %v410_v27  ;;  %v5279_v16 = vrot.slane %v410_v27, 9  ;;  %v900_v21 = vsel %vm5816_vm10, %v898_v46, %v899_v5  ;;  %v901_v22 = vrot.slane %v899_v5, 2 }
 0x106   :  { %v902_v23 = vrot.slane %v411_v58, 7  ;;  %v1226_v3 = vmax.f32 %v5938_v60, %v900_v21  ;;  %v2883_v0 = vrot.slane %v2869_v8, %v5805_v42  ;;  %v2884_v54 = vcombine.high %v2876_v29, %v2876_v29 }
 0x107   :  { %v906_v39 = vrot.slane %v6022_v4, 7  ;;  %v3365_v49 = vrot.slane %v2876_v29, 7  ;;  %v2708_v46 = vadd.f32 %v5802_v41, %v5883_v61 }
 0x108   :  { %v903_v52 = vsel %vm5816_vm10, %v901_v22, %v902_v23  ;;  %v6038_v20 = vmax.f32 %v1226_v3, %v403_v37  ;;  %v6040_v8 = vcombine.high %v2883_v0, %v2883_v0  ;;  %v3368_v61 = vrot.slane %v2884_v54, 7 }
 0x109   :  { %v907_v56 = vsel %vm5816_vm10, %v5279_v16, %v906_v39  ;;  %v908_v5 = vrot.slane %v906_v39, 2  ;;  %v1227_v25 = vmax.f32 %v403_v37, %v903_v52  ;;  %v3366_v55 = vsel %vm5816_vm10, %v3364_v2, %v3365_v49 }
 0x10a   :  { %v1228_v60 = vmax.f32 %v410_v27, %v907_v56  ;;  %v3367_v21 = vrot.slane %v3365_v49, 2  ;;  %v5359_v45 = vrot.slane %v2883_v0, 9  ;;  %v3372_v37 = vrot.slane %v6040_v8, 7 }
 0x10b   :  { %v6044_v22 = vmax.f32 %v1227_v25, %v411_v58  ;;  %v3692_v27 = vmax.f32 %v5949_v14, %v3366_v55  ;;  %v413_v52 = vcombine.high %v235_v28, %v235_v28  ;;  %v420_v49 = vrot.slane %v235_v28, %v5805_v42 }
 0x10c   :  { %v6049_v16 = vmax.f32 %v1228_v60, %v6022_v4  ;;  %v3369_v39 = vsel %vm5816_vm10, %v3367_v21, %v3368_v61  ;;  %v2886_v25 = vcombine.high %v2708_v46, %v2708_v46  ;;  %v6057_v58 = vrot.slane %v2708_v46, %v5805_v42  ;;  %v6067_v60 = vpop.f32.mrb[20].mxu0 }
 0x10d   :  { %v3373_v14 = vsel %vm5816_vm10, %v5359_v45, %v3372_v37  ;;  %v3374_v56 = vrot.slane %v3372_v37, 2  ;;  %8962 = vst [vmem:[#allocation9_spill] sm:$0xff] %v6067_v60  ;;  %v3693_v55 = vmax.f32 %v2876_v29, %v3369_v39  ;;  %v6069_v21 = vmax.f32 %v3692_v27, %v2876_v29  ;;  %v5463_v61 = vpop.f32.mrb[21].mxu0  ;;  %v6100_v45 = vpop.f32.mrb[20].mxu1 }
 0x10e   :  { %v1456_v3 = vmax.f32 %v1384_v32, %v6049_v16  ;;  %v3694_v28 = vmax.f32 %v2883_v0, %v3373_v14  ;;  %v427_v46 = vrot.slane %v413_v52, %v5805_v42  ;;  %v428_v2 = vcombine.high %v420_v49, %v420_v49  ;;  %8964 = vst [vmem:[#allocation10_spill] sm:$0xff] %v6100_v45  ;;  %v6153_v36 = vpop.f32.mrb[22].mxu0 }
 0x10f   :  { %v909_v31 = vrot.slane %v420_v49, 7  ;;  %v6073_v40 = vrot.slane %v2886_v25, %v5805_v42  ;;  %v6075_v33 = vmax.f32 %v3693_v55, %v2884_v54  ;;  %v8963_v54 = vmax.f32 %v5855_v38, %v5997_v12  ;;  %8969 = vst [vmem:[#allocation12_spill] sm:$0xff] %v6153_v36 }
 0x110   :  { %v1994_v23 = vmul.f32 %v1456_v3, %v1456_v3  ;;  %v6078_v32 = vmax.f32 %v3694_v28, %v6040_v8  ;;  %v6082_v0 = vcombine.high %v427_v46, %v427_v46  ;;  %v912_v27 = vrot.slane %v428_v2, 7 }
 0x111   :  { %v910_v29 = vsel %vm5816_vm10, %v908_v5, %v909_v31  ;;  %v911_v37 = vrot.slane %v909_v31, 2  ;;  %v915_v52 = vrot.slane %v427_v46, 7  ;;  %v2901_v61 = vcombine.high %v6057_v58, %v6057_v58 }
 0x112   :  { %v6092_v25 = vmax.f32 %v8963_v54, %v6078_v32  ;;  %v8925_v14 = vrot.slane %v6082_v0, 7  ;;  %v1229_v55 = vmax.f32 %v6022_v4, %v910_v29  ;;  %v914_v5 = vrot.slane %v912_v27, 2  ;;  %v5519_v29 = vpop.f32.mrb[21].mxu1 }
 0x113   :  { %v913_v28 = vsel %vm5816_vm10, %v911_v37, %v912_v27  ;;  %v917_v31 = vrot.slane %v915_v52, 2  ;;  %v6110_v4 = vcombine.high %v6073_v40, %v6073_v40  ;;  %v3375_v45 = vrot.slane %v6057_v58, 7 }
 0x114   :  { %v6104_v39 = vmul.f32 %v6092_v25, %v6092_v25  ;;  %v1230_v38 = vmax.f32 %v420_v49, %v913_v28  ;;  %v6106_v54 = vmax.f32 %v1229_v55, %v420_v49  ;;  %v916_v37 = vsel %vm5816_vm10, %v914_v5, %v915_v52 }
 0x115   :  { %v919_v27 = vsel %vm5816_vm10, %v917_v31, %v8925_v14  ;;  %v3378_v60 = vrot.slane %v2901_v61, 7  ;;  %v1231_v18 = vmax.f32 %v428_v2, %v916_v37  ;;  %v8965_v29 = vmax.f32 %v5861_v43, %v5964_v34 }
 0x116   :  { %v1232_v28 = vmax.f32 %v427_v46, %v919_v27  ;;  %v6119_v49 = vmax.f32 %v1230_v38, %v428_v2  ;;  %v3376_v5 = vsel %vm5816_vm10, %v3374_v56, %v3375_v45  ;;  %v3377_v10 = vrot.slane %v3375_v45, 2 }
 0x117   :  { %v1457_v52 = vmax.f32 %v8965_v29, %v6106_v54  ;;  %v3380_v31 = vrot.slane %v3378_v60, 2  ;;  %v6129_v14 = vmax.f32 %v1231_v18, %v427_v46  ;;  %v8967_v2 = vmax.f32 %v5864_v44, %v5974_v62 }
 0x118   :  { %v6132_v37 = vmax.f32 %v1232_v28, %v6082_v0  ;;  %v3381_v27 = vrot.slane %v6073_v40, 7  ;;  %v3379_v29 = vsel %vm5816_vm10, %v3377_v10, %v3378_v60  ;;  %v8968_v46 = vmax.f32 %v5900_v19, %v5983_v13 }
 0x119   :  { %v1458_v38 = vmax.f32 %v8967_v2, %v6119_v49  ;;  %v1601_v55 = vcombine.low %v1456_v3, %v1457_v52  ;;  %v1995_v43 = vmul.f32 %v1457_v52, %v1457_v52  ;;  %v3695_v10 = vmax.f32 %v6040_v8, %v3376_v5 }
 0x11a   :  { %8966 = vst [vmem:[#allocation11_spill] sm:$0xff] %v6132_v37  ;;  %v1459_v45 = vmax.f32 %v8968_v46, %v6129_v14  ;;  %v3382_v44 = vsel %vm5816_vm10, %v3380_v31, %v3381_v27  ;;  %v3383_v2 = vrot.slane %v3381_v27, 2  ;;  %v3696_v50 = vmax.f32 %v6057_v58, %v3379_v29 }
 0x11b   :  { %v1996_v28 = vmul.f32 %v1458_v38, %v1458_v38  ;;  %v1609_v3 = vrot.slane %v1601_v55, %v5805_v42  ;;  %v2138_v52 = vcombine.low %v1994_v23, %v1995_v43  ;;  %v3697_v18 = vmax.f32 %v2901_v61, %v3382_v44  ;;  %v5464_v55 = vpop.f32.mrb[23].mxu0 }
 0x11c   :  { %v1602_v60 = vcombine.low %v1458_v38, %v1459_v45  ;;  %v1997_v56 = vmul.f32 %v1459_v45, %v1459_v45  ;;  %v8970_v46 = vrot.slane %v6110_v4, 7  ;;  %v6163_v23 = vmax.f32 %v3695_v10, %v6057_v58 }
 0x11d   :  { %v6156_v19 = vrot.slane %v2138_v52, %v5805_v42  ;;  %v238_v8 = vadd.f32 %v5802_v41, %v5887_v9  ;;  %v6169_v43 = vmax.f32 %v3696_v50, %v2901_v61  ;;  %v6172_v29 = vmax.f32 %v3697_v18, %v6073_v40 }
 0x11e   :  { %v3385_v31 = vsel %vm5816_vm10, %v3383_v2, %v8970_v46  ;;  %v1616_v5 = vrot.slane %v1602_v60, %v5805_v42  ;;  %v2139_v38 = vcombine.low %v1996_v28, %v1997_v56  ;;  %v8971_v58 = vmax.f32 %v5866_v47, %v6002_v24 }
 0x11f   :  { %v3698_v27 = vmax.f32 %v6073_v40, %v3385_v31  ;;  %v430_v9 = vcombine.high %v238_v8, %v238_v8  ;;  %v8972_v40 = vmax.f32 %v5872_v51, %v6005_v30  ;;  %v437_v61 = vrot.slane %v238_v8, %v5805_v42 }
 0x120   :  { %v3923_v44 = vmax.f32 %v8971_v58, %v6163_v23  ;;  %v6181_v52 = vrot.slane %v2139_v38, %v5805_v42  ;;  %v8973_v47 = vmax.f32 %v5917_v35, %v6011_v11  ;;  %v8974_v51 = vrot.slane %v6082_v0, 7 }
 0x121   :  { %v6184_v56 = vmax.f32 %v3698_v27, %v6110_v4  ;;  %v3924_v50 = vmax.f32 %v8972_v40, %v6169_v43  ;;  %v444_v46 = vrot.slane %v430_v9, %v5805_v42  ;;  %v445_v31 = vcombine.high %v437_v61, %v437_v61 }
 0x122   :  { %v3925_v28 = vmax.f32 %v8973_v47, %v6172_v29  ;;  %v4067_v2 = vcombine.low %v6092_v25, %v3923_v44  ;;  %v4460_v10 = vmul.f32 %v3923_v44, %v3923_v44  ;;  %v920_v55 = vrot.slane %v8974_v51, 2  ;;  %v6220_v51 = vpop.f32.mrb[22].mxu1 }
 0x123   :  { %v4461_v60 = vmul.f32 %v3924_v50, %v3924_v50  ;;  %v6205_v40 = vcombine.high %v444_v46, %v444_v46  ;;  %v921_v35 = vrot.slane %v437_v61, 7  ;;  %v5280_v47 = vrot.slane %v445_v31, 9  ;;  %8975 = vst [vmem:[#allocation13_spill] sm:$0xff] %v6220_v51 }
 0x124   :  { %v4068_v38 = vcombine.low %v3924_v50, %v3925_v28  ;;  %v6202_v8 = vrot.slane %v4067_v2, %v5805_v42  ;;  %v4462_v27 = vmul.f32 %v3925_v28, %v3925_v28  ;;  %v4603_v58 = vcombine.low %v6104_v39, %v4460_v10 }
 0x125   :  { %v925_v25 = vrot.slane %v444_v46, 7  ;;  %v1389_v50 = vmax.f32 %v5910_v26, %v6044_v22  ;;  %v922_v28 = vsel %vm5816_vm10, %v920_v55, %v921_v35  ;;  %v8926_v10 = vrot.slane %v6205_v40, 7 }
 0x126   :  { %v6208_v44 = vrot.slane %v4068_v38, %v5805_v42  ;;  %v4604_v9 = vcombine.low %v4461_v60, %v4462_v27  ;;  %v6211_v18 = vrot.slane %v4603_v58, %v5805_v42  ;;  %v1233_v38 = vmax.f32 %v6082_v0, %v922_v28  ;;  %v5520_v58 = vpop.f32.mrb[23].mxu1 }
 0x127   :  { %v926_v39 = vsel %vm5816_vm10, %v5280_v47, %v925_v25  ;;  %v927_v2 = vrot.slane %v925_v25, 2  ;;  %v8976_v26 = vmax.f32 %v5907_v17, %v6038_v20  ;;  %v6234_v47 = vcombine.low %v1609_v3, %v1616_v5 }
 0x128   :  { %v6223_v60 = vrot.slane %v4604_v9, %v5805_v42  ;;  %v1234_v27 = vmax.f32 %v445_v31, %v926_v39  ;;  %v2154_v25 = vcombine.low %v6156_v19, %v6181_v52  ;;  %v2711_v0 = vadd.f32 %v5802_v41, %v5895_v15 }
 0x129   :  { %v1460_v55 = vmax.f32 %v8976_v26, %v6132_v37  ;;  %v929_v35 = vsel %vm5816_vm10, %v927_v2, %v8926_v10  ;;  %8977 = vst [vmem:[#allocation14_spill] sm:$0xff] %v6234_v47  ;;  %v6240_v9 = vmax.f32 %v1233_v38, %v437_v61  ;;  %v8978_v58 = vrot.slane %v6110_v4, 7 }
 0x12a   :  { %v1235_v31 = vmax.f32 %v444_v46, %v929_v35  ;;  %v6242_v28 = vmax.f32 %v1234_v27, %v444_v46  ;;  %v2903_v39 = vcombine.high %v2711_v0, %v2711_v0  ;;  %v2910_v26 = vrot.slane %v2711_v0, %v5805_v42 }
 0x12b   :  { %v1998_v17 = vmul.f32 %v1460_v55, %v1460_v55  ;;  %v3386_v2 = vrot.slane %v8978_v58, 2  ;;  %v3855_v3 = vmax.f32 %v5944_v57, %v6075_v33  ;;  %v1461_v5 = vmax.f32 %v1389_v50, %v6240_v9 }
 0x12c   :  { %v6250_v19 = vmax.f32 %v1235_v31, %v6205_v40  ;;  %v8979_v52 = vmax.f32 %v5955_v1, %v6049_v16  ;;  %v2917_v46 = vrot.slane %v2903_v39, %v5805_v42  ;;  %v2918_v38 = vcombine.high %v2910_v26, %v2910_v26 }
 0x12d   :  { %v3387_v27 = vrot.slane %v2910_v26, 7  ;;  %v8980_v57 = vmax.f32 %v5929_v53, %v6069_v21  ;;  %v8981_v0 = vmax.f32 %v5964_v34, %v6106_v54  ;;  %v1618_v50 = vcombine.low %v1460_v55, %v1461_v5 }
 0x12e   :  { %v1462_v61 = vmax.f32 %v8979_v52, %v6242_v28  ;;  %v1999_v58 = vmul.f32 %v1461_v5, %v1461_v5  ;;  %v6268_v45 = vcombine.high %v2917_v46, %v2917_v46  ;;  %v5360_v39 = vrot.slane %v2918_v38, 9 }
 0x12f   :  { %v3926_v35 = vmax.f32 %v8980_v57, %v6184_v56  ;;  %v1463_v31 = vmax.f32 %v8981_v0, %v6250_v19  ;;  %v3388_v1 = vsel %vm5816_vm10, %v3386_v2, %v3387_v27  ;;  %v3391_v52 = vrot.slane %v2917_v46, 7  ;;  %5291 = vst.sshfl [vmem:[%s8920_s5 + $0x8] sm:$0x33 pattern:$0x76325410] %v1618_v50 }
 0x130   :  { %v2000_v15 = vmul.f32 %v1462_v61, %v1462_v61  ;;  %v1625_v10 = vrot.slane %v1618_v50, %v5805_v42  ;;  %v2155_v34 = vcombine.low %v1998_v17, %v1999_v58  ;;  %v3394_v57 = vrot.slane %v6268_v45, 7 }
 0x131   :  { %v1626_v51 = vcombine.low %v1462_v61, %v1463_v31  ;;  %v2001_v53 = vmul.f32 %v1463_v31, %v1463_v31  ;;  %v3392_v55 = vsel %vm5816_vm10, %v5360_v39, %v3391_v52  ;;  %v3393_v5 = vrot.slane %v3391_v52, 2 }
 0x132   :  { %v3699_v0 = vmax.f32 %v6110_v4, %v3388_v1  ;;  %v1952_v27 = vsel %vm1951_vm11, %v1625_v10, 0.0  ;;  %v2162_v61 = vrot.slane %v2155_v34, %v5805_v42  ;;  %v3700_v31 = vmax.f32 %v2918_v38, %v3392_v55 }
 0x133   :  { %v6281_v2 = vrot.slane %v1626_v51, %v5805_v42  ;;  %v2163_v36 = vcombine.low %v2000_v15, %v2001_v53  ;;  %v6286_v50 = vadd.f32 %v1952_v27, %v6234_v47  ;;  %v3395_v17 = vsel %vm5816_vm10, %v3393_v5, %v3394_v57  ;;  %v6322_v5 = vpop.f32.mrb[24].mxu0 }
 0x134   :  { %v6292_v58 = vmax.f32 %v3699_v0, %v2910_v26  ;;  %v2462_v51 = vsel %vm1951_vm11, %v2162_v61, 0.0  ;;  %v3701_v10 = vmax.f32 %v2917_v46, %v3395_v17  ;;  %v6300_v15 = vcombine.low %v6202_v8, %v6208_v44  ;;  %8985 = vst [vmem:[#allocation16_spill] sm:$0xff] %v6322_v5 }
 0x135   :  { %v6295_v4 = vrot.slane %v2163_v36, %v5805_v42  ;;  %v6302_v1 = vadd.f32 %v2462_v51, %v2154_v25  ;;  %v6304_v39 = vmax.f32 %v3700_v31, %v2917_v46  ;;  %v4463_v36 = vmul.f32 %v3926_v35, %v3926_v35 }
 0x136   :  { %8982 = vst [vmem:[#allocation15_spill] sm:$0xff] %v6300_v15  ;;  %v3927_v26 = vmax.f32 %v3855_v3, %v6292_v58  ;;  %v6310_v38 = vmax.f32 %v3701_v10, %v6268_v45  ;;  %v4619_v53 = vcombine.low %v6211_v18, %v6223_v60  ;;  %v243_v8 = vadd.f32 %v5802_v41, %v5922_v7 }
 0x137   :  { %v8983_v44 = vmax.f32 %v5997_v12, %v6078_v32  ;;  %v8984_v55 = vrot.slane %v6205_v40, 7  ;;  %v8986_v0 = vmax.f32 %v6002_v24, %v6163_v23  ;;  %v1392_v27 = vmax.f32 %v5974_v62, %v6119_v49  ;;  %v5467_v12 = vpop.f32.mrb[25].mxu0 }
 0x138   :  { %v4084_v46 = vcombine.low %v3926_v35, %v3927_v26  ;;  %v4464_v34 = vmul.f32 %v3927_v26, %v3927_v26  ;;  %v447_v60 = vcombine.high %v243_v8, %v243_v8  ;;  %v454_v7 = vrot.slane %v243_v8, %v5805_v42 }
 0x139   :  { %v3928_v25 = vmax.f32 %v8983_v44, %v6304_v39  ;;  %v930_v3 = vrot.slane %v8984_v55, 2  ;;  %v3929_v18 = vmax.f32 %v8986_v0, %v6310_v38  ;;  %v1394_v31 = vmax.f32 %v6038_v20, %v6132_v37 }
 0x13a   :  { %v4091_v35 = vrot.slane %v4084_v46, %v5805_v42  ;;  %5395 = vst.sshfl [vmem:[%s8920_s5 + $0xc8] sm:$0x33 pattern:$0x76325410] %v4084_v46  ;;  %v4620_v17 = vcombine.low %v4463_v36, %v4464_v34  ;;  %v461_v10 = vrot.slane %v447_v60, %v5805_v42  ;;  %v462_v26 = vcombine.high %v454_v7, %v454_v7 }
 0x13b   :  { %v4465_v61 = vmul.f32 %v3928_v25, %v3928_v25  ;;  %v4092_v24 = vcombine.low %v3928_v25, %v3929_v18  ;;  %v4466_v51 = vmul.f32 %v3929_v18, %v3929_v18  ;;  %v931_v44 = vrot.slane %v454_v7, 7 }
 0x13c   :  { %v4417_v8 = vsel %vm1951_vm11, %v4091_v35, 0.0  ;;  %v4627_v62 = vrot.slane %v4620_v17, %v5805_v42  ;;  %v2716_v55 = vadd.f32 %v5802_v41, %v5927_v48  ;;  %v463_v25 = vcombine.high %v461_v10, %v461_v10  ;;  %v6356_v17 = vpop.f32.mrb[24].mxu1 }
 0x13d   :  { %v6343_v46 = vrot.slane %v4092_v24, %v5805_v42  ;;  %v6346_v36 = vadd.f32 %v4417_v8, %v6300_v15  ;;  %v4628_v20 = vcombine.low %v4465_v61, %v4466_v51  ;;  %v932_v0 = vsel %vm5816_vm10, %v930_v3, %v931_v44  ;;  %8987 = vst [vmem:[#allocation17_spill] sm:$0xff] %v6356_v17 }
 0x13e   :  { %v4927_v34 = vsel %vm1951_vm11, %v4627_v62, 0.0  ;;  %v933_v18 = vrot.slane %v931_v44, 2  ;;  %v934_v60 = vrot.slane %v462_v26, 7  ;;  %v937_v41 = vrot.slane %v461_v10, 7  ;;  %v5523_v62 = vpop.f32.mrb[25].mxu1 }
 0x13f   :  { %v6352_v12 = vrot.slane %v4628_v20, %v5805_v42  ;;  %v6354_v35 = vadd.f32 %v4927_v34, %v4619_v53  ;;  %v940_v48 = vrot.slane %v463_v25, 7  ;;  %v1236_v51 = vmax.f32 %v6205_v40, %v932_v0 }
 0x140   :  { %v935_v61 = vsel %vm5816_vm10, %v933_v18, %v934_v60  ;;  %v936_v24 = vrot.slane %v934_v60, 2  ;;  %v2920_v8 = vcombine.high %v2716_v55, %v2716_v55  ;;  %v939_v3 = vrot.slane %v937_v41, 2 }
 0x141   :  { %v1237_v44 = vmax.f32 %v454_v7, %v935_v61  ;;  %v2927_v52 = vrot.slane %v2716_v55, %v5805_v42  ;;  %v3396_v53 = vrot.slane %v3394_v57, 2  ;;  %v6366_v34 = vmax.f32 %v1236_v51, %v454_v7 }
 0x142   :  { %v938_v20 = vsel %vm5816_vm10, %v936_v24, %v937_v41  ;;  %v2934_v15 = vrot.slane %v2920_v8, %v5805_v42  ;;  %v3858_v18 = vmax.f32 %v6005_v30, %v6169_v43  ;;  %v941_v40 = vsel %vm5816_vm10, %v939_v3, %v940_v48 }
 0x143   :  { %v1238_v0 = vmax.f32 %v462_v26, %v938_v20  ;;  %v6373_v60 = vmax.f32 %v1237_v44, %v462_v26  ;;  %v2935_v55 = vcombine.high %v2927_v52, %v2927_v52  ;;  %v1239_v61 = vmax.f32 %v461_v10, %v941_v40 }
 0x144   :  { %v1464_v41 = vmax.f32 %v1392_v27, %v6366_v34  ;;  %v2936_v7 = vcombine.high %v2934_v15, %v2934_v15  ;;  %v8988_v30 = vmax.f32 %v5983_v13, %v6129_v14  ;;  %v3397_v8 = vrot.slane %v2927_v52, 7 }
 0x145   :  { %v6378_v24 = vmax.f32 %v1238_v0, %v461_v10  ;;  %v3400_v48 = vrot.slane %v2935_v55, 7  ;;  %v6384_v62 = vmax.f32 %v1239_v61, %v463_v25  ;;  %v3403_v3 = vrot.slane %v2934_v15, 7 }
 0x146   :  { %v1465_v51 = vmax.f32 %v8988_v30, %v6373_v60  ;;  %v2002_v26 = vmul.f32 %v1464_v41, %v1464_v41  ;;  %v3406_v44 = vrot.slane %v2936_v7, 7  ;;  %v8989_v0 = vmax.f32 %v6044_v22, %v6240_v9 }
 0x147   :  { %v1466_v27 = vmax.f32 %v1394_v31, %v6378_v24  ;;  %v3398_v30 = vsel %vm5816_vm10, %v3396_v53, %v3397_v8  ;;  %v3399_v25 = vrot.slane %v3397_v8, 2  ;;  %v3402_v61 = vrot.slane %v3400_v48, 2 }
 0x148   :  { %v1627_v40 = vcombine.low %v1464_v41, %v1465_v51  ;;  %v2003_v10 = vmul.f32 %v1465_v51, %v1465_v51  ;;  %v1467_v13 = vmax.f32 %v8989_v0, %v6384_v62  ;;  %v3405_v5 = vrot.slane %v3403_v3, 2 }
 0x149   :  { %v2004_v47 = vmul.f32 %v1466_v27, %v1466_v27  ;;  %v3401_v31 = vsel %vm5816_vm10, %v3399_v25, %v3400_v48  ;;  %v3404_v41 = vsel %vm5816_vm10, %v3402_v61, %v3403_v3  ;;  %v3702_v8 = vmax.f32 %v6268_v45, %v3398_v30 }
 0x14a   :  { %v1641_v57 = vrot.slane %v1627_v40, %v5805_v42  ;;  %v2164_v17 = vcombine.low %v2002_v26, %v2003_v10  ;;  %v1643_v20 = vcombine.low %v1466_v27, %v1467_v13  ;;  %v2005_v37 = vmul.f32 %v1467_v13, %v1467_v13  ;;  %v6407_v26 = vpop.f32.mrb[26].mxu0 }
 0x14b   :  { %v3407_v51 = vsel %vm5816_vm10, %v3405_v5, %v3406_v44  ;;  %v3703_v3 = vmax.f32 %v2927_v52, %v3401_v31  ;;  %v3704_v40 = vmax.f32 %v2935_v55, %v3404_v41  ;;  %v6416_v44 = vmax.f32 %v3702_v8, %v2927_v52  ;;  %v6451_v41 = vld [vmem:[%s8919_s2] ss:$0 sm:$0xff] }
 0x14c   :  { %v6401_v22 = vcombine.low %v6281_v2, %v1641_v57  ;;  %v2178_v53 = vrot.slane %v2164_v17, %v5805_v42  ;;  %v1650_v27 = vrot.slane %v1643_v20, %v5805_v42  ;;  %5292 = vst.sshfl [vmem:[%s8920_s5 + $0x18] sm:$0x33 pattern:$0x76325410] %v1643_v20  ;;  %v2180_v48 = vcombine.low %v2004_v47, %v2005_v37  ;;  %v5468_v2 = vpop.f32.mrb[27].mxu0 }
 0x14d   :  { %v3705_v5 = vmax.f32 %v2934_v15, %v3407_v51  ;;  %v6420_v0 = vmax.f32 %v3703_v3, %v2935_v55  ;;  %v6422_v13 = vmax.f32 %v3704_v40, %v2934_v15  ;;  %v3930_v15 = vmax.f32 %v3858_v18, %v6416_v44 }
 0x14e   :  { %8990 = vst [vmem:[#allocation18_spill] sm:$0xff] %v6401_v22  ;;  %v1954_v17 = vadd.f32 %v6286_v50, %v6401_v22  ;;  %v2179_v57 = vcombine.low %v6295_v4, %v2178_v53  ;;  %v1955_v45 = vsel %vm1951_vm11, %v1650_v27, 0.0  ;;  %v2187_v10 = vrot.slane %v2180_v48, %v5805_v42  ;;  %v6459_v48 = vpop.f32.mrb[26].mxu1 }
 0x14f   :  { %v6427_v20 = vmax.f32 %v3705_v5, %v2936_v7  ;;  %v3860_v50 = vmax.f32 %v6069_v21, %v6184_v56  ;;  %v8992_v21 = vmax.f32 %v6075_v33, %v6292_v58  ;;  %v4467_v31 = vmul.f32 %v3930_v15, %v3930_v15 }
 0x150   :  { %v6424_v37 = vadd.f32 %v1955_v45, %v1954_v17  ;;  %v2464_v47 = vadd.f32 %v6302_v1, %v2179_v57  ;;  %v2465_v4 = vsel %vm1951_vm11, %v2187_v10, 0.0  ;;  %v8991_v1 = vmax.f32 %v6011_v11, %v6172_v29 }
 0x151   :  { %v3932_v25 = vmax.f32 %v3860_v50, %v6422_v13  ;;  %v3933_v61 = vmax.f32 %v8992_v21, %v6427_v20  ;;  %v246_v18 = vadd.f32 %v6451_v41, %v5936_v59  ;;  %v1396_v11 = vmax.f32 %v6049_v16, %v6242_v28  ;;  %v5524_v59 = vpop.f32.mrb[27].mxu1 }
 0x152   :  { %v6437_v30 = vadd.f32 %v2465_v4, %v2464_v47  ;;  %v3931_v7 = vmax.f32 %v8991_v1, %v6420_v0  ;;  %v1397_v53 = vmax.f32 %v6106_v54, %v6250_v19  ;;  %v2719_v17 = vadd.f32 %v6451_v41, %v5942_v6 }
 0x153   :  { %v4109_v8 = vcombine.low %v3932_v25, %v3933_v61  ;;  %v4469_v33 = vmul.f32 %v3932_v25, %v3932_v25  ;;  %v4470_v3 = vmul.f32 %v3933_v61, %v3933_v61  ;;  %v464_v40 = vcombine.high %v246_v18, %v246_v18 }
 0x154   :  { %v4093_v51 = vcombine.low %v3930_v15, %v3931_v7  ;;  %v4468_v27 = vmul.f32 %v3931_v7, %v3931_v7  ;;  %v471_v2 = vrot.slane %v246_v18, %v5805_v42  ;;  %v3862_v5 = vmax.f32 %v6078_v32, %v6304_v39 }
 0x155   :  { %v4116_v16 = vrot.slane %v4109_v8, %v5805_v42  ;;  %5396 = vst.sshfl [vmem:[%s8920_s5 + $0xd8] sm:$0x33 pattern:$0x76325410] %v4109_v8  ;;  %v4645_v45 = vcombine.low %v4469_v33, %v4470_v3  ;;  %v478_v10 = vrot.slane %v464_v40, %v5805_v42  ;;  %v2937_v1 = vcombine.high %v2719_v17, %v2719_v17 }
 0x156   :  { %v4107_v57 = vrot.slane %v4093_v51, %v5805_v42  ;;  %v4629_v54 = vcombine.low %v4467_v31, %v4468_v27  ;;  %v479_v47 = vcombine.high %v471_v2, %v471_v2  ;;  %v5281_v50 = vrot.slane %v471_v2, 9 }
 0x157   :  { %v4420_v4 = vsel %vm1951_vm11, %v4116_v16, 0.0  ;;  %v4652_v7 = vrot.slane %v4645_v45, %v5805_v42  ;;  %v6478_v25 = vcombine.high %v478_v10, %v478_v10  ;;  %v947_v61 = vrot.slane %v478_v10, 7 }
 0x158   :  { %v6473_v6 = vcombine.low %v6343_v46, %v4107_v57  ;;  %v4643_v15 = vrot.slane %v4629_v54, %v5805_v42  ;;  %v944_v21 = vrot.slane %v479_v47, 7  ;;  %v2944_v51 = vrot.slane %v2719_v17, %v5805_v42 }
 0x159   :  { %v2951_v46 = vrot.slane %v2937_v1, %v5805_v42  ;;  %v4930_v8 = vsel %vm1951_vm11, %v4652_v7, 0.0  ;;  %v949_v3 = vrot.slane %v947_v61, 2  ;;  %v950_v57 = vrot.slane %v6478_v25, 7 }
 0x15a   :  { %8993 = vst [vmem:[#allocation19_spill] sm:$0xff] %v6473_v6  ;;  %v4419_v31 = vadd.f32 %v6346_v36, %v6473_v6  ;;  %v4644_v18 = vcombine.low %v6352_v12, %v4643_v15  ;;  %v945_v27 = vsel %vm5816_vm10, %v5281_v50, %v944_v21  ;;  %v946_v33 = vrot.slane %v944_v21, 2 }
 0x15b   :  { %v1240_v36 = vmax.f32 %v471_v2, %v945_v27  ;;  %v2952_v17 = vcombine.high %v2944_v51, %v2944_v51  ;;  %v6494_v16 = vcombine.high %v2951_v46, %v2951_v46  ;;  %v5361_v54 = vrot.slane %v2944_v51, 9 }
 0x15c   :  { %v6488_v40 = vadd.f32 %v4420_v4, %v4419_v31  ;;  %v4929_v59 = vadd.f32 %v6354_v35, %v4644_v18  ;;  %v948_v12 = vsel %vm5816_vm10, %v946_v33, %v947_v61  ;;  %v951_v50 = vsel %vm5816_vm10, %v949_v3, %v950_v57 }
 0x15d   :  { %v1241_v15 = vmax.f32 %v479_v47, %v948_v12  ;;  %v6500_v4 = vmax.f32 %v1240_v36, %v479_v47  ;;  %v1242_v1 = vmax.f32 %v478_v10, %v951_v50  ;;  %v3410_v35 = vrot.slane %v2952_v17, 7  ;;  %v8994_v12 = vld [vmem:[#allocation5_spill] sm:$0xff] }
 0x15e   :  { %v6496_v45 = vadd.f32 %v4930_v8, %v4929_v59  ;;  %v3413_v7 = vrot.slane %v2951_v46, 7  ;;  %v3416_v2 = vrot.slane %v6494_v16, 7  ;;  %v3863_v18 = vmax.f32 %v6163_v23, %v6310_v38 }
 0x15f   :  { %v6503_v21 = vmax.f32 %v1241_v15, %v478_v10  ;;  %v1468_v31 = vmax.f32 %v1396_v11, %v6500_v4  ;;  %v6511_v8 = vmax.f32 %v1242_v1, %v6478_v25  ;;  %v3411_v47 = vsel %vm5816_vm10, %v5361_v54, %v3410_v35 }
 0x160   :  { %v3412_v27 = vrot.slane %v3410_v35, 2  ;;  %v3415_v33 = vrot.slane %v3413_v7, 2  ;;  %v3706_v36 = vmax.f32 %v2944_v51, %v3411_v47  ;;  %v251_v50 = vadd.f32 %v6451_v41, %v8994_v12 }
 0x161   :  { %v1469_v3 = vmax.f32 %v1397_v53, %v6503_v21  ;;  %v2006_v59 = vmul.f32 %v1468_v31, %v1468_v31  ;;  %v952_v15 = vrot.slane %v950_v57, 2  ;;  %v1399_v51 = vmax.f32 %v6129_v14, %v6373_v60 }
 0x162   :  { %v3414_v11 = vsel %vm5816_vm10, %v3412_v27, %v3413_v7  ;;  %v3417_v23 = vsel %vm5816_vm10, %v3415_v33, %v3416_v2  ;;  %v6524_v55 = vmax.f32 %v3706_v36, %v2952_v17  ;;  %v481_v10 = vcombine.high %v251_v50, %v251_v50 }
 0x163   :  { %v1651_v54 = vcombine.low %v1468_v31, %v1469_v3  ;;  %v2007_v1 = vmul.f32 %v1469_v3, %v1469_v3  ;;  %v3707_v35 = vmax.f32 %v2952_v17, %v3414_v11  ;;  %v3708_v61 = vmax.f32 %v2951_v46, %v3417_v23 }
 0x164   :  { %v488_v53 = vrot.slane %v251_v50, %v5805_v42  ;;  %v3934_v17 = vmax.f32 %v3862_v5, %v6524_v55  ;;  %v495_v33 = vrot.slane %v481_v10, %v5805_v42 }
 0x165   :  { %v6530_v7 = vrot.slane %v1651_v54, %v5805_v42  ;;  %v2188_v47 = vcombine.low %v2006_v59, %v2007_v1  ;;  %v6532_v27 = vmax.f32 %v3707_v35, %v2951_v46  ;;  %v6535_v57 = vmax.f32 %v3708_v61, %v6494_v16  ;;  %v6578_v1 = vpop.f32.mrb[28].mxu1 }
 0x166   :  { %v496_v14 = vcombine.high %v488_v53, %v488_v53  ;;  %v953_v59 = vrot.slane %v488_v53, 7  ;;  %v4471_v36 = vmul.f32 %v3934_v17, %v3934_v17  ;;  %v6550_v11 = vcombine.high %v495_v33, %v495_v33  ;;  %8997 = vst [vmem:[#allocation5_spill] sm:$0xff] %v6578_v1 }
 0x167   :  { %v6545_v3 = vrot.slane %v2188_v47, %v5805_v42  ;;  %v3935_v61 = vmax.f32 %v3863_v18, %v6532_v27  ;;  %v959_v12 = vrot.slane %v495_v33, 7  ;;  %v1401_v18 = vmax.f32 %v6240_v9, %v6384_v62 }
 0x168   :  { %v956_v23 = vrot.slane %v496_v14, 7  ;;  %v954_v5 = vsel %vm5816_vm10, %v952_v15, %v953_v59  ;;  %v955_v10 = vrot.slane %v953_v59, 2  ;;  %v8995_v15 = vmax.f32 %v6119_v49, %v6366_v34 }
 0x169   :  { %v4117_v50 = vcombine.low %v3934_v17, %v3935_v61  ;;  %v4472_v32 = vmul.f32 %v3935_v61, %v3935_v61  ;;  %v1243_v35 = vmax.f32 %v6478_v25, %v954_v5  ;;  %v8996_v5 = vld [vmem:[#allocation6_spill] sm:$0xff] }
 0x16a   :  { %v958_v54 = vrot.slane %v956_v23, 2  ;;  %v957_v17 = vsel %vm5816_vm10, %v955_v10, %v956_v23  ;;  %v1470_v61 = vmax.f32 %v8995_v15, %v6511_v8  ;;  %v2724_v9 = vadd.f32 %v6451_v41, %v8996_v5 }
 0x16b   :  { %v6559_v47 = vrot.slane %v4117_v50, %v5805_v42  ;;  %v4653_v46 = vcombine.low %v4471_v36, %v4472_v32  ;;  %v1244_v31 = vmax.f32 %v488_v53, %v957_v17  ;;  %v6569_v25 = vmax.f32 %v1243_v35, %v488_v53  ;;  %v6573_v50 = vpop.f32.mrb[28].mxu0  ;;  %v5527_v35 = vpop.f32.mrb[29].mxu1 }
 0x16c   :  { %v960_v59 = vsel %vm5816_vm10, %v958_v54, %v959_v12  ;;  %v2008_v32 = vmul.f32 %v1470_v61, %v1470_v61  ;;  %v3418_v10 = vrot.slane %v3416_v2, 2  ;;  %v5471_v49 = vpop.f32.mrb[29].mxu0  ;;  %v2954_v54 = vcombine.high %v2724_v9, %v2724_v9 }
 0x16d   :  { %v6576_v36 = vrot.slane %v4653_v46, %v5805_v42  ;;  %v1245_v23 = vmax.f32 %v496_v14, %v960_v59  ;;  %v6580_v15 = vmax.f32 %v1244_v31, %v496_v14  ;;  %v1471_v12 = vmax.f32 %v1399_v51, %v6569_v25  ;;  %v8998_v31 = vld [vmem:[#allocation11_spill] sm:$0xff] }
 0x16e   :  { %v2961_v46 = vrot.slane %v2724_v9, %v5805_v42  ;;  %v3865_v59 = vmax.f32 %v6172_v29, %v6420_v0  ;;  %v3867_v2 = vmax.f32 %v6292_v58, %v6427_v20  ;;  %v8999_v14 = vmax.f32 %v8998_v31, %v6378_v24 }
 0x16f   :  { %v6585_v17 = vmax.f32 %v1245_v23, %v495_v33  ;;  %v1652_v49 = vcombine.low %v1470_v61, %v1471_v12  ;;  %v2009_v53 = vmul.f32 %v1471_v12, %v1471_v12  ;;  %v2968_v51 = vrot.slane %v2954_v54, %v5805_v42 }
 0x170   :  { %v1472_v5 = vmax.f32 %v8999_v14, %v6580_v15  ;;  %v2969_v23 = vcombine.high %v2961_v46, %v2961_v46  ;;  %v3419_v35 = vrot.slane %v2961_v46, 7 }
 0x171   :  { %v1473_v9 = vmax.f32 %v1401_v18, %v6585_v17  ;;  %v1666_v29 = vrot.slane %v1652_v49, %v5805_v42  ;;  %v2189_v58 = vcombine.low %v2008_v32, %v2009_v53  ;;  %v6601_v6 = vcombine.high %v2968_v51, %v2968_v51 }
 0x172   :  { %v2010_v52 = vmul.f32 %v1472_v5, %v1472_v5  ;;  %v3420_v61 = vsel %vm5816_vm10, %v3418_v10, %v3419_v35  ;;  %v3421_v12 = vrot.slane %v3419_v35, 2  ;;  %v3422_v18 = vrot.slane %v2969_v23, 7 }
 0x173   :  { %v1668_v22 = vcombine.low %v1472_v5, %v1473_v9  ;;  %v2011_v31 = vmul.f32 %v1473_v9, %v1473_v9  ;;  %v6606_v54 = vcombine.low %v6530_v7, %v1666_v29  ;;  %v2203_v14 = vrot.slane %v2189_v58, %v5805_v42 }
 0x174   :  { %v3425_v33 = vrot.slane %v2968_v51, 7  ;;  %v3709_v5 = vmax.f32 %v6494_v16, %v3420_v61  ;;  %v3423_v49 = vsel %vm5816_vm10, %v3421_v12, %v3422_v18  ;;  %v3424_v9 = vrot.slane %v3422_v18, 2 }
 0x175   :  { %9000 = vst [vmem:[#allocation6_spill] sm:$0xff] %v6606_v54  ;;  %v1675_v1 = vrot.slane %v1668_v22, %v5805_v42  ;;  %5293 = vst.sshfl [vmem:[%s8920_s5 + $0x28] sm:$0x33 pattern:$0x76325410] %v1668_v22  ;;  %v2205_v32 = vcombine.low %v2010_v52, %v2011_v31  ;;  %v1957_v10 = vadd.f32 %v6424_v37, %v6606_v54 }
 0x176   :  { %v2204_v7 = vcombine.low %v6545_v3, %v2203_v14  ;;  %v3710_v58 = vmax.f32 %v2961_v46, %v3423_v49  ;;  %v6622_v22 = vmax.f32 %v3709_v5, %v2961_v46  ;;  %v3426_v37 = vsel %vm5816_vm10, %v3424_v9, %v3425_v33  ;;  %v6638_v14 = vpop.f32.mrb[30].mxu0  ;;  %v9005_v9 = vld [vmem:[#allocation8_spill] sm:$0xff] }
 0x177   :  { %v1958_v35 = vsel %vm1951_vm11, %v1675_v1, 0.0  ;;  %v2212_v29 = vrot.slane %v2205_v32, %v5805_v42  ;;  %v9001_v3 = vmax.f32 %v6169_v43, %v6416_v44  ;;  %v3711_v1 = vmax.f32 %v2969_v23, %v3426_v37  ;;  %9002 = vst [vmem:[#allocation11_spill] sm:$0xff] %v6638_v14  ;;  %v9003_v32 = vld [vmem:[#allocation7_spill] sm:$0xff]  ;;  %v5472_v43 = vpop.f32.mrb[31].mxu0 }
 0x178   :  { %v6624_v52 = vadd.f32 %v1958_v35, %v1957_v10  ;;  %v2467_v16 = vadd.f32 %v6437_v30, %v2204_v7  ;;  %v6634_v12 = vmax.f32 %v3710_v58, %v2969_v23  ;;  %v3937_v30 = vmax.f32 %v3865_v59, %v6622_v22 }
 0x179   :  { %v3936_v31 = vmax.f32 %v9001_v3, %v6535_v57  ;;  %v2468_v61 = vsel %vm1951_vm11, %v2212_v29, 0.0  ;;  %v254_v5 = vadd.f32 %v6451_v41, %v9003_v32  ;;  %v6645_v10 = vmax.f32 %v3711_v1, %v2968_v51 }
 0x17a   :  { %v6640_v18 = vadd.f32 %v2468_v61, %v2467_v16  ;;  %v9004_v23 = vmax.f32 %v6184_v56, %v6422_v13  ;;  %v1404_v49 = vmax.f32 %v6366_v34, %v6511_v8  ;;  %v2727_v35 = vadd.f32 %v6451_v41, %v9005_v9 }
 0x17b   :  { %v4473_v33 = vmul.f32 %v3936_v31, %v3936_v31  ;;  %v4118_v29 = vcombine.low %v3936_v31, %v3937_v30  ;;  %v4474_v59 = vmul.f32 %v3937_v30, %v3937_v30  ;;  %v498_v58 = vcombine.high %v254_v5, %v254_v5 }
 0x17c   :  { %v3938_v7 = vmax.f32 %v9004_v23, %v6634_v12  ;;  %v505_v16 = vrot.slane %v254_v5, %v5805_v42  ;;  %v3939_v37 = vmax.f32 %v3867_v2, %v6645_v10  ;;  %v2971_v61 = vcombine.high %v2727_v35, %v2727_v35  ;;  %v6664_v5 = vpop.f32.mrb[30].mxu1 }
 0x17d   :  { %v4132_v56 = vrot.slane %v4118_v29, %v5805_v42  ;;  %v4654_v1 = vcombine.low %v4473_v33, %v4474_v59  ;;  %v512_v34 = vrot.slane %v498_v58, %v5805_v42  ;;  %v6662_v30 = vrot.slane %v2727_v35, %v5805_v42  ;;  %9006 = vst [vmem:[#allocation7_spill] sm:$0xff] %v6664_v5  ;;  %v5528_v33 = vpop.f32.mrb[31].mxu1 }
 0x17e   :  { %v4475_v3 = vmul.f32 %v3938_v7, %v3938_v7  ;;  %v513_v32 = vcombine.high %v505_v16, %v505_v16  ;;  %v4134_v43 = vcombine.low %v3938_v7, %v3939_v37  ;;  %v4476_v23 = vmul.f32 %v3939_v37, %v3939_v37 }
 0x17f   :  { %v963_v31 = vrot.slane %v505_v16, 7  ;;  %v6667_v9 = vcombine.low %v6559_v47, %v4132_v56  ;;  %v4668_v2 = vrot.slane %v4654_v1, %v5805_v42  ;;  %v6670_v51 = vcombine.high %v512_v34, %v512_v34 }
 0x180   :  { %v966_v29 = vrot.slane %v513_v32, 7  ;;  %v4141_v59 = vrot.slane %v4134_v43, %v5805_v42  ;;  %5397 = vst.sshfl [vmem:[%s8920_s5 + $0xe8] sm:$0x33 pattern:$0x76325410] %v4134_v43  ;;  %v4670_v7 = vcombine.low %v4475_v3, %v4476_v23  ;;  %v9008_v35 = vrot.slane %v6550_v11, 9 }
 0x181   :  { %9007 = vst [vmem:[#allocation8_spill] sm:$0xff] %v6667_v9  ;;  %v965_v47 = vrot.slane %v963_v31, 2  ;;  %v4422_v37 = vadd.f32 %v6488_v40, %v6667_v9  ;;  %v4669_v56 = vcombine.low %v6576_v36, %v4668_v2  ;;  %v969_v33 = vrot.slane %v512_v34, 7 }
 0x182   :  { %v964_v58 = vsel %vm5816_vm10, %v9008_v35, %v963_v31  ;;  %v968_v1 = vrot.slane %v966_v29, 2  ;;  %v4423_v46 = vsel %vm1951_vm11, %v4141_v59, 0.0  ;;  %v4677_v53 = vrot.slane %v4670_v7, %v5805_v42 }
 0x183   :  { %v967_v3 = vsel %vm5816_vm10, %v965_v47, %v966_v29  ;;  %v8933_v43 = vrot.slane %v6670_v51, 7  ;;  %v6688_v23 = vadd.f32 %v4423_v46, %v4422_v37  ;;  %v4932_v31 = vadd.f32 %v6496_v45, %v4669_v56 }
 0x184   :  { %v970_v40 = vsel %vm5816_vm10, %v968_v1, %v969_v33  ;;  %v971_v35 = vrot.slane %v969_v33, 2  ;;  %v4933_v36 = vsel %vm1951_vm11, %v4677_v53, 0.0  ;;  %v1246_v2 = vmax.f32 %v6550_v11, %v964_v58 }
 0x185   :  { %v1247_v59 = vmax.f32 %v505_v16, %v967_v3  ;;  %v1248_v9 = vmax.f32 %v513_v32, %v970_v40  ;;  %v6695_v7 = vadd.f32 %v4933_v36, %v4932_v31  ;;  %v2985_v29 = vrot.slane %v2971_v61, %v5805_v42 }
 0x186   :  { %v973_v46 = vsel %vm5816_vm10, %v971_v35, %v8933_v43  ;;  %v2986_v45 = vcombine.high %v6662_v30, %v6662_v30  ;;  %v6704_v37 = vmax.f32 %v1246_v2, %v505_v16  ;;  %v3429_v56 = vrot.slane %v6662_v30, 7 }
 0x187   :  { %v1249_v47 = vmax.f32 %v512_v34, %v973_v46  ;;  %v6706_v53 = vmax.f32 %v1247_v59, %v513_v32  ;;  %v6708_v11 = vmax.f32 %v1248_v9, %v512_v34  ;;  %v6710_v58 = vcombine.high %v2985_v29, %v2985_v29 }
 0x188   :  { %v3432_v1 = vrot.slane %v2986_v45, 7  ;;  %v3435_v33 = vrot.slane %v2985_v29, 7  ;;  %v9009_v34 = vmax.f32 %v6242_v28, %v6500_v4  ;;  %v9010_v9 = vmax.f32 %v6250_v19, %v6503_v21 }
 0x189   :  { %v6714_v3 = vmax.f32 %v1249_v47, %v6670_v51  ;;  %v1476_v40 = vmax.f32 %v1404_v49, %v6708_v11  ;;  %v9011_v35 = vrot.slane %v6601_v6, 9  ;;  %v3431_v2 = vrot.slane %v3429_v56, 2 }
 0x18a   :  { %v1474_v32 = vmax.f32 %v9009_v34, %v6704_v37  ;;  %v1475_v31 = vmax.f32 %v9010_v9, %v6706_v53  ;;  %v9012_v59 = vmax.f32 %v6373_v60, %v6569_v25  ;;  %v3434_v47 = vrot.slane %v3432_v1, 2 }
 0x18b   :  { %v3430_v36 = vsel %vm5816_vm10, %v9011_v35, %v3429_v56  ;;  %v3437_v34 = vrot.slane %v3435_v33, 2  ;;  %v2014_v19 = vmul.f32 %v1476_v40, %v1476_v40  ;;  %v3433_v49 = vsel %vm5816_vm10, %v3431_v2, %v3432_v1 }
 0x18c   :  { %v1477_v46 = vmax.f32 %v9012_v59, %v6714_v3  ;;  %v2012_v28 = vmul.f32 %v1474_v32, %v1474_v32  ;;  %v1676_v16 = vcombine.low %v1474_v32, %v1475_v31  ;;  %v2013_v61 = vmul.f32 %v1475_v31, %v1475_v31 }
 0x18d   :  { %v3436_v35 = vsel %vm5816_vm10, %v3434_v47, %v3435_v33  ;;  %v3438_v56 = vrot.slane %v6710_v58, 7  ;;  %v3712_v59 = vmax.f32 %v6601_v6, %v3430_v36  ;;  %v3713_v5 = vmax.f32 %v6662_v30, %v3433_v49  ;;  %v6781_v49 = vpop.f32.mrb[32].mxu0 }
 0x18e   :  { %v1677_v9 = vcombine.low %v1476_v40, %v1477_v46  ;;  %v2015_v43 = vmul.f32 %v1477_v46, %v1477_v46  ;;  %v1684_v54 = vrot.slane %v1676_v16, %v5805_v42  ;;  %v2213_v60 = vcombine.low %v2012_v28, %v2013_v61  ;;  %9016 = vst [vmem:[#allocation21_spill] sm:$0xff] %v6781_v49 }
 0x18f   :  { %v3439_v1 = vsel %vm5816_vm10, %v3437_v34, %v3438_v56  ;;  %v3714_v40 = vmax.f32 %v2986_v45, %v3436_v35  ;;  %v6750_v33 = vmax.f32 %v3712_v59, %v6662_v30  ;;  %v6752_v47 = vmax.f32 %v3713_v5, %v2986_v45  ;;  %v5475_v59 = vpop.f32.mrb[33].mxu0 }
 0x190   :  { %v1691_v32 = vrot.slane %v1677_v9, %v5805_v42  ;;  %v2214_v31 = vcombine.low %v2014_v19, %v2015_v43  ;;  %v2221_v2 = vrot.slane %v2213_v60, %v5805_v42  ;;  %v3715_v46 = vmax.f32 %v2985_v29, %v3439_v1 }
 0x191   :  { %v6757_v16 = vmax.f32 %v3714_v40, %v2985_v29  ;;  %v3870_v43 = vmax.f32 %v6416_v44, %v6535_v57  ;;  %v9014_v30 = vmax.f32 %v6304_v39, %v6524_v55  ;;  %v9017_v39 = vmax.f32 %v6420_v0, %v6622_v22 }
 0x192   :  { %v6754_v61 = vcombine.low %v1684_v54, %v1691_v32  ;;  %v2228_v6 = vrot.slane %v2214_v31, %v5805_v42  ;;  %v6762_v36 = vmax.f32 %v3715_v46, %v6710_v58  ;;  %v9015_v54 = vmax.f32 %v6310_v38, %v6532_v27  ;;  %v9018_v31 = vld [vmem:[#allocation9_spill] sm:$0xff] }
 0x193   :  { %v3940_v5 = vmax.f32 %v9014_v30, %v6750_v33  ;;  %v3942_v19 = vmax.f32 %v3870_v43, %v6757_v16  ;;  %v259_v1 = vadd.f32 %v6451_v41, %v9018_v31  ;;  %v9019_v40 = vrot.slane %v6670_v51, 7 }
 0x194   :  { %9013 = vst [vmem:[#allocation20_spill] sm:$0xff] %v6754_v61  ;;  %v3941_v29 = vmax.f32 %v9015_v54, %v6752_v47  ;;  %v6776_v45 = vadd.f32 %v6624_v52, %v6754_v61  ;;  %v2229_v44 = vcombine.low %v2221_v2, %v2228_v6  ;;  %v3943_v9 = vmax.f32 %v9017_v39, %v6762_v36 }
 0x195   :  { %v4477_v38 = vmul.f32 %v3940_v5, %v3940_v5  ;;  %v4479_v32 = vmul.f32 %v3942_v19, %v3942_v19  ;;  %v974_v2 = vrot.slane %v9019_v40, 2  ;;  %v515_v30 = vcombine.high %v259_v1, %v259_v1 }
 0x196   :  { %v4142_v35 = vcombine.low %v3940_v5, %v3941_v29  ;;  %v4478_v60 = vmul.f32 %v3941_v29, %v3941_v29  ;;  %v6788_v52 = vadd.f32 %v6640_v18, %v2229_v44  ;;  %v4143_v46 = vcombine.low %v3942_v19, %v3943_v9  ;;  %v9020_v18 = vld [vmem:[#allocation10_spill] sm:$0xff] }
 0x197   :  { %v4480_v43 = vmul.f32 %v3943_v9, %v3943_v9  ;;  %v522_v5 = vrot.slane %v259_v1, %v5805_v42  ;;  %v1406_v54 = vmax.f32 %v6378_v24, %v6580_v15  ;;  %v2732_v29 = vadd.f32 %v6451_v41, %v9020_v18 }
 0x198   :  { %v4150_v6 = vrot.slane %v4142_v35, %v5805_v42  ;;  %v4678_v0 = vcombine.low %v4477_v38, %v4478_v60  ;;  %v4157_v44 = vrot.slane %v4143_v46, %v5805_v42  ;;  %v3440_v31 = vrot.slane %v3438_v56, 2  ;;  %v6803_v60 = vpop.f32.mrb[32].mxu1 }
 0x199   :  { %v4679_v39 = vcombine.low %v4479_v32, %v4480_v43  ;;  %v529_v19 = vrot.slane %v515_v30, %v5805_v42  ;;  %v530_v35 = vcombine.high %v522_v5, %v522_v5  ;;  %v975_v9 = vrot.slane %v522_v5, 7  ;;  %9021 = vst [vmem:[#allocation9_spill] sm:$0xff] %v6803_v60  ;;  %v5531_v32 = vpop.f32.mrb[33].mxu1 }
 0x19a   :  { %v4686_v59 = vrot.slane %v4678_v0, %v5805_v42  ;;  %v2988_v38 = vcombine.high %v2732_v29, %v2732_v29  ;;  %v6805_v1 = vcombine.low %v4150_v6, %v4157_v44  ;;  %v2995_v40 = vrot.slane %v2732_v29, %v5805_v42 }
 0x19b   :  { %v4693_v24 = vrot.slane %v4679_v39, %v5805_v42  ;;  %v3872_v46 = vmax.f32 %v6422_v13, %v6634_v12  ;;  %v6811_v43 = vcombine.high %v529_v19, %v529_v19  ;;  %v976_v56 = vsel %vm5816_vm10, %v974_v2, %v975_v9 }
 0x19c   :  { %9022 = vst [vmem:[#allocation10_spill] sm:$0xff] %v6805_v1  ;;  %v977_v0 = vrot.slane %v975_v9, 2  ;;  %v978_v30 = vrot.slane %v530_v35, 7  ;;  %v6817_v18 = vadd.f32 %v6688_v23, %v6805_v1  ;;  %v5283_v44 = vrot.slane %v529_v19, 9 }
 0x19d   :  { %v4694_v6 = vcombine.low %v4686_v59, %v4693_v24  ;;  %v1250_v39 = vmax.f32 %v6670_v51, %v976_v56  ;;  %v982_v13 = vrot.slane %v6811_v43, 7  ;;  %v3002_v32 = vrot.slane %v2988_v38, %v5805_v42 }
 0x19e   :  { %v979_v29 = vsel %vm5816_vm10, %v977_v0, %v978_v30  ;;  %v3003_v34 = vcombine.high %v2995_v40, %v2995_v40  ;;  %v3441_v23 = vrot.slane %v2995_v40, 7 }
 0x19f   :  { %v6825_v2 = vadd.f32 %v6695_v7, %v4694_v6  ;;  %v1251_v9 = vmax.f32 %v522_v5, %v979_v29  ;;  %v6827_v28 = vmax.f32 %v1250_v39, %v522_v5  ;;  %v983_v59 = vsel %vm5816_vm10, %v5283_v44, %v982_v13 }
 0x1a0   :  { %v984_v24 = vrot.slane %v982_v13, 2  ;;  %v6831_v51 = vcombine.high %v3002_v32, %v3002_v32  ;;  %v3444_v56 = vrot.slane %v3003_v34, 7  ;;  %v1252_v0 = vmax.f32 %v529_v19, %v983_v59  ;;  %v9024_v59 = vld [vmem:[#allocation12_spill] sm:$0xff] }
 0x1a1   :  { %v6833_v30 = vmax.f32 %v1251_v9, %v530_v35  ;;  %v1478_v7 = vmax.f32 %v1406_v54, %v6827_v28  ;;  %v3442_v5 = vsel %vm5816_vm10, %v3440_v31, %v3441_v23  ;;  %v3443_v6 = vrot.slane %v3441_v23, 2 }
 0x1a2   :  { %v5363_v39 = vrot.slane %v3002_v32, 9  ;;  %v3448_v29 = vrot.slane %v6831_v51, 7  ;;  %v6842_v44 = vmax.f32 %v1252_v0, %v6811_v43  ;;  %v9023_v19 = vmax.f32 %v6384_v62, %v6585_v17 }
 0x1a3   :  { %v2016_v13 = vmul.f32 %v1478_v7, %v1478_v7  ;;  %v3716_v9 = vmax.f32 %v6710_v58, %v3442_v5  ;;  %v3445_v54 = vsel %vm5816_vm10, %v3443_v6, %v3444_v56  ;;  %v262_v0 = vadd.f32 %v6451_v41, %v9024_v59 }
 0x1a4   :  { %v1479_v35 = vmax.f32 %v9023_v19, %v6833_v30  ;;  %v3449_v31 = vsel %vm5816_vm10, %v5363_v39, %v3448_v29  ;;  %v6853_v23 = vrot.slane %v3448_v29, 2  ;;  %v9025_v62 = vmax.f32 %v6500_v4, %v6704_v37  ;;  %v6867_v29 = vpop.f32.mrb[34].mxu0 }
 0x1a5   :  { %v3717_v56 = vmax.f32 %v2995_v40, %v3445_v54  ;;  %v3718_v6 = vmax.f32 %v3002_v32, %v3449_v31  ;;  %v6865_v1 = vmax.f32 %v3716_v9, %v2995_v40  ;;  %v532_v39 = vcombine.high %v262_v0, %v262_v0  ;;  %9026 = vst [vmem:[#allocation12_spill] sm:$0xff] %v6867_v29 }
 0x1a6   :  { %v6863_v19 = vmax.f32 %v9025_v62, %v6842_v44  ;;  %v1693_v58 = vcombine.low %v1478_v7, %v1479_v35  ;;  %v2017_v5 = vmul.f32 %v1479_v35, %v1479_v35  ;;  %v539_v7 = vrot.slane %v262_v0, %v5805_v42  ;;  %v5476_v35 = vpop.f32.mrb[35].mxu0 }
 0x1a7   :  { %v6878_v32 = vmax.f32 %v3717_v56, %v3003_v34  ;;  %v6881_v40 = vmax.f32 %v3718_v6, %v6831_v51  ;;  %v3944_v54 = vmax.f32 %v3872_v46, %v6865_v1  ;;  %v546_v38 = vrot.slane %v532_v39, %v5805_v42 }
 0x1a8   :  { %v1700_v59 = vrot.slane %v1693_v58, %v5805_v42  ;;  %5294 = vst.sshfl [vmem:[%s8920_s5 + $0x38] sm:$0x33 pattern:$0x76325410] %v1693_v58  ;;  %v6875_v4 = vmul.f32 %v6863_v19, %v6863_v19  ;;  %v2230_v62 = vcombine.low %v2016_v13, %v2017_v5  ;;  %v547_v13 = vcombine.high %v539_v7, %v539_v7 }
 0x1a9   :  { %v9027_v5 = vmax.f32 %v6427_v20, %v6645_v10  ;;  %v9028_v46 = vmax.f32 %v6524_v55, %v6750_v33  ;;  %v991_v9 = vrot.slane %v546_v38, 7 }
 0x1aa   :  { %v1961_v31 = vsel %vm1951_vm11, %v1700_v59, 0.0  ;;  %v2237_v58 = vrot.slane %v2230_v62, %v5805_v42  ;;  %v4481_v59 = vmul.f32 %v3944_v54, %v3944_v54  ;;  %v6905_v62 = vcombine.high %v546_v38, %v546_v38 }
 0x1ab   :  { %v6890_v0 = vadd.f32 %v1961_v31, %v6776_v45  ;;  %v3945_v56 = vmax.f32 %v9027_v5, %v6878_v32  ;;  %v6902_v6 = vmax.f32 %v9028_v46, %v6881_v40  ;;  %v985_v45 = vrot.slane %v539_v7, 7 }
 0x1ac   :  { %v2471_v39 = vsel %vm1951_vm11, %v2237_v58, 0.0  ;;  %v988_v46 = vrot.slane %v547_v13, 7  ;;  %v993_v29 = vrot.slane %v991_v9, 2 }
 0x1ad   :  { %v6908_v35 = vadd.f32 %v2471_v39, %v6788_v52  ;;  %v4159_v31 = vcombine.low %v3944_v54, %v3945_v56  ;;  %v4482_v34 = vmul.f32 %v3945_v56, %v3945_v56  ;;  %v6912_v20 = vmul.f32 %v6902_v6, %v6902_v6 }
 0x1ae   :  { %v986_v55 = vsel %vm5816_vm10, %v984_v24, %v985_v45  ;;  %v987_v5 = vrot.slane %v985_v45, 2  ;;  %v8937_v54 = vrot.slane %v6905_v62, 7  ;;  %v990_v61 = vrot.slane %v988_v46, 2 }
 0x1af   :  { %v4166_v58 = vrot.slane %v4159_v31, %v5805_v42  ;;  %5398 = vst.sshfl [vmem:[%s8920_s5 + $0xf8] sm:$0x33 pattern:$0x76325410] %v4159_v31  ;;  %v4695_v52 = vcombine.low %v4481_v59, %v4482_v34  ;;  %v1253_v56 = vmax.f32 %v6811_v43, %v986_v55  ;;  %v1409_v24 = vmax.f32 %v6503_v21, %v6706_v53  ;;  %v6941_v31 = vpop.f32.mrb[34].mxu1 }
 0x1b0   :  { %v989_v39 = vsel %vm5816_vm10, %v987_v5, %v988_v46  ;;  %v992_v43 = vsel %vm5816_vm10, %v990_v61, %v991_v9  ;;  %v995_v59 = vsel %vm5816_vm10, %v993_v29, %v8937_v54  ;;  %v1411_v21 = vmax.f32 %v6569_v25, %v6714_v3  ;;  %9029 = vst [vmem:[#allocation22_spill] sm:$0xff] %v6941_v31  ;;  %v9030_v9 = vld [vmem:[#allocation13_spill] sm:$0xff] }
 0x1b1   :  { %v4426_v45 = vsel %vm1951_vm11, %v4166_v58, 0.0  ;;  %v4702_v60 = vrot.slane %v4695_v52, %v5805_v42  ;;  %v1254_v49 = vmax.f32 %v539_v7, %v989_v39  ;;  %v6928_v14 = vmax.f32 %v1253_v56, %v539_v7 }
 0x1b2   :  { %v6931_v34 = vadd.f32 %v4426_v45, %v6817_v18  ;;  %v1255_v7 = vmax.f32 %v547_v13, %v992_v43  ;;  %v1256_v5 = vmax.f32 %v546_v38, %v995_v59  ;;  %v5532_v18 = vpop.f32.mrb[35].mxu1  ;;  %v2735_v25 = vadd.f32 %v6451_v41, %v9030_v9  ;;  %v9032_v9 = vld [vmem:[#allocation16_spill] sm:$0xff] }
 0x1b3   :  { %v4936_v55 = vsel %vm1951_vm11, %v4702_v60, 0.0  ;;  %v6944_v46 = vmax.f32 %v1254_v49, %v547_v13  ;;  %v1481_v29 = vmax.f32 %v1409_v24, %v6928_v14  ;;  %v9031_v49 = vmax.f32 %v6511_v8, %v6708_v11 }
 0x1b4   :  { %v6947_v58 = vadd.f32 %v4936_v55, %v6825_v2  ;;  %v6954_v52 = vmax.f32 %v1255_v7, %v546_v38  ;;  %v6957_v60 = vmax.f32 %v1256_v5, %v6905_v62  ;;  %v3875_v2 = vmax.f32 %v6532_v27, %v6752_v47 }
 0x1b5   :  { %v1482_v13 = vmax.f32 %v9031_v49, %v6944_v46  ;;  %v1701_v56 = vcombine.low %v6863_v19, %v1481_v29  ;;  %v2019_v39 = vmul.f32 %v1481_v29, %v1481_v29  ;;  %v3005_v24 = vcombine.high %v2735_v25, %v2735_v25 }
 0x1b6   :  { %v3012_v45 = vrot.slane %v2735_v25, %v5805_v42  ;;  %v1483_v43 = vmax.f32 %v1411_v21, %v6954_v52  ;;  %v3877_v55 = vmax.f32 %v6622_v22, %v6762_v36  ;;  %v267_v25 = vadd.f32 %v6451_v41, %v9032_v9 }
 0x1b7   :  { %v2020_v59 = vmul.f32 %v1482_v13, %v1482_v13  ;;  %v1709_v8 = vrot.slane %v1701_v56, %v5805_v42  ;;  %v2238_v7 = vcombine.low %v6875_v4, %v2019_v39  ;;  %v3019_v27 = vrot.slane %v3005_v24, %v5805_v42 }
 0x1b8   :  { %v3020_v19 = vcombine.high %v3012_v45, %v3012_v45  ;;  %v1702_v5 = vcombine.low %v1482_v13, %v1483_v43  ;;  %v2021_v18 = vmul.f32 %v1483_v43, %v1483_v43  ;;  %v3451_v29 = vrot.slane %v3012_v45, 7 }
 0x1b9   :  { %v6978_v49 = vrot.slane %v2238_v7, %v5805_v42  ;;  %v6980_v21 = vcombine.high %v3019_v27, %v3019_v27  ;;  %v3457_v22 = vrot.slane %v3019_v27, 7 }
 0x1ba   :  { %v3454_v38 = vrot.slane %v3020_v19, 7  ;;  %v1716_v56 = vrot.slane %v1702_v5, %v5805_v42  ;;  %v2239_v61 = vcombine.low %v2020_v59, %v2021_v18  ;;  %v3452_v4 = vsel %vm5816_vm10, %v6853_v23, %v3451_v29 }
 0x1bb   :  { %v3453_v13 = vrot.slane %v3451_v29, 2  ;;  %v3459_v24 = vrot.slane %v3457_v22, 2  ;;  %v8938_v43 = vrot.slane %v6980_v21, 7  ;;  %v3719_v9 = vmax.f32 %v6831_v51, %v3452_v4 }
 0x1bc   :  { %v3456_v39 = vrot.slane %v3454_v38, 2  ;;  %v6988_v7 = vcombine.low %v1709_v8, %v1716_v56  ;;  %v2253_v54 = vrot.slane %v2239_v61, %v5805_v42  ;;  %v549_v5 = vcombine.high %v267_v25, %v267_v25 }
 0x1bd   :  { %v3455_v31 = vsel %vm5816_vm10, %v3453_v13, %v3454_v38  ;;  %v3461_v23 = vsel %vm5816_vm10, %v3459_v24, %v8938_v43  ;;  %v6999_v29 = vmax.f32 %v3719_v9, %v3012_v45  ;;  %v556_v61 = vrot.slane %v267_v25, %v5805_v42 }
 0x1be   :  { %9033 = vst [vmem:[#allocation13_spill] sm:$0xff] %v6988_v7  ;;  %v3458_v59 = vsel %vm5816_vm10, %v3456_v39, %v3457_v22  ;;  %v3720_v18 = vmax.f32 %v3012_v45, %v3455_v31  ;;  %v2254_v51 = vcombine.low %v6978_v49, %v2253_v54  ;;  %v3722_v56 = vmax.f32 %v3019_v27, %v3461_v23 }
 0x1bf   :  { %v3721_v8 = vmax.f32 %v3020_v19, %v3458_v59  ;;  %v3947_v22 = vmax.f32 %v3875_v2, %v6999_v29  ;;  %v563_v13 = vrot.slane %v549_v5, %v5805_v42  ;;  %v564_v45 = vcombine.high %v556_v61, %v556_v61 }
 0x1c0   :  { %v7003_v4 = vmax.f32 %v3720_v18, %v3020_v19  ;;  %v7012_v31 = vmax.f32 %v3722_v56, %v6980_v21  ;;  %v9034_v54 = vrot.slane %v6905_v62, 7  ;;  %v9035_v19 = vmax.f32 %v6535_v57, %v6757_v16  ;;  %v7026_v18 = vpop.f32.mrb[36].mxu0 }
 0x1c1   :  { %v7009_v39 = vmax.f32 %v3721_v8, %v3019_v27  ;;  %v4167_v24 = vcombine.low %v6902_v6, %v3947_v22  ;;  %v4484_v9 = vmul.f32 %v3947_v22, %v3947_v22  ;;  %v7021_v2 = vcombine.high %v563_v13, %v563_v13  ;;  %9036 = vst [vmem:[#allocation16_spill] sm:$0xff] %v7026_v18 }
 0x1c2   :  { %v996_v49 = vrot.slane %v9034_v54, 2  ;;  %v3948_v25 = vmax.f32 %v9035_v19, %v7003_v4  ;;  %v997_v59 = vrot.slane %v556_v61, 7  ;;  %v5284_v23 = vrot.slane %v564_v45, 9  ;;  %v5479_v19 = vpop.f32.mrb[37].mxu0 }
 0x1c3   :  { %v3949_v5 = vmax.f32 %v3877_v55, %v7009_v39  ;;  %v4175_v8 = vrot.slane %v4167_v24, %v5805_v42  ;;  %v4703_v57 = vcombine.low %v6912_v20, %v4484_v9  ;;  %v1001_v54 = vrot.slane %v563_v13, 7 }
 0x1c4   :  { %v4485_v56 = vmul.f32 %v3948_v25, %v3948_v25  ;;  %v998_v38 = vsel %vm5816_vm10, %v996_v49, %v997_v59  ;;  %v1004_v27 = vrot.slane %v7021_v2, 7 }
 0x1c5   :  { %v4168_v6 = vcombine.low %v3948_v25, %v3949_v5  ;;  %v4486_v22 = vmul.f32 %v3949_v5, %v3949_v5  ;;  %v7034_v55 = vrot.slane %v4703_v57, %v5805_v42  ;;  %v1002_v43 = vsel %vm5816_vm10, %v5284_v23, %v1001_v54  ;;  %v7042_v5 = vpop.f32.mrb[36].mxu1 }
 0x1c6   :  { %v1003_v18 = vrot.slane %v1001_v54, 2  ;;  %v1257_v24 = vmax.f32 %v6905_v62, %v998_v38  ;;  %v1258_v19 = vmax.f32 %v564_v45, %v1002_v43  ;;  %v1413_v25 = vmax.f32 %v6585_v17, %v6833_v30  ;;  %v5535_v45 = vpop.f32.mrb[37].mxu1 }
 0x1c7   :  { %v4182_v20 = vrot.slane %v4168_v6, %v5805_v42  ;;  %v4704_v9 = vcombine.low %v4485_v56, %v4486_v22  ;;  %v9037_v62 = vmax.f32 %v6580_v15, %v6827_v28  ;;  %v1963_v43 = vadd.f32 %v6890_v0, %v6988_v7 }
 0x1c8   :  { %v1005_v49 = vsel %vm5816_vm10, %v1003_v18, %v1004_v27  ;;  %v7048_v59 = vmax.f32 %v1257_v24, %v556_v61  ;;  %v7059_v57 = vmax.f32 %v1258_v19, %v563_v13  ;;  %v2473_v15 = vadd.f32 %v6908_v35, %v2254_v51 }
 0x1c9   :  { %v1484_v38 = vmax.f32 %v9037_v62, %v6957_v60  ;;  %v7056_v23 = vcombine.low %v4175_v8, %v4182_v20  ;;  %v4718_v17 = vrot.slane %v4704_v9, %v5805_v42  ;;  %v1259_v56 = vmax.f32 %v563_v13, %v1005_v49  ;;  %v9040_v13 = vld [vmem:[#allocation17_spill] sm:$0xff] }
 0x1ca   :  { %v1485_v18 = vmax.f32 %v1413_v25, %v7048_v59  ;;  %v9039_v8 = vmax.f32 %v6704_v37, %v6842_v44  ;;  %v2740_v24 = vadd.f32 %v6451_v41, %v9040_v13  ;;  %v9041_v19 = vrot.slane %v6980_v21, 7 }
 0x1cb   :  { %9038 = vst [vmem:[#allocation23_spill] sm:$0xff] %v7056_v23  ;;  %v2022_v54 = vmul.f32 %v1484_v38, %v1484_v38  ;;  %v4719_v6 = vcombine.low %v7034_v55, %v4718_v17  ;;  %v7067_v0 = vmax.f32 %v1259_v56, %v7021_v2  ;;  %v3879_v35 = vmax.f32 %v6645_v10, %v6878_v32 }
 0x1cc   :  { %v1486_v22 = vmax.f32 %v9039_v8, %v7059_v57  ;;  %v1718_v20 = vcombine.low %v1484_v38, %v1485_v18  ;;  %v2023_v9 = vmul.f32 %v1485_v18, %v1485_v18  ;;  %v3462_v25 = vrot.slane %v9041_v19, 2 }
 0x1cd   :  { %v9042_v51 = vmax.f32 %v6706_v53, %v6928_v14  ;;  %v3022_v62 = vcombine.high %v2740_v24, %v2740_v24  ;;  %v3029_v37 = vrot.slane %v2740_v24, %v5805_v42  ;;  %v9043_v10 = vmax.f32 %v6634_v12, %v6865_v1 }
 0x1ce   :  { %v2024_v49 = vmul.f32 %v1486_v22, %v1486_v22  ;;  %v1725_v45 = vrot.slane %v1718_v20, %v5805_v42  ;;  %5295 = vst.sshfl [vmem:[%s8920_s5 + $0x48] sm:$0x33 pattern:$0x76325410] %v1718_v20  ;;  %v2255_v41 = vcombine.low %v2022_v54, %v2023_v9  ;;  %v7094_v53 = vadd.f32 %v6931_v34, %v7056_v23 }
 0x1cf   :  { %v1487_v55 = vmax.f32 %v9042_v51, %v7067_v0  ;;  %v3950_v38 = vmax.f32 %v9043_v10, %v7012_v31  ;;  %v3036_v18 = vrot.slane %v3022_v62, %v5805_v42  ;;  %v3037_v8 = vcombine.high %v3029_v37, %v3029_v37 }
 0x1d0   :  { %v1964_v13 = vsel %vm1951_vm11, %v1725_v45, 0.0  ;;  %v2262_v24 = vrot.slane %v2255_v41, %v5805_v42  ;;  %v3463_v20 = vrot.slane %v3029_v37, 7 }
 0x1d1   :  { %v1726_v17 = vcombine.low %v1486_v22, %v1487_v55  ;;  %v2025_v56 = vmul.f32 %v1487_v55, %v1487_v55  ;;  %v4487_v54 = vmul.f32 %v3950_v38, %v3950_v38  ;;  %v7102_v12 = vadd.f32 %v1964_v13, %v1963_v43 }
 0x1d2   :  { %v7104_v51 = vcombine.high %v3036_v18, %v3036_v18  ;;  %v2474_v34 = vsel %vm1951_vm11, %v2262_v24, 0.0  ;;  %v3464_v22 = vsel %vm5816_vm10, %v3462_v25, %v3463_v20  ;;  %v5364_v55 = vrot.slane %v3037_v8, 9  ;;  %v7124_v25 = vld [vmem:[%s8919_s2] ss:$0 sm:$0xff] }
 0x1d3   :  { %v7100_v9 = vrot.slane %v1726_v17, %v5805_v42  ;;  %v2263_v19 = vcombine.low %v2024_v49, %v2025_v56  ;;  %v3467_v62 = vrot.slane %v3036_v18, 7  ;;  %v7112_v41 = vadd.f32 %v2474_v34, %v2473_v15  ;;  %v7116_v17 = vpop.f32.mrb[38].mxu0 }
 0x1d4   :  { %v8939_v10 = vrot.slane %v7104_v51, 7  ;;  %v3723_v43 = vmax.f32 %v6980_v21, %v3464_v22  ;;  %9044 = vst [vmem:[#allocation17_spill] sm:$0xff] %v7116_v17  ;;  %v4938_v13 = vadd.f32 %v6947_v58, %v4719_v6  ;;  %v270_v15 = vadd.f32 %v7124_v25, %v6407_v26  ;;  %v5480_v24 = vpop.f32.mrb[39].mxu0 }
 0x1d5   :  { %v7110_v45 = vrot.slane %v2263_v19, %v5805_v42  ;;  %v3468_v49 = vsel %vm5816_vm10, %v5364_v55, %v3467_v62  ;;  %v3469_v56 = vrot.slane %v3467_v62, 2  ;;  %v1006_v21 = vrot.slane %v1004_v27, 2 }
 0x1d6   :  { %v3724_v20 = vmax.f32 %v3037_v8, %v3468_v49  ;;  %v7128_v19 = vmax.f32 %v3723_v43, %v3029_v37  ;;  %v1416_v34 = vmax.f32 %v6708_v11, %v6944_v46  ;;  %v566_v6 = vcombine.high %v270_v15, %v270_v15 }
 0x1d7   :  { %v3471_v58 = vsel %vm5816_vm10, %v3469_v56, %v8939_v10  ;;  %v573_v22 = vrot.slane %v270_v15, %v5805_v42  ;;  %v1418_v26 = vmax.f32 %v6827_v28, %v6957_v60  ;;  %v2743_v49 = vadd.f32 %v7124_v25, %v6459_v48 }
 0x1d8   :  { %v3725_v8 = vmax.f32 %v3036_v18, %v3471_v58  ;;  %v7141_v37 = vmax.f32 %v3724_v20, %v3036_v18  ;;  %v3951_v55 = vmax.f32 %v3879_v35, %v7128_v19  ;;  %v580_v11 = vrot.slane %v566_v6, %v5805_v42 }
 0x1d9   :  { %v581_v62 = vcombine.high %v573_v22, %v573_v22  ;;  %v1007_v43 = vrot.slane %v573_v22, 7  ;;  %v9045_v28 = vmax.f32 %v6750_v33, %v6881_v40  ;;  %v9046_v48 = vmax.f32 %v6752_v47, %v6999_v29 }
 0x1da   :  { %v7150_v56 = vmax.f32 %v3725_v8, %v7104_v51  ;;  %v4184_v15 = vcombine.low %v3950_v38, %v3951_v55  ;;  %v4488_v24 = vmul.f32 %v3951_v55, %v3951_v55  ;;  %v582_v20 = vcombine.high %v580_v11, %v580_v11  ;;  %v7166_v55 = vpop.f32.mrb[38].mxu1 }
 0x1db   :  { %v3952_v18 = vmax.f32 %v9045_v28, %v7141_v37  ;;  %v1008_v35 = vsel %vm5816_vm10, %v1006_v21, %v1007_v43  ;;  %v1009_v58 = vrot.slane %v1007_v43, 2  ;;  %v1010_v6 = vrot.slane %v581_v62, 7  ;;  %9047 = vst [vmem:[#allocation24_spill] sm:$0xff] %v7166_v55  ;;  %v5536_v10 = vpop.f32.mrb[39].mxu1 }
 0x1dc   :  { %v3953_v27 = vmax.f32 %v9046_v48, %v7150_v56  ;;  %v4191_v8 = vrot.slane %v4184_v15, %v5805_v42  ;;  %5399 = vst.sshfl [vmem:[%s8920_s5 + $0x108] sm:$0x33 pattern:$0x76325410] %v4184_v15  ;;  %v4720_v38 = vcombine.low %v4487_v54, %v4488_v24  ;;  %v1013_v28 = vrot.slane %v580_v11, 7 }
 0x1dd   :  { %v4489_v33 = vmul.f32 %v3952_v18, %v3952_v18  ;;  %v1011_v21 = vsel %vm5816_vm10, %v1009_v58, %v1010_v6  ;;  %v1012_v43 = vrot.slane %v1010_v6, 2  ;;  %v1016_v61 = vrot.slane %v582_v20, 7 }
 0x1de   :  { %v4192_v23 = vcombine.low %v3952_v18, %v3953_v27  ;;  %v4429_v47 = vsel %vm1951_vm11, %v4191_v8, 0.0  ;;  %v4490_v48 = vmul.f32 %v3953_v27, %v3953_v27  ;;  %v4727_v7 = vrot.slane %v4720_v38, %v5805_v42 }
 0x1df   :  { %v7173_v17 = vadd.f32 %v4429_v47, %v7094_v53  ;;  %v1014_v54 = vsel %vm5816_vm10, %v1012_v43, %v1013_v28  ;;  %v1015_v15 = vrot.slane %v1013_v28, 2  ;;  %v1260_v24 = vmax.f32 %v7021_v2, %v1008_v35 }
 0x1e0   :  { %v7179_v58 = vrot.slane %v4192_v23, %v5805_v42  ;;  %v4728_v6 = vcombine.low %v4489_v33, %v4490_v48  ;;  %v4939_v10 = vsel %vm1951_vm11, %v4727_v7, 0.0  ;;  %v1261_v18 = vmax.f32 %v573_v22, %v1011_v21 }
 0x1e1   :  { %v7182_v8 = vadd.f32 %v4939_v10, %v4938_v13  ;;  %v1017_v27 = vsel %vm5816_vm10, %v1015_v15, %v1016_v61  ;;  %v1262_v53 = vmax.f32 %v581_v62, %v1014_v54  ;;  %v7186_v38 = vmax.f32 %v1260_v24, %v573_v22 }
 0x1e2   :  { %v7189_v43 = vrot.slane %v4728_v6, %v5805_v42  ;;  %v1263_v28 = vmax.f32 %v580_v11, %v1017_v27  ;;  %v7191_v2 = vmax.f32 %v1261_v18, %v581_v62  ;;  %v3039_v23 = vcombine.high %v2743_v49, %v2743_v49 }
 0x1e3   :  { %v7193_v35 = vmax.f32 %v1262_v53, %v580_v11  ;;  %v1488_v13 = vmax.f32 %v1416_v34, %v7186_v38  ;;  %v3046_v33 = vrot.slane %v2743_v49, %v5805_v42  ;;  %v9048_v22 = vmax.f32 %v6714_v3, %v6954_v52 }
 0x1e4   :  { %v7199_v61 = vmax.f32 %v1263_v28, %v582_v20  ;;  %v3053_v62 = vrot.slane %v3039_v23, %v5805_v42  ;;  %v9049_v47 = vrot.slane %v7104_v51, 7  ;;  %v9050_v49 = vmax.f32 %v6833_v30, %v7048_v59 }
 0x1e5   :  { %v1489_v21 = vmax.f32 %v9048_v22, %v7191_v2  ;;  %v1490_v54 = vmax.f32 %v1418_v26, %v7193_v35  ;;  %v2026_v34 = vmul.f32 %v1488_v13, %v1488_v13  ;;  %v3054_v15 = vcombine.high %v3046_v33, %v3046_v33 }
 0x1e6   :  { %v3472_v11 = vrot.slane %v9049_v47, 2  ;;  %v1491_v20 = vmax.f32 %v9050_v49, %v7199_v61  ;;  %v3055_v6 = vcombine.high %v3053_v62, %v3053_v62  ;;  %v3473_v18 = vrot.slane %v3046_v33, 7 }
 0x1e7   :  { %v1727_v24 = vcombine.low %v1488_v13, %v1489_v21  ;;  %v2027_v3 = vmul.f32 %v1489_v21, %v1489_v21  ;;  %v2028_v10 = vmul.f32 %v1490_v54, %v1490_v54  ;;  %v3476_v27 = vrot.slane %v3054_v15, 7 }
 0x1e8   :  { %v3479_v53 = vrot.slane %v3053_v62, 7  ;;  %v1743_v23 = vcombine.low %v1490_v54, %v1491_v20  ;;  %v2029_v22 = vmul.f32 %v1491_v20, %v1491_v20  ;;  %v3474_v26 = vsel %vm5816_vm10, %v3472_v11, %v3473_v18 }
 0x1e9   :  { %v1741_v28 = vrot.slane %v1727_v24, %v5805_v42  ;;  %v2264_v47 = vcombine.low %v2026_v34, %v2027_v3  ;;  %v3475_v48 = vrot.slane %v3473_v18, 2  ;;  %v3478_v7 = vrot.slane %v3476_v27, 2 }
 0x1ea   :  { %v3481_v55 = vrot.slane %v3479_v53, 2  ;;  %v1750_v13 = vrot.slane %v1743_v23, %v5805_v42  ;;  %5296 = vst.sshfl [vmem:[%s8920_s5 + $0x58] sm:$0x33 pattern:$0x76325410] %v1743_v23  ;;  %v2280_v54 = vcombine.low %v2028_v10, %v2029_v22  ;;  %v3482_v49 = vrot.slane %v3055_v6, 7 }
 0x1eb   :  { %v7219_v30 = vcombine.low %v7100_v9, %v1741_v28  ;;  %v2278_v21 = vrot.slane %v2264_v47, %v5805_v42  ;;  %v3477_v34 = vsel %vm5816_vm10, %v3475_v48, %v3476_v27  ;;  %v3480_v11 = vsel %vm5816_vm10, %v3478_v7, %v3479_v53  ;;  %v7252_v47 = vpop.f32.mrb[40].mxu0 }
 0x1ec   :  { %v3726_v20 = vmax.f32 %v7104_v51, %v3474_v26  ;;  %v1967_v24 = vsel %vm1951_vm11, %v1750_v13, 0.0  ;;  %v2287_v18 = vrot.slane %v2280_v54, %v5805_v42  ;;  %v3483_v10 = vsel %vm5816_vm10, %v3481_v55, %v3482_v49 }
 0x1ed   :  { %9051 = vst [vmem:[#allocation25_spill] sm:$0xff] %v7219_v30  ;;  %v1966_v9 = vadd.f32 %v7102_v12, %v7219_v30  ;;  %v2279_v3 = vcombine.low %v7110_v45, %v2278_v21  ;;  %v3727_v28 = vmax.f32 %v3046_v33, %v3477_v34  ;;  %v3728_v48 = vmax.f32 %v3054_v15, %v3480_v11 }
 0x1ee   :  { %v7238_v27 = vmax.f32 %v3726_v20, %v3046_v33  ;;  %v2477_v53 = vsel %vm1951_vm11, %v2287_v18, 0.0  ;;  %v3729_v12 = vmax.f32 %v3053_v62, %v3483_v10  ;;  %v3882_v45 = vmax.f32 %v6757_v16, %v7003_v4 }
 0x1ef   :  { %v7240_v7 = vadd.f32 %v1967_v24, %v1966_v9  ;;  %v2476_v51 = vadd.f32 %v7112_v41, %v2279_v3  ;;  %v7244_v23 = vmax.f32 %v3727_v28, %v3054_v15  ;;  %v7246_v22 = vmax.f32 %v3728_v48, %v3053_v62  ;;  %v5483_v62 = vpop.f32.mrb[41].mxu0  ;;  %v7278_v48 = vpop.f32.mrb[40].mxu1 }
 0x1f0   :  { %v3884_v55 = vmax.f32 %v6865_v1, %v7012_v31  ;;  %v7256_v26 = vmax.f32 %v3729_v12, %v3055_v6  ;;  %v275_v15 = vadd.f32 %v7124_v25, %v6573_v50  ;;  %v3954_v16 = vmax.f32 %v3882_v45, %v7238_v27  ;;  %9054 = vst [vmem:[#allocation26_spill] sm:$0xff] %v7278_v48  ;;  %v5539_v45 = vpop.f32.mrb[41].mxu1 }
 0x1f1   :  { %v7254_v33 = vadd.f32 %v2477_v53, %v2476_v51  ;;  %v9052_v1 = vmax.f32 %v6762_v36, %v7009_v39  ;;  %v9053_v54 = vmax.f32 %v6878_v32, %v7128_v19  ;;  %v1420_v49 = vmax.f32 %v6842_v44, %v7059_v57 }
 0x1f2   :  { %v3956_v6 = vmax.f32 %v3884_v55, %v7246_v22  ;;  %v583_v11 = vcombine.high %v275_v15, %v275_v15  ;;  %v590_v50 = vrot.slane %v275_v15, %v5805_v42  ;;  %v4491_v9 = vmul.f32 %v3954_v16, %v3954_v16 }
 0x1f3   :  { %v3955_v21 = vmax.f32 %v9052_v1, %v7244_v23  ;;  %v3957_v34 = vmax.f32 %v9053_v54, %v7256_v26  ;;  %v1421_v12 = vmax.f32 %v6928_v14, %v7067_v0 }
 0x1f4   :  { %v4493_v3 = vmul.f32 %v3956_v6, %v3956_v6  ;;  %v597_v10 = vrot.slane %v583_v11, %v5805_v42  ;;  %v598_v28 = vcombine.high %v590_v50, %v590_v50  ;;  %v5285_v53 = vrot.slane %v590_v50, 9 }
 0x1f5   :  { %v4193_v20 = vcombine.low %v3954_v16, %v3955_v21  ;;  %v4492_v24 = vmul.f32 %v3955_v21, %v3955_v21  ;;  %v4209_v18 = vcombine.low %v3956_v6, %v3957_v34  ;;  %v4494_v36 = vmul.f32 %v3957_v34, %v3957_v34  ;;  %v9056_v6 = vld [vmem:[#allocation5_spill] sm:$0xff] }
 0x1f6   :  { %v7287_v15 = vcombine.high %v597_v10, %v597_v10  ;;  %v1020_v62 = vrot.slane %v598_v28, 7  ;;  %v1023_v21 = vrot.slane %v597_v10, 7  ;;  %v2748_v14 = vadd.f32 %v7124_v25, %v9056_v6 }
 0x1f7   :  { %v4207_v32 = vrot.slane %v4193_v20, %v5805_v42  ;;  %v4729_v51 = vcombine.low %v4491_v9, %v4492_v24  ;;  %v4216_v44 = vrot.slane %v4209_v18, %v5805_v42  ;;  %5400 = vst.sshfl [vmem:[%s8920_s5 + $0x118] sm:$0x33 pattern:$0x76325410] %v4209_v18  ;;  %v4745_v55 = vcombine.low %v4493_v3, %v4494_v36 }
 0x1f8   :  { %v1021_v11 = vsel %vm5816_vm10, %v5285_v53, %v1020_v62  ;;  %v1022_v20 = vrot.slane %v1020_v62, 2  ;;  %v1025_v24 = vrot.slane %v1023_v21, 2  ;;  %v1026_v3 = vrot.slane %v7287_v15, 7 }
 0x1f9   :  { %v7290_v16 = vcombine.low %v7179_v58, %v4207_v32  ;;  %v4743_v1 = vrot.slane %v4729_v51, %v5805_v42  ;;  %v4432_v54 = vsel %vm1951_vm11, %v4216_v44, 0.0  ;;  %v4752_v34 = vrot.slane %v4745_v55, %v5805_v42 }
 0x1fa   :  { %v1024_v36 = vsel %vm5816_vm10, %v1022_v20, %v1023_v21  ;;  %v1264_v32 = vmax.f32 %v590_v50, %v1021_v11  ;;  %v3056_v51 = vcombine.high %v2748_v14, %v2748_v14  ;;  %v1027_v44 = vsel %vm5816_vm10, %v1025_v24, %v1026_v3  ;;  %v9057_v24 = vld [vmem:[#allocation11_spill] sm:$0xff] }
 0x1fb   :  { %9055 = vst [vmem:[#allocation27_spill] sm:$0xff] %v7290_v16  ;;  %v4431_v9 = vadd.f32 %v7173_v17, %v7290_v16  ;;  %v4744_v58 = vcombine.low %v7189_v43, %v4743_v1  ;;  %v4942_v18 = vsel %vm1951_vm11, %v4752_v34, 0.0  ;;  %v1265_v17 = vmax.f32 %v598_v28, %v1024_v36 }
 0x1fc   :  { %v1266_v55 = vmax.f32 %v597_v10, %v1027_v44  ;;  %v7311_v43 = vmax.f32 %v1264_v32, %v598_v28  ;;  %v3063_v62 = vrot.slane %v2748_v14, %v5805_v42  ;;  %v3070_v1 = vrot.slane %v3056_v51, %v5805_v42 }
 0x1fd   :  { %v7306_v45 = vadd.f32 %v4432_v54, %v4431_v9  ;;  %v4941_v53 = vadd.f32 %v7182_v8, %v4744_v58  ;;  %v7317_v21 = vmax.f32 %v1265_v17, %v597_v10  ;;  %v3886_v50 = vmax.f32 %v6881_v40, %v7141_v37 }
 0x1fe   :  { %v3887_v8 = vmax.f32 %v6999_v29, %v7150_v56  ;;  %v7324_v54 = vmax.f32 %v1266_v55, %v7287_v15  ;;  %v1492_v14 = vmax.f32 %v1420_v49, %v7311_v43  ;;  %v3071_v34 = vcombine.high %v3063_v62, %v3063_v62 }
 0x1ff   :  { %v7315_v6 = vadd.f32 %v4942_v18, %v4941_v53  ;;  %v1493_v10 = vmax.f32 %v1421_v12, %v7317_v21  ;;  %v7332_v20 = vcombine.high %v3070_v1, %v3070_v1  ;;  %v5365_v40 = vrot.slane %v3063_v62, 9 }
 0x200   :  { %v2030_v9 = vmul.f32 %v1492_v14, %v1492_v14  ;;  %v3486_v58 = vrot.slane %v3071_v34, 7  ;;  %v3489_v29 = vrot.slane %v3070_v1, 7  ;;  %v278_v18 = vadd.f32 %v7124_v25, %v9057_v24 }
 0x201   :  { %v1751_v36 = vcombine.low %v1492_v14, %v1493_v10  ;;  %v2031_v32 = vmul.f32 %v1493_v10, %v1493_v10  ;;  %v3492_v51 = vrot.slane %v7332_v20, 7  ;;  %v1028_v49 = vrot.slane %v1026_v3, 2 }
 0x202   :  { %v3487_v53 = vsel %vm5816_vm10, %v5365_v40, %v3486_v58  ;;  %v3488_v44 = vrot.slane %v3486_v58, 2  ;;  %v3491_v17 = vrot.slane %v3489_v29, 2  ;;  %v600_v12 = vcombine.high %v278_v18, %v278_v18 }
 0x203   :  { %v7340_v55 = vrot.slane %v1751_v36, %v5805_v42  ;;  %v2288_v11 = vcombine.low %v2030_v9, %v2031_v32  ;;  %v3730_v28 = vmax.f32 %v3063_v62, %v3487_v53  ;;  %v607_v13 = vrot.slane %v278_v18, %v5805_v42  ;;  %v7357_v53 = vpop.f32.mrb[42].mxu0 }
 0x204   :  { %v3490_v14 = vsel %vm5816_vm10, %v3488_v44, %v3489_v29  ;;  %v3493_v10 = vsel %vm5816_vm10, %v3491_v17, %v3492_v51  ;;  %v614_v3 = vrot.slane %v600_v12, %v5805_v42  ;;  %v1423_v40 = vmax.f32 %v6954_v52, %v7191_v2  ;;  %9058 = vst [vmem:[#allocation5_spill] sm:$0xff] %v7357_v53  ;;  %v5484_v12 = vpop.f32.mrb[43].mxu0  ;;  %v7388_v53 = vpop.f32.mrb[42].mxu1 }
 0x205   :  { %v7351_v58 = vrot.slane %v2288_v11, %v5805_v42  ;;  %v3731_v24 = vmax.f32 %v3071_v34, %v3490_v14  ;;  %v3732_v36 = vmax.f32 %v3070_v1, %v3493_v10  ;;  %v7353_v9 = vmax.f32 %v3730_v28, %v3071_v34  ;;  %9061 = vst [vmem:[#allocation11_spill] sm:$0xff] %v7388_v53 }
 0x206   :  { %v615_v62 = vcombine.high %v607_v13, %v607_v13  ;;  %v7355_v18 = vcombine.high %v614_v3, %v614_v3  ;;  %v1029_v32 = vrot.slane %v607_v13, 7  ;;  %v1035_v29 = vrot.slane %v614_v3, 7 }
 0x207   :  { %v7359_v44 = vmax.f32 %v3731_v24, %v3070_v1  ;;  %v7362_v17 = vmax.f32 %v3732_v36, %v7332_v20  ;;  %v3958_v11 = vmax.f32 %v3886_v50, %v7353_v9  ;;  %v1425_v12 = vmax.f32 %v7048_v59, %v7199_v61 }
 0x208   :  { %v1030_v28 = vsel %vm5816_vm10, %v1028_v49, %v1029_v32  ;;  %v1031_v34 = vrot.slane %v1029_v32, 2  ;;  %v1032_v14 = vrot.slane %v615_v62, 7  ;;  %v9059_v49 = vmax.f32 %v6944_v46, %v7186_v38 }
 0x209   :  { %v3959_v24 = vmax.f32 %v3887_v8, %v7359_v44  ;;  %v4495_v36 = vmul.f32 %v3958_v11, %v3958_v11  ;;  %v1267_v41 = vmax.f32 %v7287_v15, %v1030_v28  ;;  %v9060_v28 = vld [vmem:[#allocation7_spill] sm:$0xff] }
 0x20a   :  { %v1033_v52 = vsel %vm5816_vm10, %v1031_v34, %v1032_v14  ;;  %v1034_v50 = vrot.slane %v1032_v14, 2  ;;  %v1494_v32 = vmax.f32 %v9059_v49, %v7324_v54  ;;  %v2751_v34 = vadd.f32 %v7124_v25, %v9060_v28 }
 0x20b   :  { %v4217_v10 = vcombine.low %v3958_v11, %v3959_v24  ;;  %v4496_v16 = vmul.f32 %v3959_v24, %v3959_v24  ;;  %v1268_v1 = vmax.f32 %v607_v13, %v1033_v52  ;;  %v7382_v30 = vmax.f32 %v1267_v41, %v607_v13  ;;  %v5540_v52 = vpop.f32.mrb[43].mxu1 }
 0x20c   :  { %v1036_v15 = vsel %vm5816_vm10, %v1034_v50, %v1035_v29  ;;  %v2032_v8 = vmul.f32 %v1494_v32, %v1494_v32  ;;  %v3494_v14 = vrot.slane %v3492_v51, 2  ;;  %v3073_v29 = vcombine.high %v2751_v34, %v2751_v34 }
 0x20d   :  { %v7391_v59 = vrot.slane %v4217_v10, %v5805_v42  ;;  %v4753_v46 = vcombine.low %v4495_v36, %v4496_v16  ;;  %v1269_v49 = vmax.f32 %v615_v62, %v1036_v15  ;;  %v7393_v11 = vmax.f32 %v1268_v1, %v615_v62 }
 0x20e   :  { %v1495_v13 = vmax.f32 %v1423_v40, %v7382_v30  ;;  %v3080_v24 = vrot.slane %v2751_v34, %v5805_v42  ;;  %v9062_v16 = vmax.f32 %v6957_v60, %v7193_v35  ;;  %v3889_v10 = vmax.f32 %v7009_v39, %v7244_v23 }
 0x20f   :  { %v7400_v51 = vrot.slane %v4753_v46, %v5805_v42  ;;  %v7402_v50 = vmax.f32 %v1269_v49, %v614_v3  ;;  %v3087_v40 = vrot.slane %v3073_v29, %v5805_v42 }
 0x210   :  { %v1496_v62 = vmax.f32 %v9062_v16, %v7393_v11  ;;  %v1752_v1 = vcombine.low %v1494_v32, %v1495_v13  ;;  %v2033_v36 = vmul.f32 %v1495_v13, %v1495_v13  ;;  %v3088_v15 = vcombine.high %v3080_v24, %v3080_v24 }
 0x211   :  { %v1497_v34 = vmax.f32 %v1425_v12, %v7402_v50  ;;  %v3495_v46 = vrot.slane %v3080_v24, 7  ;;  %v7415_v60 = vcombine.high %v3087_v40, %v3087_v40  ;;  %v3501_v53 = vrot.slane %v3087_v40, 7 }
 0x212   :  { %v2034_v3 = vmul.f32 %v1496_v62, %v1496_v62  ;;  %v1766_v49 = vrot.slane %v1752_v1, %v5805_v42  ;;  %v2289_v52 = vcombine.low %v2032_v8, %v2033_v36  ;;  %v3498_v16 = vrot.slane %v3088_v15, 7 }
 0x213   :  { %v1768_v41 = vcombine.low %v1496_v62, %v1497_v34  ;;  %v2035_v39 = vmul.f32 %v1497_v34, %v1497_v34  ;;  %v3496_v32 = vsel %vm5816_vm10, %v3494_v14, %v3495_v46  ;;  %v3497_v13 = vrot.slane %v3495_v46, 2 }
 0x214   :  { %v7420_v29 = vcombine.low %v7340_v55, %v1766_v49  ;;  %v2303_v28 = vrot.slane %v2289_v52, %v5805_v42  ;;  %v3500_v12 = vrot.slane %v3498_v16, 2  ;;  %v3733_v34 = vmax.f32 %v7332_v20, %v3496_v32  ;;  %v7454_v32 = vpop.f32.mrb[44].mxu0 }
 0x215   :  { %v1775_v48 = vrot.slane %v1768_v41, %v5805_v42  ;;  %5297 = vst.sshfl [vmem:[%s8920_s5 + $0x68] sm:$0x33 pattern:$0x76325410] %v1768_v41  ;;  %v2305_v8 = vcombine.low %v2034_v3, %v2035_v39  ;;  %v3499_v62 = vsel %vm5816_vm10, %v3497_v13, %v3498_v16 }
 0x216   :  { %9063 = vst [vmem:[#allocation7_spill] sm:$0xff] %v7420_v29  ;;  %v1969_v55 = vadd.f32 %v7240_v7, %v7420_v29  ;;  %v2304_v1 = vcombine.low %v7351_v58, %v2303_v28  ;;  %v3502_v36 = vsel %vm5816_vm10, %v3500_v12, %v3501_v53  ;;  %v3734_v3 = vmax.f32 %v3080_v24, %v3499_v62  ;;  %v5487_v12 = vpop.f32.mrb[45].mxu0 }
 0x217   :  { %v1970_v46 = vsel %vm1951_vm11, %v1775_v48, 0.0  ;;  %v2312_v41 = vrot.slane %v2305_v8, %v5805_v42  ;;  %v3735_v49 = vmax.f32 %v3088_v15, %v3502_v36  ;;  %v7441_v39 = vmax.f32 %v3733_v34, %v3080_v24  ;;  %v9065_v24 = vld [vmem:[#allocation21_spill] sm:$0xff]  ;;  %v7481_v12 = vpop.f32.mrb[44].mxu1 }
 0x218   :  { %v7438_v52 = vadd.f32 %v1970_v46, %v1969_v55  ;;  %v2479_v16 = vadd.f32 %v7254_v33, %v2304_v1  ;;  %v3891_v7 = vmax.f32 %v7128_v19, %v7256_v26  ;;  %v7446_v53 = vmax.f32 %v3734_v3, %v3088_v15  ;;  %9068 = vst [vmem:[#allocation21_spill] sm:$0xff] %v7481_v12 }
 0x219   :  { %v2480_v58 = vsel %vm1951_vm11, %v2312_v41, 0.0  ;;  %v7448_v20 = vmax.f32 %v3735_v49, %v3087_v40  ;;  %v9064_v48 = vmax.f32 %v7003_v4, %v7238_v27  ;;  %v3961_v19 = vmax.f32 %v3889_v10, %v7441_v39 }
 0x21a   :  { %v7456_v13 = vadd.f32 %v2480_v58, %v2479_v16  ;;  %v283_v15 = vadd.f32 %v7124_v25, %v9065_v24  ;;  %v9066_v4 = vmax.f32 %v7012_v31, %v7246_v22  ;;  %v1428_v49 = vmax.f32 %v7186_v38, %v7324_v54  ;;  %v9067_v24 = vld [vmem:[#allocation9_spill] sm:$0xff] }
 0x21b   :  { %v3960_v28 = vmax.f32 %v9064_v48, %v7362_v17  ;;  %v3963_v62 = vmax.f32 %v3891_v7, %v7448_v20  ;;  %v4498_v36 = vmul.f32 %v3961_v19, %v3961_v19 }
 0x21c   :  { %v3962_v8 = vmax.f32 %v9066_v4, %v7446_v53  ;;  %v617_v34 = vcombine.high %v283_v15, %v283_v15  ;;  %v624_v10 = vrot.slane %v283_v15, %v5805_v42  ;;  %v2756_v15 = vadd.f32 %v7124_v25, %v9067_v24 }
 0x21d   :  { %v4497_v55 = vmul.f32 %v3960_v28, %v3960_v28  ;;  %v4218_v1 = vcombine.low %v3960_v28, %v3961_v19  ;;  %v4500_v3 = vmul.f32 %v3963_v62, %v3963_v62 }
 0x21e   :  { %v4234_v46 = vcombine.low %v3962_v8, %v3963_v62  ;;  %v4499_v41 = vmul.f32 %v3962_v8, %v3962_v8  ;;  %v631_v31 = vrot.slane %v617_v34, %v5805_v42  ;;  %v632_v48 = vcombine.high %v624_v10, %v624_v10 }
 0x21f   :  { %v4232_v16 = vrot.slane %v4218_v1, %v5805_v42  ;;  %v4754_v58 = vcombine.low %v4497_v55, %v4498_v36  ;;  %v1039_v19 = vrot.slane %v624_v10, 7  ;;  %v5543_v55 = vpop.f32.mrb[45].mxu1  ;;  %v9070_v34 = vrot.slane %v7355_v18, 9 }
 0x220   :  { %v4241_v7 = vrot.slane %v4234_v46, %v5805_v42  ;;  %5401 = vst.sshfl [vmem:[%s8920_s5 + $0x128] sm:$0x33 pattern:$0x76325410] %v4234_v46  ;;  %v4770_v28 = vcombine.low %v4499_v41, %v4500_v3  ;;  %v7487_v8 = vcombine.high %v631_v31, %v631_v31  ;;  %v1042_v62 = vrot.slane %v632_v48, 7 }
 0x221   :  { %v7484_v38 = vcombine.low %v7391_v59, %v4232_v16  ;;  %v4768_v4 = vrot.slane %v4754_v58, %v5805_v42  ;;  %v1040_v46 = vsel %vm5816_vm10, %v9070_v34, %v1039_v19  ;;  %v1041_v41 = vrot.slane %v1039_v19, 2 }
 0x222   :  { %v4435_v1 = vsel %vm1951_vm11, %v4241_v7, 0.0  ;;  %v4777_v36 = vrot.slane %v4770_v28, %v5805_v42  ;;  %v1044_v16 = vrot.slane %v1042_v62, 2  ;;  %v1045_v58 = vrot.slane %v631_v31, 7 }
 0x223   :  { %9069 = vst [vmem:[#allocation9_spill] sm:$0xff] %v7484_v38  ;;  %v4434_v59 = vadd.f32 %v7306_v45, %v7484_v38  ;;  %v4769_v3 = vcombine.low %v7400_v51, %v4768_v4  ;;  %v1043_v7 = vsel %vm5816_vm10, %v1041_v41, %v1042_v62  ;;  %v8944_v28 = vrot.slane %v7487_v8, 7 }
 0x224   :  { %v4945_v24 = vsel %vm1951_vm11, %v4777_v36, 0.0  ;;  %v1270_v55 = vmax.f32 %v7355_v18, %v1040_v46  ;;  %v1046_v45 = vsel %vm5816_vm10, %v1044_v16, %v1045_v58  ;;  %v1047_v34 = vrot.slane %v1045_v58, 2 }
 0x225   :  { %v7503_v40 = vadd.f32 %v4435_v1, %v4434_v59  ;;  %v4944_v19 = vadd.f32 %v7315_v6, %v4769_v3  ;;  %v1271_v51 = vmax.f32 %v624_v10, %v1043_v7  ;;  %v1272_v4 = vmax.f32 %v632_v48, %v1046_v45 }
 0x226   :  { %v7508_v33 = vmax.f32 %v1270_v55, %v624_v10  ;;  %v3090_v36 = vcombine.high %v2756_v15, %v2756_v15  ;;  %v1049_v18 = vsel %vm5816_vm10, %v1047_v34, %v8944_v28  ;;  %v3097_v62 = vrot.slane %v2756_v15, %v5805_v42 }
 0x227   :  { %v7510_v14 = vadd.f32 %v4945_v24, %v4944_v19  ;;  %v3894_v6 = vmax.f32 %v7238_v27, %v7362_v17  ;;  %v1273_v1 = vmax.f32 %v631_v31, %v1049_v18  ;;  %v7519_v46 = vmax.f32 %v1271_v51, %v632_v48 }
 0x228   :  { %v7521_v41 = vmax.f32 %v1272_v4, %v631_v31  ;;  %v9071_v59 = vmax.f32 %v7059_v57, %v7311_v43  ;;  %v3104_v16 = vrot.slane %v3090_v36, %v5805_v42  ;;  %v3105_v58 = vcombine.high %v3097_v62, %v3097_v62 }
 0x229   :  { %v3505_v15 = vrot.slane %v3097_v62, 7  ;;  %v7531_v24 = vmax.f32 %v1273_v1, %v7487_v8  ;;  %v9072_v31 = vmax.f32 %v7067_v0, %v7317_v21  ;;  %v9073_v19 = vrot.slane %v7415_v60, 9 }
 0x22a   :  { %v1498_v3 = vmax.f32 %v9071_v59, %v7508_v33  ;;  %v1500_v7 = vmax.f32 %v1428_v49, %v7521_v41  ;;  %v7540_v57 = vcombine.high %v3104_v16, %v3104_v16  ;;  %v9074_v51 = vmax.f32 %v7191_v2, %v7382_v30 }
 0x22b   :  { %v1499_v48 = vmax.f32 %v9072_v31, %v7519_v46  ;;  %v3506_v45 = vsel %vm5816_vm10, %v9073_v19, %v3505_v15  ;;  %v3507_v34 = vrot.slane %v3505_v15, 2  ;;  %v3508_v1 = vrot.slane %v3105_v58, 7 }
 0x22c   :  { %v2036_v55 = vmul.f32 %v1498_v3, %v1498_v3  ;;  %v1501_v4 = vmax.f32 %v9074_v51, %v7531_v24  ;;  %v2038_v0 = vmul.f32 %v1500_v7, %v1500_v7  ;;  %v3511_v59 = vrot.slane %v3104_v16, 7 }
 0x22d   :  { %v1776_v36 = vcombine.low %v1498_v3, %v1499_v48  ;;  %v2037_v18 = vmul.f32 %v1499_v48, %v1499_v48  ;;  %v3736_v31 = vmax.f32 %v7415_v60, %v3506_v45  ;;  %v3509_v15 = vsel %vm5816_vm10, %v3507_v34, %v3508_v1  ;;  %v7557_v3 = vpop.f32.mrb[46].mxu0 }
 0x22e   :  { %v1777_v27 = vcombine.low %v1500_v7, %v1501_v4  ;;  %v2039_v28 = vmul.f32 %v1501_v4, %v1501_v4  ;;  %v3510_v38 = vrot.slane %v3508_v1, 2  ;;  %v3513_v2 = vrot.slane %v3511_v59, 2  ;;  %9075 = vst [vmem:[#allocation28_spill] sm:$0xff] %v7557_v3  ;;  %v5488_v7 = vpop.f32.mrb[47].mxu0 }
 0x22f   :  { %v1784_v10 = vrot.slane %v1776_v36, %v5805_v42  ;;  %v2313_v19 = vcombine.low %v2036_v55, %v2037_v18  ;;  %v7555_v51 = vmax.f32 %v3736_v31, %v3097_v62  ;;  %v3737_v60 = vmax.f32 %v3097_v62, %v3509_v15 }
 0x230   :  { %v1791_v48 = vrot.slane %v1777_v27, %v5805_v42  ;;  %v2314_v29 = vcombine.low %v2038_v0, %v2039_v28  ;;  %v3512_v45 = vsel %vm5816_vm10, %v3510_v38, %v3511_v59  ;;  %v9076_v55 = vrot.slane %v7540_v57, 7  ;;  %v9079_v59 = vld [vmem:[#allocation12_spill] sm:$0xff] }
 0x231   :  { %v2321_v49 = vrot.slane %v2313_v19, %v5805_v42  ;;  %v9077_v27 = vmax.f32 %v7141_v37, %v7353_v9  ;;  %v3738_v18 = vmax.f32 %v3105_v58, %v3512_v45  ;;  %v7576_v38 = vmax.f32 %v3737_v60, %v3105_v58 }
 0x232   :  { %v3515_v34 = vsel %vm5816_vm10, %v3513_v2, %v9076_v55  ;;  %v7573_v36 = vcombine.low %v1784_v10, %v1791_v48  ;;  %v2328_v62 = vrot.slane %v2314_v29, %v5805_v42  ;;  %v286_v31 = vadd.f32 %v7124_v25, %v9079_v59 }
 0x233   :  { %v3964_v28 = vmax.f32 %v9077_v27, %v7555_v51  ;;  %v3739_v0 = vmax.f32 %v3104_v16, %v3515_v34  ;;  %v9080_v19 = vrot.slane %v7487_v8, 7  ;;  %v7586_v10 = vmax.f32 %v3738_v18, %v3104_v16 }
 0x234   :  { %9078 = vst [vmem:[#allocation29_spill] sm:$0xff] %v7573_v36  ;;  %v7584_v2 = vadd.f32 %v7438_v52, %v7573_v36  ;;  %v2329_v37 = vcombine.low %v2321_v49, %v2328_v62  ;;  %v9081_v58 = vmax.f32 %v7150_v56, %v7359_v44  ;;  %v634_v60 = vcombine.high %v286_v31, %v286_v31 }
 0x235   :  { %v4501_v1 = vmul.f32 %v3964_v28, %v3964_v28  ;;  %v1050_v15 = vrot.slane %v9080_v19, 2  ;;  %v7589_v29 = vmax.f32 %v3739_v0, %v7540_v57  ;;  %v641_v7 = vrot.slane %v286_v31, %v5805_v42 }
 0x236   :  { %v3965_v48 = vmax.f32 %v9081_v58, %v7576_v38  ;;  %v1430_v45 = vmax.f32 %v7193_v35, %v7393_v11  ;;  %v7599_v52 = vadd.f32 %v7456_v13, %v2329_v37  ;;  %v3966_v49 = vmax.f32 %v3894_v6, %v7586_v10  ;;  %v7612_v58 = vpop.f32.mrb[46].mxu1 }
 0x237   :  { %v9082_v55 = vmax.f32 %v7244_v23, %v7441_v39  ;;  %v648_v62 = vrot.slane %v634_v60, %v5805_v42  ;;  %v649_v18 = vcombine.high %v641_v7, %v641_v7  ;;  %v1051_v13 = vrot.slane %v641_v7, 7  ;;  %9083 = vst [vmem:[#allocation12_spill] sm:$0xff] %v7612_v58  ;;  %v5544_v60 = vpop.f32.mrb[47].mxu1 }
 0x238   :  { %v4242_v34 = vcombine.low %v3964_v28, %v3965_v48  ;;  %v4502_v27 = vmul.f32 %v3965_v48, %v3965_v48  ;;  %v4503_v35 = vmul.f32 %v3966_v49, %v3966_v49 }
 0x239   :  { %v3967_v56 = vmax.f32 %v9082_v55, %v7589_v29  ;;  %v7610_v37 = vcombine.high %v648_v62, %v648_v62  ;;  %v1054_v6 = vrot.slane %v649_v18, 7  ;;  %v1052_v28 = vsel %vm5816_vm10, %v1050_v15, %v1051_v13 }
 0x23a   :  { %v4250_v31 = vrot.slane %v4242_v34, %v5805_v42  ;;  %v4778_v19 = vcombine.low %v4501_v1, %v4502_v27  ;;  %v1053_v48 = vrot.slane %v1051_v13, 2  ;;  %v1274_v1 = vmax.f32 %v7487_v8, %v1052_v28 }
 0x23b   :  { %v4243_v0 = vcombine.low %v3966_v49, %v3967_v56  ;;  %v4504_v59 = vmul.f32 %v3967_v56, %v3967_v56  ;;  %v5287_v56 = vrot.slane %v648_v62, 9  ;;  %v1058_v16 = vrot.slane %v7610_v37, 7 }
 0x23c   :  { %v4786_v49 = vrot.slane %v4778_v19, %v5805_v42  ;;  %v7631_v60 = vmax.f32 %v1274_v1, %v641_v7 }
 0x23d   :  { %v4257_v23 = vrot.slane %v4243_v0, %v5805_v42  ;;  %v4779_v55 = vcombine.low %v4503_v35, %v4504_v59  ;;  %v1055_v0 = vsel %vm5816_vm10, %v1053_v48, %v1054_v6  ;;  %v9085_v35 = vld [vmem:[#allocation22_spill] sm:$0xff]  ;;  %v1059_v15 = vsel %vm5816_vm10, %v5287_v56, %v1058_v16 }
 0x23e   :  { %v2759_v59 = vadd.f32 %v7124_v25, %v9085_v35  ;;  %v7629_v13 = vrot.slane %v1058_v16, 2  ;;  %v1275_v19 = vmax.f32 %v641_v7, %v1055_v0  ;;  %v1502_v48 = vmax.f32 %v1430_v45, %v7631_v60 }
 0x23f   :  { %v7620_v34 = vcombine.low %v4250_v31, %v4257_v23  ;;  %v4793_v27 = vrot.slane %v4779_v55, %v5805_v42  ;;  %v1276_v23 = vmax.f32 %v648_v62, %v1059_v15  ;;  %v9086_v62 = vrot.slane %v7540_v57, 7 }
 0x240   :  { %v3107_v55 = vcombine.high %v2759_v59, %v2759_v59  ;;  %v7637_v28 = vmax.f32 %v1275_v19, %v649_v18  ;;  %v3114_v16 = vrot.slane %v2759_v59, %v5805_v42  ;;  %v9087_v18 = vmax.f32 %v7199_v61, %v7402_v50 }
 0x241   :  { %9084 = vst [vmem:[#allocation30_spill] sm:$0xff] %v7620_v34  ;;  %v7635_v8 = vadd.f32 %v7503_v40, %v7620_v34  ;;  %v4794_v31 = vcombine.low %v4786_v49, %v4793_v27  ;;  %v7647_v7 = vmax.f32 %v1276_v23, %v7610_v37  ;;  %v3516_v49 = vrot.slane %v9086_v62, 2 }
 0x242   :  { %v3121_v40 = vrot.slane %v3107_v55, %v5805_v42  ;;  %v1503_v1 = vmax.f32 %v9087_v18, %v7637_v28  ;;  %v2040_v27 = vmul.f32 %v1502_v48, %v1502_v48  ;;  %v3122_v45 = vcombine.high %v3114_v16, %v3114_v16 }
 0x243   :  { %v7644_v56 = vadd.f32 %v7510_v14, %v4794_v31  ;;  %v3517_v0 = vrot.slane %v3114_v16, 7  ;;  %v9088_v35 = vmax.f32 %v7311_v43, %v7508_v33 }
 0x244   :  { %v7664_v15 = vcombine.high %v3121_v40, %v3121_v40  ;;  %v5367_v19 = vrot.slane %v3121_v40, 9  ;;  %v1793_v31 = vcombine.low %v1502_v48, %v1503_v1  ;;  %v2041_v23 = vmul.f32 %v1503_v1, %v1503_v1  ;;  %v9089_v1 = vld [vmem:[#allocation16_spill] sm:$0xff] }
 0x245   :  { %v7662_v59 = vmax.f32 %v9088_v35, %v7647_v7  ;;  %v3518_v61 = vsel %vm5816_vm10, %v3516_v49, %v3517_v0  ;;  %v3519_v55 = vrot.slane %v3517_v0, 2  ;;  %v3520_v18 = vrot.slane %v3122_v45, 7 }
 0x246   :  { %v3524_v14 = vrot.slane %v7664_v15, 7  ;;  %v3740_v43 = vmax.f32 %v7540_v57, %v3518_v61  ;;  %v1800_v35 = vrot.slane %v1793_v31, %v5805_v42  ;;  %5298 = vst.sshfl [vmem:[%s8920_s5 + $0x78] sm:$0x33 pattern:$0x76325410] %v1793_v31  ;;  %v2330_v48 = vcombine.low %v2040_v27, %v2041_v23 }
 0x247   :  { %v7670_v62 = vmul.f32 %v7662_v59, %v7662_v59  ;;  %v3896_v49 = vmax.f32 %v7246_v22, %v7446_v53  ;;  %v291_v0 = vadd.f32 %v7124_v25, %v9089_v1  ;;  %v3521_v6 = vsel %vm5816_vm10, %v3519_v55, %v3520_v18 }
 0x248   :  { %v3525_v4 = vsel %vm5816_vm10, %v5367_v19, %v3524_v14  ;;  %v7686_v57 = vrot.slane %v3524_v14, 2  ;;  %v7688_v61 = vmax.f32 %v3740_v43, %v3114_v16  ;;  %v1973_v34 = vsel %vm1951_vm11, %v1800_v35, 0.0 }
 0x249   :  { %v2337_v27 = vrot.slane %v2330_v48, %v5805_v42  ;;  %v3741_v31 = vmax.f32 %v3114_v16, %v3521_v6  ;;  %v3742_v23 = vmax.f32 %v3121_v40, %v3525_v4  ;;  %v7693_v22 = vadd.f32 %v1973_v34, %v7584_v2 }
 0x24a   :  { %v3968_v55 = vmax.f32 %v3896_v49, %v7688_v61  ;;  %v651_v18 = vcombine.high %v291_v0, %v291_v0  ;;  %v658_v35 = vrot.slane %v291_v0, %v5805_v42  ;;  %v1433_v6 = vmax.f32 %v7317_v21, %v7519_v46 }
 0x24b   :  { %v2483_v14 = vsel %vm1951_vm11, %v2337_v27, 0.0  ;;  %v7699_v19 = vmax.f32 %v3741_v31, %v3122_v45  ;;  %v7702_v43 = vmax.f32 %v3742_v23, %v7664_v15  ;;  %v9090_v40 = vmax.f32 %v7256_v26, %v7448_v20  ;;  %v7727_v31 = vpop.f32.mrb[48].mxu0 }
 0x24c   :  { %v7706_v4 = vadd.f32 %v2483_v14, %v7599_v52  ;;  %v4505_v2 = vmul.f32 %v3968_v55, %v3968_v55  ;;  %v665_v34 = vrot.slane %v651_v18, %v5805_v42  ;;  %v9091_v48 = vmax.f32 %v7353_v9, %v7555_v51  ;;  %9092 = vst [vmem:[#allocation22_spill] sm:$0xff] %v7727_v31  ;;  %v5491_v9 = vpop.f32.mrb[49].mxu0 }
 0x24d   :  { %v3969_v45 = vmax.f32 %v9090_v40, %v7699_v19  ;;  %v666_v49 = vcombine.high %v658_v35, %v658_v35  ;;  %v1061_v0 = vrot.slane %v658_v35, 7  ;;  %v1435_v21 = vmax.f32 %v7382_v30, %v7531_v24  ;;  %v317_v36 = vpop.f32.mrb[50].mxu0  ;;  %v7742_v9 = vpop.f32.mrb[48].mxu1 }
 0x24e   :  { %v7721_v52 = vmax.f32 %v9091_v48, %v7702_v43  ;;  %v7723_v1 = vcombine.high %v665_v34, %v665_v34  ;;  %v1067_v27 = vrot.slane %v665_v34, 7  ;;  %9093 = vst [vmem:[#allocation16_spill] sm:$0xff] %v7742_v9  ;;  %v5492_v58 = vpop.f32.mrb[51].mxu0 }
 0x24f   :  { %v4259_v23 = vcombine.low %v3968_v55, %v3969_v45  ;;  %v4506_v18 = vmul.f32 %v3969_v45, %v3969_v45  ;;  %v1064_v14 = vrot.slane %v666_v49, 7  ;;  %v1062_v40 = vsel %vm5816_vm10, %v7629_v13, %v1061_v0  ;;  %v5547_v58 = vpop.f32.mrb[49].mxu1 }
 0x250   :  { %v7731_v26 = vmul.f32 %v7721_v52, %v7721_v52  ;;  %v1063_v48 = vrot.slane %v1061_v0, 2  ;;  %v1069_v16 = vrot.slane %v1067_v27, 2  ;;  %v8949_v25 = vrot.slane %v7723_v1, 7  ;;  %v7753_v0 = vld [vmem:[%s8919_s2] ss:$0 sm:$0xff] }
 0x251   :  { %v4266_v30 = vrot.slane %v4259_v23, %v5805_v42  ;;  %5402 = vst.sshfl [vmem:[%s8920_s5 + $0x138] sm:$0x33 pattern:$0x76325410] %v4259_v23  ;;  %v4795_v55 = vcombine.low %v4505_v2, %v4506_v18  ;;  %v1066_v45 = vrot.slane %v1064_v14, 2  ;;  %v1277_v31 = vmax.f32 %v7610_v37, %v1062_v40  ;;  %v2790_v40 = vpop.f32.mrb[50].mxu1 }
 0x252   :  { %v1065_v13 = vsel %vm5816_vm10, %v1063_v48, %v1064_v14  ;;  %v1071_v36 = vsel %vm5816_vm10, %v1069_v16, %v8949_v25  ;;  %v2764_v2 = vadd.f32 %v7753_v0, %v7042_v5  ;;  %v3899_v37 = vmax.f32 %v7359_v44, %v7576_v38  ;;  %v5548_v5 = vpop.f32.mrb[51].mxu1 }
 0x253   :  { %v4438_v23 = vsel %vm1951_vm11, %v4266_v30, 0.0  ;;  %v4802_v18 = vrot.slane %v4795_v55, %v5805_v42  ;;  %v1068_v14 = vsel %vm5816_vm10, %v1066_v45, %v1067_v27  ;;  %v1278_v16 = vmax.f32 %v658_v35, %v1065_v13 }
 0x254   :  { %v7764_v48 = vadd.f32 %v4438_v23, %v7635_v8  ;;  %v1279_v25 = vmax.f32 %v666_v49, %v1068_v14  ;;  %v1280_v9 = vmax.f32 %v665_v34, %v1071_v36  ;;  %v7766_v3 = vmax.f32 %v1277_v31, %v658_v35 }
 0x255   :  { %v4948_v44 = vsel %vm1951_vm11, %v4802_v18, 0.0  ;;  %v7769_v58 = vmax.f32 %v1278_v16, %v666_v49  ;;  %v3124_v30 = vcombine.high %v2764_v2, %v2764_v2  ;;  %v3131_v55 = vrot.slane %v2764_v2, %v5805_v42 }
 0x256   :  { %v7773_v12 = vadd.f32 %v4948_v44, %v7644_v56  ;;  %v7775_v27 = vmax.f32 %v1279_v25, %v665_v34  ;;  %v7778_v8 = vmax.f32 %v1280_v9, %v7723_v1  ;;  %v1505_v31 = vmax.f32 %v1433_v6, %v7766_v3 }
 0x257   :  { %v9094_v49 = vmax.f32 %v7324_v54, %v7521_v41  ;;  %v3138_v13 = vrot.slane %v3124_v30, %v5805_v42  ;;  %v3139_v36 = vcombine.high %v3131_v55, %v3131_v55  ;;  %v3527_v34 = vrot.slane %v3131_v55, 7 }
 0x258   :  { %v1507_v25 = vmax.f32 %v1435_v21, %v7775_v27  ;;  %v3901_v9 = vmax.f32 %v7441_v39, %v7589_v29  ;;  %v1801_v2 = vcombine.low %v7662_v59, %v1505_v31  ;;  %v2043_v6 = vmul.f32 %v1505_v31, %v1505_v31 }
 0x259   :  { %v1506_v45 = vmax.f32 %v9094_v49, %v7769_v58  ;;  %v7794_v18 = vcombine.high %v3138_v13, %v3138_v13  ;;  %v3528_v16 = vsel %vm5816_vm10, %v7686_v57, %v3527_v34  ;;  %v3529_v40 = vrot.slane %v3527_v34, 2 }
 0x25a   :  { %v2045_v14 = vmul.f32 %v1507_v25, %v1507_v25  ;;  %v1809_v5 = vrot.slane %v1801_v2, %v5805_v42  ;;  %v2338_v21 = vcombine.low %v7670_v62, %v2043_v6  ;;  %v3530_v44 = vrot.slane %v3139_v36, 7 }
 0x25b   :  { %v2044_v23 = vmul.f32 %v1506_v45, %v1506_v45  ;;  %v1802_v54 = vcombine.low %v1506_v45, %v1507_v25  ;;  %v3533_v30 = vrot.slane %v3138_v13, 7  ;;  %v3536_v31 = vrot.slane %v7794_v18, 7 }
 0x25c   :  { %v3743_v49 = vmax.f32 %v7664_v15, %v3528_v16  ;;  %v2346_v45 = vrot.slane %v2338_v21, %v5805_v42  ;;  %v3531_v25 = vsel %vm5816_vm10, %v3529_v40, %v3530_v44  ;;  %v3532_v57 = vrot.slane %v3530_v44, 2 }
 0x25d   :  { %v1816_v39 = vrot.slane %v1802_v54, %v5805_v42  ;;  %v2339_v59 = vcombine.low %v2044_v23, %v2045_v14  ;;  %v3535_v34 = vrot.slane %v3533_v30, 2  ;;  %v3744_v2 = vmax.f32 %v3131_v55, %v3531_v25  ;;  %v9096_v54 = vld [vmem:[#allocation17_spill] sm:$0xff] }
 0x25e   :  { %v7810_v6 = vmax.f32 %v3743_v49, %v3131_v55  ;;  %v3534_v23 = vsel %vm5816_vm10, %v3532_v57, %v3533_v30  ;;  %v294_v14 = vadd.f32 %v7753_v0, %v9096_v54  ;;  %v9097_v16 = vrot.slane %v7723_v1, 7 }
 0x25f   :  { %v7807_v56 = vcombine.low %v1809_v5, %v1816_v39  ;;  %v2353_v62 = vrot.slane %v2339_v59, %v5805_v42  ;;  %v3537_v15 = vsel %vm5816_vm10, %v3535_v34, %v3536_v31  ;;  %v3745_v21 = vmax.f32 %v3139_v36, %v3534_v23 }
 0x260   :  { %v1072_v40 = vrot.slane %v9097_v16, 2  ;;  %v3746_v44 = vmax.f32 %v3138_v13, %v3537_v15  ;;  %v7822_v39 = vmax.f32 %v3744_v2, %v3139_v36  ;;  %v3971_v30 = vmax.f32 %v3899_v37, %v7810_v6 }
 0x261   :  { %9095 = vst [vmem:[#allocation31_spill] sm:$0xff] %v7807_v56  ;;  %v2354_v5 = vcombine.low %v2346_v45, %v2353_v62  ;;  %v668_v59 = vcombine.high %v294_v14, %v294_v14  ;;  %v675_v49 = vrot.slane %v294_v14, %v5805_v42  ;;  %v7828_v25 = vmax.f32 %v3745_v21, %v3138_v13 }
 0x262   :  { %v7831_v57 = vmax.f32 %v3746_v44, %v7794_v18  ;;  %v9098_v45 = vmax.f32 %v7362_v17, %v7586_v10  ;;  %v1437_v36 = vmax.f32 %v7402_v50, %v7637_v28  ;;  %v4267_v62 = vcombine.low %v7721_v52, %v3971_v30 }
 0x263   :  { %v4508_v2 = vmul.f32 %v3971_v30, %v3971_v30  ;;  %v682_v37 = vrot.slane %v668_v59, %v5805_v42  ;;  %v683_v23 = vcombine.high %v675_v49, %v675_v49  ;;  %v3973_v15 = vmax.f32 %v3901_v9, %v7828_v25 }
 0x264   :  { %v3972_v34 = vmax.f32 %v9098_v45, %v7822_v39  ;;  %v1073_v14 = vrot.slane %v675_v49, 7  ;;  %v4275_v16 = vrot.slane %v4267_v62, %v5805_v42  ;;  %v9099_v62 = vmax.f32 %v7393_v11, %v7631_v60 }
 0x265   :  { %v4803_v17 = vcombine.low %v7731_v26, %v4508_v2  ;;  %v7846_v21 = vcombine.high %v682_v37, %v682_v37  ;;  %v5288_v50 = vrot.slane %v683_v23, 9  ;;  %v4510_v52 = vmul.f32 %v3973_v15, %v3973_v15 }
 0x266   :  { %v4509_v54 = vmul.f32 %v3972_v34, %v3972_v34  ;;  %v4268_v44 = vcombine.low %v3972_v34, %v3973_v15  ;;  %v1074_v30 = vsel %vm5816_vm10, %v1072_v40, %v1073_v14  ;;  %v1077_v59 = vrot.slane %v682_v37, 7 }
 0x267   :  { %v4811_v45 = vrot.slane %v4803_v17, %v5805_v42  ;;  %v1080_v13 = vrot.slane %v7846_v21, 7  ;;  %v1281_v9 = vmax.f32 %v7723_v1, %v1074_v30  ;;  %v1508_v26 = vmax.f32 %v9099_v62, %v7778_v8 }
 0x268   :  { %v4282_v2 = vrot.slane %v4268_v44, %v5805_v42  ;;  %v4804_v55 = vcombine.low %v4509_v54, %v4510_v52  ;;  %v1078_v34 = vsel %vm5816_vm10, %v5288_v50, %v1077_v59  ;;  %v1079_v15 = vrot.slane %v1077_v59, 2 }
 0x269   :  { %v1282_v40 = vmax.f32 %v683_v23, %v1078_v34  ;;  %v7860_v14 = vmax.f32 %v1281_v9, %v675_v49  ;;  %v1975_v17 = vadd.f32 %v7693_v22, %v7807_v56  ;;  %v2046_v35 = vmul.f32 %v1508_v26, %v1508_v26  ;;  %v9101_v22 = vld [vmem:[#allocation24_spill] sm:$0xff] }
 0x26a   :  { %v7864_v1 = vcombine.low %v4275_v16, %v4282_v2  ;;  %v4818_v30 = vrot.slane %v4804_v55, %v5805_v42  ;;  %v1081_v11 = vsel %vm5816_vm10, %v1079_v15, %v1080_v13  ;;  %v2485_v54 = vadd.f32 %v7706_v4, %v2354_v5 }
 0x26b   :  { %v1283_v44 = vmax.f32 %v682_v37, %v1081_v11  ;;  %v7870_v52 = vmax.f32 %v1282_v40, %v682_v37  ;;  %v1509_v23 = vmax.f32 %v1437_v36, %v7860_v14  ;;  %v2767_v16 = vadd.f32 %v7753_v0, %v9101_v22 }
 0x26c   :  { %9100 = vst [vmem:[#allocation17_spill] sm:$0xff] %v7864_v1  ;;  %v4819_v50 = vcombine.low %v4811_v45, %v4818_v30  ;;  %v3538_v55 = vrot.slane %v3536_v31, 2  ;;  %v3903_v59 = vmax.f32 %v7448_v20, %v7699_v19  ;;  %v9102_v5 = vmax.f32 %v7508_v33, %v7647_v7 }
 0x26d   :  { %v7882_v4 = vmax.f32 %v1283_v44, %v7846_v21  ;;  %v1818_v9 = vcombine.low %v1508_v26, %v1509_v23  ;;  %v2047_v36 = vmul.f32 %v1509_v23, %v1509_v23  ;;  %v3141_v45 = vcombine.high %v2767_v16, %v2767_v16 }
 0x26e   :  { %v1510_v37 = vmax.f32 %v9102_v5, %v7870_v52  ;;  %v3148_v62 = vrot.slane %v2767_v16, %v5805_v42  ;;  %v9103_v31 = vmax.f32 %v7446_v53, %v7688_v61  ;;  %v7895_v20 = vadd.f32 %v7764_v48, %v7864_v1 }
 0x26f   :  { %v9104_v34 = vmax.f32 %v7519_v46, %v7766_v3  ;;  %v1825_v26 = vrot.slane %v1818_v9, %v5805_v42  ;;  %5299 = vst.sshfl [vmem:[%s8920_s5 + $0x88] sm:$0x33 pattern:$0x76325410] %v1818_v9  ;;  %v2355_v40 = vcombine.low %v2046_v35, %v2047_v36  ;;  %v3155_v53 = vrot.slane %v3141_v45, %v5805_v42 }
 0x270   :  { %v3974_v2 = vmax.f32 %v9103_v31, %v7831_v57  ;;  %v2048_v15 = vmul.f32 %v1510_v37, %v1510_v37  ;;  %v3156_v30 = vcombine.high %v3148_v62, %v3148_v62  ;;  %v3539_v11 = vrot.slane %v3148_v62, 7 }
 0x271   :  { %v1511_v33 = vmax.f32 %v9104_v34, %v7882_v4  ;;  %v1976_v23 = vsel %vm1951_vm11, %v1825_v26, 0.0  ;;  %v2362_v46 = vrot.slane %v2355_v40, %v5805_v42  ;;  %v7910_v5 = vcombine.high %v3155_v53, %v3155_v53 }
 0x272   :  { %v4511_v44 = vmul.f32 %v3974_v2, %v3974_v2  ;;  %v7908_v16 = vadd.f32 %v1976_v23, %v1975_v17  ;;  %v3540_v9 = vsel %vm5816_vm10, %v3538_v55, %v3539_v11  ;;  %v5368_v31 = vrot.slane %v3156_v30, 9 }
 0x273   :  { %v1826_v48 = vcombine.low %v1510_v37, %v1511_v33  ;;  %v2049_v22 = vmul.f32 %v1511_v33, %v1511_v33  ;;  %v2486_v45 = vsel %vm1951_vm11, %v2362_v46, 0.0  ;;  %v3543_v37 = vrot.slane %v3155_v53, 7 }
 0x274   :  { %v7918_v34 = vadd.f32 %v2486_v45, %v2485_v54  ;;  %v8950_v33 = vrot.slane %v7910_v5, 7  ;;  %v3747_v17 = vmax.f32 %v7794_v18, %v3540_v9  ;;  %v4950_v26 = vadd.f32 %v7773_v12, %v4819_v50 }
 0x275   :  { %v7915_v35 = vrot.slane %v1826_v48, %v5805_v42  ;;  %v2363_v36 = vcombine.low %v2048_v15, %v2049_v22  ;;  %v3544_v55 = vsel %vm5816_vm10, %v5368_v31, %v3543_v37  ;;  %v3545_v11 = vrot.slane %v3543_v37, 2 }
 0x276   :  { %v299_v15 = vadd.f32 %v7753_v0, %v7252_v47  ;;  %v3748_v48 = vmax.f32 %v3156_v30, %v3544_v55  ;;  %v7930_v23 = vmax.f32 %v3747_v17, %v3148_v62  ;;  %v1082_v54 = vrot.slane %v1080_v13, 2 }
 0x277   :  { %v7924_v40 = vrot.slane %v2363_v36, %v5805_v42  ;;  %v1440_v22 = vmax.f32 %v7521_v41, %v7769_v58  ;;  %v3547_v12 = vsel %vm5816_vm10, %v3545_v11, %v8950_v33  ;;  %v1442_v46 = vmax.f32 %v7631_v60, %v7778_v8  ;;  %v9105_v36 = vld [vmem:[#allocation26_spill] sm:$0xff] }
 0x278   :  { %v685_v18 = vcombine.high %v299_v15, %v299_v15  ;;  %v692_v50 = vrot.slane %v299_v15, %v5805_v42  ;;  %v3749_v9 = vmax.f32 %v3155_v53, %v3547_v12  ;;  %v7941_v47 = vmax.f32 %v3748_v48, %v3155_v53 }
 0x279   :  { %v3975_v62 = vmax.f32 %v3903_v59, %v7930_v23  ;;  %v2772_v45 = vadd.f32 %v7753_v0, %v9105_v36  ;;  %v9106_v60 = vmax.f32 %v7555_v51, %v7702_v43  ;;  %v9107_v12 = vmax.f32 %v7576_v38, %v7810_v6 }
 0x27a   :  { %v699_v41 = vrot.slane %v685_v18, %v5805_v42  ;;  %v700_v30 = vcombine.high %v692_v50, %v692_v50  ;;  %v1083_v31 = vrot.slane %v692_v50, 7  ;;  %v7950_v37 = vmax.f32 %v3749_v9, %v7910_v5 }
 0x27b   :  { %v3976_v53 = vmax.f32 %v9106_v60, %v7941_v47  ;;  %v4284_v17 = vcombine.low %v3974_v2, %v3975_v62  ;;  %v4512_v55 = vmul.f32 %v3975_v62, %v3975_v62 }
 0x27c   :  { %v701_v11 = vcombine.high %v699_v41, %v699_v41  ;;  %v1084_v59 = vsel %vm5816_vm10, %v1082_v54, %v1083_v31  ;;  %v1085_v15 = vrot.slane %v1083_v31, 2  ;;  %v1086_v48 = vrot.slane %v700_v30, 7 }
 0x27d   :  { %v3977_v18 = vmax.f32 %v9107_v12, %v7950_v37  ;;  %v4291_v9 = vrot.slane %v4284_v17, %v5805_v42  ;;  %5403 = vst.sshfl [vmem:[%s8920_s5 + $0x148] sm:$0x33 pattern:$0x76325410] %v4284_v17  ;;  %v4513_v51 = vmul.f32 %v3976_v53, %v3976_v53  ;;  %v4820_v2 = vcombine.low %v4511_v44, %v4512_v55 }
 0x27e   :  { %v1087_v62 = vsel %vm5816_vm10, %v1085_v15, %v1086_v48  ;;  %v1088_v36 = vrot.slane %v1086_v48, 2  ;;  %v1089_v54 = vrot.slane %v699_v41, 7  ;;  %v1092_v31 = vrot.slane %v701_v11, 7 }
 0x27f   :  { %v4292_v60 = vcombine.low %v3976_v53, %v3977_v18  ;;  %v4441_v13 = vsel %vm1951_vm11, %v4291_v9, 0.0  ;;  %v4514_v49 = vmul.f32 %v3977_v18, %v3977_v18  ;;  %v4827_v38 = vrot.slane %v4820_v2, %v5805_v42 }
 0x280   :  { %v7971_v12 = vadd.f32 %v4441_v13, %v7895_v20  ;;  %v1090_v17 = vsel %vm5816_vm10, %v1088_v36, %v1089_v54  ;;  %v1091_v33 = vrot.slane %v1089_v54, 2  ;;  %v1284_v44 = vmax.f32 %v7846_v21, %v1084_v59 }
 0x281   :  { %v7977_v55 = vrot.slane %v4292_v60, %v5805_v42  ;;  %v4828_v15 = vcombine.low %v4513_v51, %v4514_v49  ;;  %v4951_v53 = vsel %vm1951_vm11, %v4827_v38, 0.0  ;;  %v1285_v48 = vmax.f32 %v692_v50, %v1087_v62 }
 0x282   :  { %v7980_v9 = vadd.f32 %v4951_v53, %v4950_v26  ;;  %v1093_v18 = vsel %vm5816_vm10, %v1091_v33, %v1092_v31  ;;  %v1286_v20 = vmax.f32 %v700_v30, %v1090_v17  ;;  %v7984_v13 = vmax.f32 %v1284_v44, %v692_v50 }
 0x283   :  { %v7987_v2 = vrot.slane %v4828_v15, %v5805_v42  ;;  %v1287_v36 = vmax.f32 %v699_v41, %v1093_v18  ;;  %v7989_v21 = vmax.f32 %v1285_v48, %v700_v30  ;;  %v3158_v59 = vcombine.high %v2772_v45, %v2772_v45 }
 0x284   :  { %v7991_v54 = vmax.f32 %v1286_v20, %v699_v41  ;;  %v1512_v26 = vmax.f32 %v1440_v22, %v7984_v13  ;;  %v3165_v51 = vrot.slane %v2772_v45, %v5805_v42  ;;  %v9108_v50 = vmax.f32 %v7531_v24, %v7775_v27 }
 0x285   :  { %v7997_v33 = vmax.f32 %v1287_v36, %v701_v11  ;;  %v3172_v30 = vrot.slane %v3158_v59, %v5805_v42  ;;  %v9109_v31 = vrot.slane %v7910_v5, 7  ;;  %v9110_v22 = vmax.f32 %v7637_v28, %v7860_v14 }
 0x286   :  { %v1513_v62 = vmax.f32 %v9108_v50, %v7989_v21  ;;  %v1514_v60 = vmax.f32 %v1442_v46, %v7991_v54  ;;  %v2050_v38 = vmul.f32 %v1512_v26, %v1512_v26  ;;  %v3173_v17 = vcombine.high %v3165_v51, %v3165_v51 }
 0x287   :  { %v3548_v41 = vrot.slane %v9109_v31, 2  ;;  %v3549_v44 = vrot.slane %v3165_v51, 7  ;;  %v1515_v45 = vmax.f32 %v9110_v22, %v7997_v33  ;;  %v3174_v53 = vcombine.high %v3172_v30, %v3172_v30 }
 0x288   :  { %v1827_v11 = vcombine.low %v1512_v26, %v1513_v62  ;;  %v2051_v15 = vmul.f32 %v1513_v62, %v1513_v62  ;;  %v2052_v24 = vmul.f32 %v1514_v60, %v1514_v60  ;;  %v3552_v20 = vrot.slane %v3173_v17, 7 }
 0x289   :  { %v3550_v48 = vsel %vm5816_vm10, %v3548_v41, %v3549_v44  ;;  %v3551_v18 = vrot.slane %v3549_v44, 2  ;;  %v8014_v46 = vcombine.low %v1514_v60, %v1515_v45  ;;  %v2053_v59 = vmul.f32 %v1515_v45, %v1515_v45 }
 0x28a   :  { %v1841_v36 = vrot.slane %v1827_v11, %v5805_v42  ;;  %v2364_v50 = vcombine.low %v2050_v38, %v2051_v15  ;;  %v3554_v28 = vrot.slane %v3552_v20, 2  ;;  %v3555_v22 = vrot.slane %v3172_v30, 7 }
 0x28b   :  { %v3553_v31 = vsel %vm5816_vm10, %v3551_v18, %v3552_v20  ;;  %v3558_v26 = vrot.slane %v3174_v53, 7  ;;  %5300 = vst.sshfl [vmem:[%s8920_s5 + $0x98] sm:$0x33 pattern:$0x76325410] %v8014_v46  ;;  %v2380_v38 = vcombine.low %v2052_v24, %v2053_v59  ;;  %v3750_v11 = vmax.f32 %v7910_v5, %v3550_v48 }
 0x28c   :  { %v8019_v62 = vcombine.low %v7915_v35, %v1841_v36  ;;  %v2378_v60 = vrot.slane %v2364_v50, %v5805_v42  ;;  %v3556_v44 = vsel %vm5816_vm10, %v3554_v28, %v3555_v22  ;;  %v3557_v45 = vrot.slane %v3555_v22, 2 }
 0x28d   :  { %v3751_v15 = vmax.f32 %v3165_v51, %v3553_v31  ;;  %v8037_v20 = vrot.slane %v2380_v38, %v5805_v42  ;;  %v3752_v36 = vmax.f32 %v3173_v17, %v3556_v44  ;;  %v8041_v59 = vmax.f32 %v3750_v11, %v3165_v51 }
 0x28e   :  { %9111 = vst [vmem:[#allocation24_spill] sm:$0xff] %v8019_v62  ;;  %v8033_v35 = vadd.f32 %v7908_v16, %v8019_v62  ;;  %v2379_v18 = vcombine.low %v7924_v40, %v2378_v60  ;;  %v3559_v24 = vsel %vm5816_vm10, %v3557_v45, %v3558_v26  ;;  %v3906_v5 = vmax.f32 %v7586_v10, %v7822_v39  ;;  %v9113_v10 = vld [vmem:[#allocation5_spill] sm:$0xff] }
 0x28f   :  { %v8043_v50 = vmax.f32 %v3751_v15, %v3173_v17  ;;  %v3753_v16 = vmax.f32 %v3172_v30, %v3559_v24  ;;  %v8050_v31 = vmax.f32 %v3752_v36, %v3172_v30  ;;  %v3908_v40 = vmax.f32 %v7688_v61, %v7831_v57  ;;  %v9115_v36 = vld [vmem:[#allocation11_spill] sm:$0xff] }
 0x290   :  { %v8048_v48 = vadd.f32 %v7918_v34, %v2379_v18  ;;  %v3978_v51 = vmax.f32 %v3906_v5, %v8041_v59  ;;  %v9112_v17 = vmax.f32 %v7589_v29, %v7828_v25  ;;  %v302_v34 = vadd.f32 %v7753_v0, %v9113_v10 }
 0x291   :  { %v8063_v26 = vmax.f32 %v3753_v16, %v3174_v53  ;;  %v3980_v30 = vmax.f32 %v3908_v40, %v8050_v31  ;;  %v1444_v61 = vmax.f32 %v7647_v7, %v7870_v52  ;;  %v1445_v60 = vmax.f32 %v7766_v3, %v7882_v4 }
 0x292   :  { %v3979_v22 = vmax.f32 %v9112_v17, %v8043_v50  ;;  %v4515_v44 = vmul.f32 %v3978_v51, %v3978_v51  ;;  %v702_v11 = vcombine.high %v302_v34, %v302_v34  ;;  %v9114_v29 = vmax.f32 %v7699_v19, %v7930_v23 }
 0x293   :  { %v4517_v18 = vmul.f32 %v3980_v30, %v3980_v30  ;;  %v709_v53 = vrot.slane %v302_v34, %v5805_v42  ;;  %v2775_v24 = vadd.f32 %v7753_v0, %v9115_v36 }
 0x294   :  { %v4293_v38 = vcombine.low %v3978_v51, %v3979_v22  ;;  %v4516_v45 = vmul.f32 %v3979_v22, %v3979_v22  ;;  %v3981_v15 = vmax.f32 %v9114_v29, %v8063_v26  ;;  %v716_v3 = vrot.slane %v702_v11, %v5805_v42 }
 0x295   :  { %v717_v17 = vcombine.high %v709_v53, %v709_v53  ;;  %v5289_v19 = vrot.slane %v709_v53, 9 }
 0x296   :  { %v4307_v7 = vrot.slane %v4293_v38, %v5805_v42  ;;  %v4829_v5 = vcombine.low %v4515_v44, %v4516_v45  ;;  %v8081_v40 = vcombine.low %v3980_v30, %v3981_v15  ;;  %v4518_v51 = vmul.f32 %v3981_v15, %v3981_v15 }
 0x297   :  { %v8087_v34 = vcombine.high %v716_v3, %v716_v3  ;;  %v1099_v29 = vrot.slane %v716_v3, 7  ;;  %v1096_v44 = vrot.slane %v717_v17, 7  ;;  %v3175_v45 = vcombine.high %v2775_v24, %v2775_v24 }
 0x298   :  { %v8084_v22 = vcombine.low %v7977_v55, %v4307_v7  ;;  %v4843_v10 = vrot.slane %v4829_v5, %v5805_v42  ;;  %5404 = vst.sshfl [vmem:[%s8920_s5 + $0x158] sm:$0x33 pattern:$0x76325410] %v8081_v40  ;;  %v4845_v30 = vcombine.low %v4517_v18, %v4518_v51  ;;  %v3182_v18 = vrot.slane %v2775_v24, %v5805_v42 }
 0x299   :  { %v1101_v15 = vrot.slane %v1099_v29, 2  ;;  %v1102_v36 = vrot.slane %v8087_v34, 7  ;;  %v1097_v5 = vsel %vm5816_vm10, %v5289_v19, %v1096_v44  ;;  %v1098_v38 = vrot.slane %v1096_v44, 2 }
 0x29a   :  { %9116 = vst [vmem:[#allocation26_spill] sm:$0xff] %v8084_v22  ;;  %v8097_v55 = vadd.f32 %v7971_v12, %v8084_v22  ;;  %v4844_v11 = vcombine.low %v7987_v2, %v4843_v10  ;;  %v8102_v7 = vrot.slane %v4845_v30, %v5805_v42  ;;  %v1288_v28 = vmax.f32 %v709_v53, %v1097_v5 }
 0x29b   :  { %v1103_v12 = vsel %vm5816_vm10, %v1101_v15, %v1102_v36  ;;  %v3189_v2 = vrot.slane %v3175_v45, %v5805_v42  ;;  %v1100_v10 = vsel %vm5816_vm10, %v1098_v38, %v1099_v29  ;;  %v3190_v41 = vcombine.high %v3182_v18, %v3182_v18 }
 0x29c   :  { %v8108_v51 = vadd.f32 %v7980_v9, %v4844_v11  ;;  %v1290_v30 = vmax.f32 %v716_v3, %v1103_v12  ;;  %v5369_v49 = vrot.slane %v3182_v18, 9  ;;  %v1289_v16 = vmax.f32 %v717_v17, %v1100_v10 }
 0x29d   :  { %v8115_v19 = vmax.f32 %v1288_v28, %v717_v17  ;;  %v8117_v44 = vcombine.high %v3189_v2, %v3189_v2  ;;  %v3565_v24 = vrot.slane %v3189_v2, 7  ;;  %v3562_v11 = vrot.slane %v3190_v41, 7 }
 0x29e   :  { %v8120_v9 = vmax.f32 %v1290_v30, %v8087_v34  ;;  %v3911_v53 = vmax.f32 %v7810_v6, %v7950_v37  ;;  %v307_v45 = vadd.f32 %v7753_v0, %v7454_v32  ;;  %v8126_v29 = vmax.f32 %v1289_v16, %v716_v3 }
 0x29f   :  { %v1516_v28 = vmax.f32 %v1444_v61, %v8115_v19  ;;  %v3567_v17 = vrot.slane %v3565_v24, 2  ;;  %v3563_v15 = vsel %vm5816_vm10, %v5369_v49, %v3562_v11  ;;  %v3564_v5 = vrot.slane %v3562_v11, 2 }
 0x2a0   :  { %v3568_v12 = vrot.slane %v8117_v44, 7  ;;  %v719_v10 = vcombine.high %v307_v45, %v307_v45  ;;  %v1517_v32 = vmax.f32 %v1445_v60, %v8126_v29  ;;  %v3754_v16 = vmax.f32 %v3182_v18, %v3563_v15 }
 0x2a1   :  { %v2054_v3 = vmul.f32 %v1516_v28, %v1516_v28  ;;  %v3566_v30 = vsel %vm5816_vm10, %v3564_v5, %v3565_v24  ;;  %v726_v49 = vrot.slane %v307_v45, %v5805_v42  ;;  %v1104_v15 = vrot.slane %v1102_v36, 2 }
 0x2a2   :  { %v3569_v61 = vsel %vm5816_vm10, %v3567_v17, %v3568_v12  ;;  %v733_v11 = vrot.slane %v719_v10, %v5805_v42  ;;  %v1851_v38 = vcombine.low %v1516_v28, %v1517_v32  ;;  %v2055_v22 = vmul.f32 %v1517_v32, %v1517_v32 }
 0x2a3   :  { %v3755_v1 = vmax.f32 %v3190_v41, %v3566_v30  ;;  %v3756_v6 = vmax.f32 %v3189_v2, %v3569_v61  ;;  %v8145_v62 = vmax.f32 %v3754_v16, %v3190_v41  ;;  %v734_v60 = vcombine.high %v726_v49, %v726_v49 }
 0x2a4   :  { %v8147_v18 = vcombine.high %v733_v11, %v733_v11  ;;  %v1859_v24 = vrot.slane %v1851_v38, %v5805_v42  ;;  %v2388_v5 = vcombine.low %v2054_v3, %v2055_v22  ;;  %v9117_v41 = vmax.f32 %v7702_v43, %v7941_v47 }
 0x2a5   :  { %v8150_v56 = vmax.f32 %v3755_v1, %v3189_v2  ;;  %v8153_v17 = vmax.f32 %v3756_v6, %v8117_v44  ;;  %v1105_v10 = vrot.slane %v726_v49, 7  ;;  %v1108_v32 = vrot.slane %v734_v60, 7 }
 0x2a6   :  { %v3982_v28 = vmax.f32 %v9117_v41, %v8145_v62  ;;  %v8162_v36 = vrot.slane %v2388_v5, %v5805_v42  ;;  %v1111_v2 = vrot.slane %v733_v11, 7 }
 0x2a7   :  { %v3983_v22 = vmax.f32 %v3911_v53, %v8150_v56  ;;  %v1106_v6 = vsel %vm5816_vm10, %v1104_v15, %v1105_v10  ;;  %v1107_v3 = vrot.slane %v1105_v10, 2  ;;  %v1110_v16 = vrot.slane %v1108_v32, 2 }
 0x2a8   :  { %v4519_v38 = vmul.f32 %v3982_v28, %v3982_v28  ;;  %v1291_v41 = vmax.f32 %v8087_v34, %v1106_v6  ;;  %v1447_v53 = vmax.f32 %v7775_v27, %v7989_v21  ;;  %v1448_v15 = vmax.f32 %v7778_v8, %v7991_v54 }
 0x2a9   :  { %v4317_v30 = vcombine.low %v3982_v28, %v3983_v22  ;;  %v4520_v43 = vmul.f32 %v3983_v22, %v3983_v22  ;;  %v1109_v5 = vsel %vm5816_vm10, %v1107_v3, %v1108_v32  ;;  %v1112_v1 = vsel %vm5816_vm10, %v1110_v16, %v1111_v2 }
 0x2aa   :  { %v1292_v22 = vmax.f32 %v726_v49, %v1109_v5  ;;  %v1293_v45 = vmax.f32 %v734_v60, %v1112_v1  ;;  %v8182_v61 = vmax.f32 %v1291_v41, %v726_v49  ;;  %v1449_v34 = vmax.f32 %v7860_v14, %v7997_v33 }
 0x2ab   :  { %v8180_v10 = vrot.slane %v4317_v30, %v5805_v42  ;;  %v4853_v28 = vcombine.low %v4519_v38, %v4520_v43  ;;  %v9118_v32 = vmax.f32 %v7769_v58, %v7984_v13  ;;  %v9119_v27 = vrot.slane %v8014_v46, %v5805_v42  ;;  %v9120_v43 = vld [vmem:[#allocation21_spill] sm:$0xff] }
 0x2ac   :  { %v8197_v38 = vmax.f32 %v1292_v22, %v734_v60  ;;  %v8199_v49 = vmax.f32 %v1293_v45, %v733_v11  ;;  %v1453_v14 = vmax.f32 %v7989_v21, %v8182_v61  ;;  %v1519_v58 = vmax.f32 %v1447_v53, %v8182_v61 }
 0x2ad   :  { %v1518_v2 = vmax.f32 %v9118_v32, %v8120_v9  ;;  %v1979_v8 = vsel %vm1951_vm11, %v9119_v27, 0.0  ;;  %v8195_v6 = vrot.slane %v4853_v28, %v5805_v42  ;;  %v2489_v46 = vsel %vm1951_vm11, %v8037_v20, 0.0 }
 0x2ae   :  { %v1980_v1 = vadd.f32 %v1979_v8, %v8033_v35  ;;  %v1455_v16 = vmax.f32 %v7997_v33, %v8199_v49  ;;  %v1520_v30 = vmax.f32 %v1448_v15, %v8197_v38  ;;  %v1521_v60 = vmax.f32 %v1449_v34, %v8199_v49 }
 0x2af   :  { %v2056_v3 = vmul.f32 %v1518_v2, %v1518_v2  ;;  %v2490_v11 = vadd.f32 %v2489_v46, %v8048_v48  ;;  %v1852_v45 = vcombine.low %v1518_v2, %v1519_v58  ;;  %v2057_v35 = vmul.f32 %v1519_v58, %v1519_v58 }
 0x2b0   :  { %v2780_v41 = vadd.f32 %v7753_v0, %v9120_v43  ;;  %v3570_v5 = vrot.slane %v3568_v12, 2  ;;  %v1868_v53 = vcombine.low %v1520_v30, %v1521_v60  ;;  %v2058_v28 = vmul.f32 %v1520_v30, %v1520_v30 }
 0x2b1   :  { %v2059_v20 = vmul.f32 %v1521_v60, %v1521_v60  ;;  %v3913_v22 = vmax.f32 %v7828_v25, %v8043_v50  ;;  %v1866_v15 = vrot.slane %v1852_v45, %v5805_v42  ;;  %v2389_v32 = vcombine.low %v2056_v3, %v2057_v35 }
 0x2b2   :  { %v3192_v34 = vcombine.high %v2780_v41, %v2780_v41  ;;  %v3199_v48 = vrot.slane %v2780_v41, %v5805_v42  ;;  %v1875_v2 = vrot.slane %v1868_v53, %v5805_v42  ;;  %5301 = vst.sshfl [vmem:[%s8920_s5 + $0xa8] sm:$0x33 pattern:$0x76325410] %v1868_v53  ;;  %v3914_v12 = vmax.f32 %v7831_v57, %v8050_v31 }
 0x2b3   :  { %v2405_v27 = vcombine.low %v2058_v28, %v2059_v20  ;;  %v3915_v8 = vmax.f32 %v7930_v23, %v8063_v26  ;;  %v8228_v25 = vcombine.low %v1859_v24, %v1866_v15  ;;  %v2403_v58 = vrot.slane %v2389_v32, %v5805_v42 }
 0x2b4   :  { %v3206_v3 = vrot.slane %v3192_v34, %v5805_v42  ;;  %v3207_v46 = vcombine.high %v3199_v48, %v3199_v48  ;;  %v1982_v30 = vsel %vm1951_vm11, %v1875_v2, 0.0  ;;  %v3571_v45 = vrot.slane %v3199_v48, 7 }
 0x2b5   :  { %v2412_v60 = vrot.slane %v2405_v27, %v5805_v42  ;;  %v9121_v35 = vmax.f32 %v7822_v39, %v8041_v59  ;;  %v1981_v43 = vadd.f32 %v1980_v1, %v8228_v25  ;;  %v2404_v23 = vcombine.low %v8162_v36, %v2403_v58 }
 0x2b6   :  { %v8240_v24 = vcombine.high %v3206_v3, %v3206_v3  ;;  %v3574_v41 = vrot.slane %v3207_v46, 7  ;;  %v3572_v28 = vsel %vm5816_vm10, %v3570_v5, %v3571_v45  ;;  %v3573_v20 = vrot.slane %v3571_v45, 2 }
 0x2b7   :  { %v3984_v57 = vmax.f32 %v9121_v35, %v8153_v17  ;;  %v2492_v53 = vsel %vm1951_vm11, %v2412_v60, 0.0  ;;  %v3577_v15 = vrot.slane %v3206_v3, 7  ;;  %v8245_v32 = vadd.f32 %v1982_v30, %v1981_v43 }
 0x2b8   :  { %v2491_v34 = vadd.f32 %v2490_v11, %v2404_v23  ;;  %v3576_v2 = vrot.slane %v3574_v41, 2  ;;  %v5370_v39 = vrot.slane %v8240_v24, 9  ;;  %v3575_v1 = vsel %vm5816_vm10, %v3573_v20, %v3574_v41  ;;  %v9123_v23 = vld [vmem:[#allocation28_spill] sm:$0xff] }
 0x2b9   :  { %v3757_v36 = vmax.f32 %v8117_v44, %v3572_v28  ;;  %v9122_v27 = vrot.slane %v8081_v40, %v5805_v42  ;;  %v4521_v60 = vmul.f32 %v3984_v57, %v3984_v57  ;;  %v3758_v11 = vmax.f32 %v3199_v48, %v3575_v1  ;;  %v9124_v20 = vld [vmem:[#allocation12_spill] sm:$0xff] }
 0x2ba   :  { %v8255_v5 = vadd.f32 %v2492_v53, %v2491_v34  ;;  %v3578_v30 = vsel %vm5816_vm10, %v3576_v2, %v3577_v15  ;;  %v4954_v44 = vsel %vm1951_vm11, %v8102_v7, 0.0  ;;  %v310_v40 = vadd.f32 %v7753_v0, %v9123_v23 }
 0x2bb   :  { %v4444_v58 = vsel %vm1951_vm11, %v9122_v27, 0.0  ;;  %v3759_v35 = vmax.f32 %v3207_v46, %v3578_v30  ;;  %v8260_v43 = vmax.f32 %v3757_v36, %v3199_v48  ;;  %v8266_v41 = vmax.f32 %v3758_v11, %v3207_v46 }
 0x2bc   :  { %v4445_v45 = vadd.f32 %v4444_v58, %v8097_v55  ;;  %v4955_v53 = vadd.f32 %v4954_v44, %v8108_v51  ;;  %v1452_v28 = vmax.f32 %v7984_v13, %v8120_v9  ;;  %v2783_v15 = vadd.f32 %v7753_v0, %v9124_v20 }
 0x2bd   :  { %v8273_v55 = vmax.f32 %v3759_v35, %v3206_v3  ;;  %v3919_v48 = vmax.f32 %v8043_v50, %v8260_v43  ;;  %v3985_v7 = vmax.f32 %v3913_v22, %v8260_v43  ;;  %v736_v34 = vcombine.high %v310_v40, %v310_v40 }
 0x2be   :  { %v3986_v2 = vmax.f32 %v3914_v12, %v8266_v41  ;;  %v743_v46 = vrot.slane %v310_v40, %v5805_v42  ;;  %v3209_v1 = vcombine.high %v2783_v15, %v2783_v15  ;;  %v8281_v51 = vrot.slane %v2783_v15, %v5805_v42 }
 0x2bf   :  { %v3987_v0 = vmax.f32 %v3915_v8, %v8273_v55  ;;  %v4318_v9 = vcombine.low %v3984_v57, %v3985_v7  ;;  %v4522_v3 = vmul.f32 %v3985_v7, %v3985_v7  ;;  %v750_v27 = vrot.slane %v736_v34, %v5805_v42 }
 0x2c0   :  { %v4523_v36 = vmul.f32 %v3986_v2, %v3986_v2  ;;  %v751_v22 = vcombine.high %v743_v46, %v743_v46  ;;  %v1115_v58 = vrot.slane %v743_v46, 7  ;;  %v9125_v23 = vrot.slane %v8147_v18, 9 }
 0x2c1   :  { %v4332_v12 = vrot.slane %v4318_v9, %v5805_v42  ;;  %v4334_v30 = vcombine.low %v3986_v2, %v3987_v0  ;;  %v4524_v11 = vmul.f32 %v3987_v0, %v3987_v0  ;;  %v4854_v35 = vcombine.low %v4521_v60, %v4522_v3 }
 0x2c2   :  { %v8288_v44 = vcombine.high %v750_v27, %v750_v27  ;;  %v1116_v40 = vsel %vm5816_vm10, %v9125_v23, %v1115_v58  ;;  %v1117_v8 = vrot.slane %v1115_v58, 2  ;;  %v1118_v57 = vrot.slane %v751_v22, 7 }
 0x2c3   :  { %v8295_v20 = vcombine.low %v8180_v10, %v4332_v12  ;;  %v4341_v15 = vrot.slane %v4334_v30, %v5805_v42  ;;  %5405 = vst.sshfl [vmem:[%s8920_s5 + $0x168] sm:$0x33 pattern:$0x76325410] %v4334_v30  ;;  %v4868_v60 = vrot.slane %v4854_v35, %v5805_v42  ;;  %v4870_v7 = vcombine.low %v4523_v36, %v4524_v11 }
 0x2c4   :  { %v1119_v34 = vsel %vm5816_vm10, %v1117_v8, %v1118_v57  ;;  %v1120_v2 = vrot.slane %v1118_v57, 2  ;;  %v1121_v0 = vrot.slane %v750_v27, 7  ;;  %v1124_v9 = vrot.slane %v8288_v44, 7 }
 0x2c5   :  { %v4446_v3 = vadd.f32 %v4445_v45, %v8295_v20  ;;  %v4447_v10 = vsel %vm1951_vm11, %v4341_v15, 0.0  ;;  %v4869_v58 = vcombine.low %v8195_v6, %v4868_v60  ;;  %v4877_v12 = vrot.slane %v4870_v7, %v5805_v42 }
 0x2c6   :  { %v1122_v30 = vsel %vm5816_vm10, %v1120_v2, %v1121_v0  ;;  %v1123_v35 = vrot.slane %v1121_v0, 2  ;;  %v1294_v36 = vmax.f32 %v8147_v18, %v1116_v40  ;;  %v1295_v11 = vmax.f32 %v743_v46, %v1119_v34 }
 0x2c7   :  { %v8312_v23 = vadd.f32 %v4447_v10, %v4446_v3  ;;  %v4956_v8 = vadd.f32 %v4955_v53, %v4869_v58  ;;  %v4957_v57 = vsel %vm1951_vm11, %v4877_v12, 0.0  ;;  %v1296_v13 = vmax.f32 %v751_v22, %v1122_v30 }
 0x2c8   :  { %v1125_v6 = vsel %vm5816_vm10, %v1123_v35, %v1124_v9  ;;  %v1378_v45 = vmax.f32 %v1294_v36, %v743_v46  ;;  %v1379_v15 = vmax.f32 %v1295_v11, %v751_v22  ;;  %v3223_v60 = vrot.slane %v3209_v1, %v5805_v42 }
 0x2c9   :  { %v8320_v7 = vadd.f32 %v4957_v57, %v4956_v8  ;;  %v1297_v2 = vmax.f32 %v750_v27, %v1125_v6  ;;  %v1380_v18 = vmax.f32 %v1296_v13, %v750_v27  ;;  %v3224_v40 = vcombine.high %v8281_v51, %v8281_v51 }
 0x2ca   :  { %v9126_v53 = vmax.f32 %v7870_v52, %v8115_v19  ;;  %v9127_v0 = vmax.f32 %v7882_v4, %v8126_v29  ;;  %v8330_v10 = vcombine.high %v3223_v60, %v3223_v60  ;;  %v3581_v46 = vrot.slane %v8281_v51, 7 }
 0x2cb   :  { %v1381_v1 = vmax.f32 %v1297_v2, %v8288_v44  ;;  %v1524_v22 = vmax.f32 %v1452_v28, %v1380_v18  ;;  %v3584_v58 = vrot.slane %v3224_v40, 7  ;;  %v3587_v13 = vrot.slane %v3223_v60, 7 }
 0x2cc   :  { %v1522_v34 = vmax.f32 %v9126_v53, %v1378_v45  ;;  %v1523_v3 = vmax.f32 %v9127_v0, %v1379_v15  ;;  %v3582_v52 = vsel %vm5816_vm10, %v5370_v39, %v3581_v46  ;;  %v3583_v29 = vrot.slane %v3581_v46, 2 }
 0x2cd   :  { %v1525_v4 = vmax.f32 %v1453_v14, %v1381_v1  ;;  %v2062_v19 = vmul.f32 %v1524_v22, %v1524_v22  ;;  %v3586_v35 = vrot.slane %v3584_v58, 2  ;;  %v3589_v11 = vrot.slane %v3587_v13, 2  ;;  %v5588_v1 = vld [vmem:[%s8919_s2] ss:$0 sm:$0xff] }
 0x2ce   :  { %v1876_v27 = vcombine.low %v1522_v34, %v1523_v3  ;;  %v2060_v12 = vmul.f32 %v1522_v34, %v1522_v34  ;;  %v2061_v30 = vmul.f32 %v1523_v3, %v1523_v3  ;;  %v3590_v8 = vrot.slane %v8330_v10, 7 }
 0x2cf   :  { %v1877_v57 = vcombine.low %v1524_v22, %v1525_v4  ;;  %v2063_v6 = vmul.f32 %v1525_v4, %v1525_v4  ;;  %v3585_v45 = vsel %vm5816_vm10, %v3583_v29, %v3584_v58  ;;  %v3588_v39 = vsel %vm5816_vm10, %v3586_v35, %v3587_v13  ;;  %v9128_v22 = vld [vmem:[#allocation22_spill] sm:$0xff] }
 0x2d0   :  { %v1884_v36 = vrot.slane %v1876_v27, %v5805_v42  ;;  %v2413_v28 = vcombine.low %v2060_v12, %v2061_v30  ;;  %v3591_v61 = vsel %vm5816_vm10, %v3589_v11, %v3590_v8  ;;  %v3760_v14 = vmax.f32 %v8240_v24, %v3582_v52 }
 0x2d1   :  { %v3761_v15 = vmax.f32 %v8281_v51, %v3585_v45  ;;  %v1891_v2 = vrot.slane %v1877_v57, %v5805_v42  ;;  %v2414_v18 = vcombine.low %v2062_v19, %v2063_v6  ;;  %v3762_v53 = vmax.f32 %v3224_v40, %v3588_v39 }
 0x2d2   :  { %v2421_v21 = vrot.slane %v2413_v28, %v5805_v42  ;;  %v3763_v34 = vmax.f32 %v3223_v60, %v3591_v61  ;;  %v3844_v0 = vmax.f32 %v3760_v14, %v8281_v51  ;;  %v3918_v46 = vmax.f32 %v8041_v59, %v8153_v17 }
 0x2d3   :  { %v3845_v3 = vmax.f32 %v3761_v15, %v3224_v40  ;;  %v315_v58 = vadd.f32 %v5588_v1, %v9128_v22  ;;  %v8360_v24 = vcombine.low %v1884_v36, %v1891_v2  ;;  %v2428_v13 = vrot.slane %v2414_v18, %v5805_v42 }
 0x2d4   :  { %v3846_v27 = vmax.f32 %v3762_v53, %v3223_v60  ;;  %v3847_v12 = vmax.f32 %v3763_v34, %v8330_v10  ;;  %v9129_v51 = vmax.f32 %v7941_v47, %v8145_v62  ;;  %v9130_v59 = vmax.f32 %v7950_v37, %v8150_v56 }
 0x2d5   :  { %v759_v30 = vrot.slane %v315_v58, %v5805_v42  ;;  %v2429_v52 = vcombine.low %v2421_v21, %v2428_v13  ;;  %v1126_v60 = vrot.slane %v1124_v9, 2  ;;  %v3592_v53 = vrot.slane %v3590_v8, 2 }
 0x2d6   :  { %v3988_v40 = vmax.f32 %v9129_v51, %v3844_v0  ;;  %v3989_v17 = vmax.f32 %v9130_v59, %v3845_v3  ;;  %v3990_v4 = vmax.f32 %v3918_v46, %v3846_v27  ;;  %v3991_v19 = vmax.f32 %v3919_v48, %v3847_v12  ;;  %v9131_v48 = vld [vmem:[#allocation16_spill] sm:$0xff] }
 0x2d7   :  { %v760_v47 = vcombine.high %v759_v30, %v759_v30  ;;  %v2494_v62 = vadd.f32 %v8255_v5, %v2429_v52  ;;  %v1127_v57 = vrot.slane %v759_v30, 7  ;;  %v2788_v39 = vadd.f32 %v5588_v1, %v9131_v48 }
 0x2d8   :  { %v4342_v29 = vcombine.low %v3988_v40, %v3989_v17  ;;  %v4525_v35 = vmul.f32 %v3988_v40, %v3988_v40  ;;  %v4526_v36 = vmul.f32 %v3989_v17, %v3989_v17  ;;  %v4343_v28 = vcombine.low %v3990_v4, %v3991_v19 }
 0x2d9   :  { %v4527_v56 = vmul.f32 %v3990_v4, %v3990_v4  ;;  %v4528_v37 = vmul.f32 %v3991_v19, %v3991_v19  ;;  %v1130_v6 = vrot.slane %v760_v47, 7  ;;  %v1128_v21 = vsel %vm5816_vm10, %v1126_v60, %v1127_v57 }
 0x2da   :  { %v4878_v11 = vcombine.low %v4525_v35, %v4526_v36  ;;  %v4350_v45 = vrot.slane %v4342_v29, %v5805_v42  ;;  %v4357_v50 = vrot.slane %v4343_v28, %v5805_v42  ;;  %v1129_v61 = vrot.slane %v1127_v57, 2 }
 0x2db   :  { %v4879_v43 = vcombine.low %v4527_v56, %v4528_v37  ;;  %v1298_v15 = vmax.f32 %v8288_v44, %v1128_v21  ;;  %v3232_v2 = vrot.slane %v2788_v39, %v5805_v42  ;;  %v1454_v46 = vmax.f32 %v7991_v54, %v8197_v38 }
 0x2dc   :  { %v4886_v9 = vrot.slane %v4878_v11, %v5805_v42  ;;  %v8383_v5 = vcombine.low %v4350_v45, %v4357_v50  ;;  %v1131_v18 = vsel %vm5816_vm10, %v1129_v61, %v1130_v6  ;;  %v3920_v38 = vmax.f32 %v8050_v31, %v8266_v41 }
 0x2dd   :  { %v4893_v14 = vrot.slane %v4879_v43, %v5805_v42  ;;  %v1299_v0 = vmax.f32 %v759_v30, %v1131_v18  ;;  %v1382_v3 = vmax.f32 %v1298_v15, %v759_v30  ;;  %v3233_v1 = vcombine.high %v3232_v2, %v3232_v2 }
 0x2de   :  { %v3593_v22 = vrot.slane %v3232_v2, 7  ;;  %v1984_v4 = vadd.f32 %v8245_v32, %v8360_v24  ;;  %v9132_v41 = vmax.f32 %v8063_v26, %v8273_v55 }
 0x2df   :  { %v4894_v34 = vcombine.low %v4886_v9, %v4893_v14  ;;  %v1383_v13 = vmax.f32 %v1299_v0, %v760_v47  ;;  %v1526_v27 = vmax.f32 %v1454_v46, %v1382_v3  ;;  %v3596_v51 = vrot.slane %v3233_v1, 7 }
 0x2e0   :  { %v3594_v44 = vsel %vm5816_vm10, %v3592_v53, %v3593_v22  ;;  %v3595_v12 = vrot.slane %v3593_v22, 2  ;;  %v4449_v47 = vadd.f32 %v8312_v23, %v8383_v5 }
 0x2e1   :  { %v4959_v58 = vadd.f32 %v8320_v7, %v4894_v34  ;;  %v1527_v8 = vmax.f32 %v1455_v16, %v1383_v13  ;;  %v3764_v40 = vmax.f32 %v8330_v10, %v3594_v44  ;;  %v2064_v59 = vmul.f32 %v1526_v27, %v1526_v27 }
 0x2e2   :  { %v3597_v54 = vsel %vm5816_vm10, %v3595_v12, %v3596_v51  ;;  %v4972_v51 = vld [vmem:[#allocation3] sm:$0x1] }
 0x2e3   :  { %v1893_v7 = vcombine.low %v1526_v27, %v1527_v8  ;;  %v2065_v17 = vmul.f32 %v1527_v8, %v1527_v8  ;;  %v3765_v30 = vmax.f32 %v3232_v2, %v3597_v54  ;;  %v3848_v52 = vmax.f32 %v3764_v40, %v3232_v2  ;;  %v4969_v27 = vld [vmem:[#allocation2] sm:$0x1] }
 0x2e5   :  { %v1900_v19 = vrot.slane %v1893_v7, %v5805_v42  ;;  %5302 = vst.sshfl [vmem:[%s8920_s5 + $0xb8] sm:$0x33 pattern:$0x76325410] %v1893_v7  ;;  %v2430_v33 = vcombine.low %v2064_v59, %v2065_v17  ;;  %v3849_v49 = vmax.f32 %v3765_v30, %v3233_v1  ;;  %v3992_v63 = vmax.f32 %v3920_v38, %v3848_v52 }
 0x2e7   :  { %v1985_v16 = vsel %vm1951_vm11, %v1900_v19, 0.0  ;;  %v2437_v31 = vrot.slane %v2430_v33, %v5805_v42  ;;  %v3993_v10 = vmax.f32 %v9132_v41, %v3849_v49  ;;  %v4529_v35 = vmul.f32 %v3992_v63, %v3992_v63  ;;  %v9133_v19 = vld [vmem:[#allocation4_spill] sm:$0xff] }
 0x2e8   :  { %v1986_v60 = vadd.f32 %v1985_v16, %v1984_v4  ;;  %v4984_v4 = vld [vmem:[%s8921_s3] sm:$0x1]  ;;  %v5042_v33 = vsub.s32 0, %v9133_v19 }
 0x2e9   :  { %v2495_v32 = vsel %vm1951_vm11, %v2437_v31, 0.0  ;;  %v4359_v29 = vcombine.low %v3992_v63, %v3993_v10  ;;  %v4530_v36 = vmul.f32 %v3993_v10, %v3993_v10  ;;  %v8431_v16 = vld [vmem:[%s8922_s4] sm:$0x1]  ;;  %v4992_v10 = vld [vmem:[%s8920_s5 + $0x8] sm:$0xf] }
 0x2ea   :  { %v1987_v28 = vrot.slane %v1986_v60, 4  ;;  %v2496_v56 = vadd.f32 %v2495_v32, %v2494_v62 }
 0x2eb   :  { %v4366_v37 = vrot.slane %v4359_v29, %v5805_v42  ;;  %5406 = vst.sshfl [vmem:[%s8920_s5 + $0x178] sm:$0x33 pattern:$0x76325410] %v4359_v29  ;;  %v4895_v11 = vcombine.low %v4529_v35, %v4530_v36  ;;  %v9134_v29 = vld [vmem:[#allocation14_spill] sm:$0xff] }
 0x2ec   :  { %v1988_v26 = vadd.f32 %v1987_v28, %v1986_v60  ;;  %v2497_v55 = vrot.slane %v2496_v56, 4  ;;  %v4994_v60 = vld [vmem:[%s8920_s5 + $0x18] sm:$0xf]  ;;  %v4996_v36 = vld [vmem:[%s8920_s5 + $0x28] sm:$0xf] }
 0x2ed   :  { %v4450_v57 = vsel %vm1951_vm11, %v4366_v37, 0.0  ;;  %v4902_v6 = vrot.slane %v4895_v11, %v5805_v42 }
 0x2ee   :  { %v1989_v45 = vrot.slane %v1988_v26, 2  ;;  %v2498_v50 = vadd.f32 %v2497_v55, %v2496_v56  ;;  %v4451_v43 = vadd.f32 %v4450_v57, %v4449_v47  ;;  %v4998_v47 = vld [vmem:[%s8920_s5 + $0x38] sm:$0xf]  ;;  %v5000_v57 = vld [vmem:[%s8920_s5 + $0x48] sm:$0xf] }
 0x2ef   :  { %v4960_v23 = vsel %vm1951_vm11, %v4902_v6, 0.0  ;;  %v9135_v56 = vld [vmem:[#allocation18_spill] sm:$0xff] }
 0x2f0   :  { %v1990_v48 = vadd.f32 %v1989_v45, %v1988_v26  ;;  %v2499_v62 = vrot.slane %v2498_v50, 2  ;;  %v4452_v39 = vrot.slane %v4451_v43, 4  ;;  %v4961_v9 = vadd.f32 %v4960_v23, %v4959_v58  ;;  %v9136_v26 = vld [vmem:[#allocation6_spill] sm:$0xff] }
 0x2f1   :  { %v5002_v6 = vld [vmem:[%s8920_s5 + $0x58] sm:$0xf] }
 0x2f2   :  { %v2500_v21 = vadd.f32 %v2499_v62, %v2498_v50  ;;  %v4453_v61 = vadd.f32 %v4452_v39, %v4451_v43  ;;  %v4962_v14 = vrot.slane %v4961_v9, 4  ;;  %v1991_v15 = vrot.slane %v1990_v48, 1  ;;  %v9137_v50 = vld [vmem:[#allocation20_spill] sm:$0xff] }
 0x2f3   :  { %v5004_v39 = vld [vmem:[%s8920_s5 + $0x68] sm:$0xf] }
 0x2f4   :  { %v4454_v2 = vrot.slane %v4453_v61, 2  ;;  %v4963_v18 = vadd.f32 %v4962_v14, %v4961_v9  ;;  %v2501_v53 = vrot.slane %v2500_v21, 1  ;;  %v1992_v3 = vadd.f32 %v1991_v15, %v1990_v48  ;;  %v9138_v48 = vld [vmem:[#allocation13_spill] sm:$0xff]  ;;  %v5006_v9 = vld [vmem:[%s8920_s5 + $0x78] sm:$0xf] }
 0x2f6   :  { %v4455_v34 = vadd.f32 %v4454_v2, %v4453_v61  ;;  %v4964_v0 = vrot.slane %v4963_v18, 2  ;;  %v2502_v1 = vadd.f32 %v2501_v53, %v2500_v21  ;;  %v9139_v61 = vld [vmem:[#allocation25_spill] sm:$0xff]  ;;  %v9140_v2 = vld [vmem:[#allocation7_spill] sm:$0xff] }
 0x2f7   :  { %v5008_v53 = vld [vmem:[%s8920_s5 + $0x88] sm:$0xf] }
 0x2f8   :  { %v4456_v42 = vrot.slane %v4455_v34, 1  ;;  %v4965_v46 = vadd.f32 %v4964_v0, %v4963_v18 }
 0x2fa   :  { %v4457_v22 = vadd.f32 %v4456_v42, %v4455_v34  ;;  %v4966_v13 = vrot.slane %v4965_v46, 1  ;;  %v5010_v34 = vld [vmem:[%s8920_s5 + $0x98] sm:$0xf] }
 0x2fc   :  { %v4458_v44 = vadd.f32 %v4457_v22, %v1992_v3  ;;  %v4967_v12 = vadd.f32 %v4966_v13, %v4965_v46  ;;  %v9141_v3 = vld [vmem:[#allocation29_spill] sm:$0xff] }
 0x2fd   :  { %v5012_v13 = vld [vmem:[%s8920_s5 + $0xa8] sm:$0xf] }
 0x2fe   :  { %v4968_v58 = vadd.f32 %v4967_v12, %v2502_v1  ;;  %v4970_v8 = vadd.f32 %v4969_v27, %v4458_v44  ;;  %v9142_v1 = vld [vmem:[#allocation31_spill] sm:$0xff]  ;;  %v9143_v12 = vld [vmem:[#allocation24_spill] sm:$0xff] }
 0x2ff   :  { %v5014_v27 = vld [vmem:[%s8920_s5 + $0xb8] sm:$0xf] }
 0x300   :  { %4971 = vst [vmem:[#allocation2] sm:$0x1] %v4970_v8  ;;  %v4973_v40 = vadd.f32 %v4972_v51, %v4968_v58 }
 0x302   :  { %4974 = vst [vmem:[#allocation3] sm:$0x1] %v4973_v40  ;;  %v5016_v40 = vld [vmem:[%s8920_s5 + $0xc8] sm:$0xf] }
 0x307   :  { %v4978_v59 = vld [vmem:[#allocation2] sm:$0x1] }
 0x308   :  { %v4979_v54 = vmul.f32 0.0034722222, %v4978_v59  ;;  %v5018_v59 = vld [vmem:[%s8920_s5 + $0xd8] sm:$0xf] }
 0x309   :  { %v4980_v38 = vld [vmem:[#allocation3] sm:$0x1] }
 0x30a   :  { %v4981_v7 = vmul.f32 0.0034722222, %v4980_v38  ;;  %v4982_v17 = vmul.f32 %v4979_v54, %v4979_v54 }
 0x30c   :  { %v4983_v30 = vsub.f32 %v4981_v7, %v4982_v17  ;;  %v9144_v17 = vld [vmem:[#allocation15_spill] sm:$0xff] }
 0x30e   :  { %v4985_v52 = vadd.f32 1e-05, %v4983_v30 }
 0x310   :  { %5583 = vrsqrt.f32 %v4985_v52  ;;  %v5022_v52 = vld [vmem:[%s8920_s5 + $0xf8] sm:$0xf] }
 0x31a   :  { %v5584_v49 = vpop.eup %5583 }
 0x31b   :  { %v4987_v63 = vmul.f32 %v5584_v49, %v4984_v4  ;;  %v9145_v49 = vld [vmem:[#allocation19_spill] sm:$0xff] }
 0x31d   :  { %v8433_v31 = vmul.f32 %v4987_v63, %v4979_v54  ;;  %v8437_v41 = vrot.slane %v4987_v63, %v5042_v33 }
 0x31f   :  { %v4990_v32 = vsub.f32 %v8431_v16, %v8433_v31  ;;  %v8449_v35 = vmul.f32 %v8437_v41, %v9134_v29  ;;  %v8458_v28 = vmul.f32 %v8437_v41, %v4992_v10  ;;  %v8462_v37 = vmul.f32 %v8437_v41, %v9135_v56  ;;  %v9146_v10 = vld [vmem:[#allocation8_spill] sm:$0xff]  ;;  %v9147_v56 = vld [vmem:[#allocation10_spill] sm:$0xff] }
 0x320   :  { %v8465_v11 = vmul.f32 %v8437_v41, %v4994_v60  ;;  %v8469_v55 = vmul.f32 %v8437_v41, %v9136_v26  ;;  %v8478_v45 = vmul.f32 %v8437_v41, %v4996_v36  ;;  %v8482_v43 = vmul.f32 %v8437_v41, %v9137_v50  ;;  %v5024_v29 = vld [vmem:[%s8920_s5 + $0x108] sm:$0xf]  ;;  %v5026_v36 = vld [vmem:[%s8920_s5 + $0x118] sm:$0xf] }
 0x321   :  { %v8485_v23 = vmul.f32 %v8437_v41, %v4998_v47  ;;  %v8489_v62 = vmul.f32 %v8437_v41, %v9138_v48  ;;  %v8498_v21 = vmul.f32 %v8437_v41, %v5000_v57  ;;  %v8502_v14 = vmul.f32 %v8437_v41, %v9139_v61  ;;  %v5028_v48 = vld [vmem:[%s8920_s5 + $0x128] sm:$0xf]  ;;  %v9149_v61 = vld [vmem:[#allocation27_spill] sm:$0xff] }
 0x322   :  { %v8505_v15 = vmul.f32 %v8437_v41, %v5002_v6  ;;  %v8509_v18 = vmul.f32 %v8437_v41, %v9140_v2  ;;  %v8518_v0 = vmul.f32 %v8437_v41, %v5004_v39  ;;  %v8522_v42 = vmul.f32 %v8437_v41, %v9141_v3  ;;  %v9148_v6 = vld [vmem:[#allocation23_spill] sm:$0xff] }
 0x323   :  { %v8525_v46 = vmul.f32 %v8437_v41, %v5006_v9  ;;  %v8529_v22 = vmul.f32 %v8437_v41, %v9142_v1  ;;  %v5062_v44 = vmul.f32 %v8437_v41, %v5008_v53  ;;  %v5063_v51 = vmul.f32 %v8437_v41, %v9143_v12  ;;  %v5030_v39 = vld [vmem:[%s8920_s5 + $0x138] sm:$0xf]  ;;  %v5032_v1 = vld [vmem:[%s8920_s5 + $0x148] sm:$0xf] }
 0x324   :  { %v5064_v58 = vmul.f32 %v8437_v41, %v5010_v34  ;;  %v5065_v8 = vmul.f32 %v8437_v41, %v8228_v25  ;;  %v5066_v54 = vmul.f32 %v8437_v41, %v5012_v13  ;;  %v5067_v38 = vmul.f32 %v8437_v41, %v8360_v24  ;;  %v5020_v25 = vld [vmem:[%s8920_s5 + $0xe8] sm:$0xf]  ;;  %v5034_v13 = vld [vmem:[%s8920_s5 + $0x158] sm:$0xf] }
 0x325   :  { %v5068_v7 = vmul.f32 %v8437_v41, %v5014_v27  ;;  %v5069_v30 = vmul.f32 %v8437_v41, %v9144_v17  ;;  %v5070_v4 = vmul.f32 %v8437_v41, %v5016_v40  ;;  %v5071_v63 = vmul.f32 %v8437_v41, %v9145_v49  ;;  %v9150_v34 = vld [vmem:[#allocation9_spill] sm:$0xff]  ;;  %v9151_v12 = vld [vmem:[#allocation30_spill] sm:$0xff] }
 0x326   :  { %v5072_v24 = vmul.f32 %v8437_v41, %v5018_v59  ;;  %v5073_v60 = vmul.f32 %v8437_v41, %v9146_v10  ;;  %v5074_v47 = vmul.f32 %v8437_v41, %v5020_v25  ;;  %v5075_v26 = vmul.f32 %v8437_v41, %v9147_v56  ;;  %v9152_v17 = vld [vmem:[#allocation17_spill] sm:$0xff]  ;;  %v5038_v49 = vld [vmem:[%s8920_s5 + $0x178] sm:$0xf] }
 0x327   :  { %v5076_v57 = vmul.f32 %v8437_v41, %v5022_v52  ;;  %v5077_v50 = vmul.f32 %v8437_v41, %v9148_v6  ;;  %v5078_v9 = vmul.f32 %v8437_v41, %v5024_v29  ;;  %v5079_v2 = vmul.f32 %v8437_v41, %v9149_v61  ;;  %v5036_v52 = vld [vmem:[%s8920_s5 + $0x168] sm:$0xf]  ;;  %v9153_v29 = vld [vmem:[#allocation26_spill] sm:$0xff] }
 0x328   :  { %v5080_v53 = vmul.f32 %v8437_v41, %v5026_v36  ;;  %v5081_v3 = vmul.f32 %v8437_v41, %v9150_v34  ;;  %v5082_v27 = vmul.f32 %v8437_v41, %v5028_v48  ;;  %v5083_v40 = vmul.f32 %v8437_v41, %v9151_v12 }
 0x329   :  { %v5084_v59 = vmul.f32 %v8437_v41, %v5030_v39  ;;  %v5085_v25 = vmul.f32 %v8437_v41, %v9152_v17  ;;  %v5086_v10 = vmul.f32 %v8437_v41, %v5032_v1  ;;  %v5087_v36 = vmul.f32 %v8437_v41, %v9153_v29 }
 0x32a   :  { %v5088_v56 = vmul.f32 %v8437_v41, %v5034_v13  ;;  %v5097_v6 = vrot.slane %v4990_v32, %v5042_v33  ;;  %v5089_v48 = vmul.f32 %v8437_v41, %v8295_v20  ;;  %v5090_v39 = vmul.f32 %v8437_v41, %v5036_v52 }
 0x32b   :  { %v5091_v61 = vmul.f32 %v8437_v41, %v8383_v5  ;;  %v5092_v34 = vmul.f32 %v8437_v41, %v5038_v49 }
 0x32c   :  { %v5099_v1 = vadd.f32 %v5097_v6, %v8449_v35  ;;  %v5100_v13 = vadd.f32 %v5097_v6, %v8458_v28  ;;  %v5101_v19 = vadd.f32 %v5097_v6, %v8462_v37  ;;  %v5102_v12 = vadd.f32 %v5097_v6, %v8465_v11 }
 0x32d   :  { %v8629_v33 = vadd.f32 %v5097_v6, %v8469_v55  ;;  %v8632_v20 = vadd.f32 %v5097_v6, %v8478_v45  ;;  %v8635_v16 = vadd.f32 %v5097_v6, %v8482_v43  ;;  %v8638_v5 = vadd.f32 %v5097_v6, %v8485_v23 }
 0x32e   :  { %v8641_v31 = vadd.f32 %v5097_v6, %v8489_v62  ;;  %v8644_v41 = vadd.f32 %v5097_v6, %v8498_v21  ;;  %v8647_v32 = vadd.f32 %v5097_v6, %v8502_v14  ;;  %v8650_v35 = vadd.f32 %v5097_v6, %v8505_v15 }
 0x32f   :  { %v8653_v28 = vadd.f32 %v5097_v6, %v8509_v18  ;;  %v8656_v37 = vadd.f32 %v5097_v6, %v8518_v0  ;;  %v8659_v11 = vadd.f32 %v5097_v6, %v8522_v42  ;;  %v8662_v55 = vadd.f32 %v5097_v6, %v8525_v46 }
 0x330   :  { %v8665_v45 = vadd.f32 %v5097_v6, %v8529_v22  ;;  %v8667_v43 = vadd.f32 %v5097_v6, %v5062_v44  ;;  %v8669_v23 = vadd.f32 %v5097_v6, %v5063_v51  ;;  %v8671_v62 = vadd.f32 %v5097_v6, %v5064_v58 }
 0x331   :  { %v8673_v21 = vadd.f32 %v5097_v6, %v5065_v8  ;;  %v8675_v14 = vadd.f32 %v5097_v6, %v5066_v54  ;;  %v8677_v15 = vadd.f32 %v5097_v6, %v5067_v38  ;;  %v8679_v18 = vadd.f32 %v5097_v6, %v5068_v7 }
 0x332   :  { %v8681_v0 = vadd.f32 %v5097_v6, %v5069_v30  ;;  %v8683_v42 = vadd.f32 %v5097_v6, %v5070_v4  ;;  %v8685_v46 = vadd.f32 %v5097_v6, %v5071_v63  ;;  %v8687_v22 = vadd.f32 %v5097_v6, %v5072_v24 }
 0x333   :  { %v8689_v44 = vadd.f32 %v5097_v6, %v5073_v60  ;;  %v8691_v51 = vadd.f32 %v5097_v6, %v5074_v47  ;;  %v8693_v58 = vadd.f32 %v5097_v6, %v5075_v26  ;;  %v8695_v8 = vadd.f32 %v5097_v6, %v5076_v57 }
 0x334   :  { %v8697_v54 = vadd.f32 %v5097_v6, %v5077_v50  ;;  %v8699_v38 = vadd.f32 %v5097_v6, %v5078_v9  ;;  %v8701_v7 = vadd.f32 %v5097_v6, %v5079_v2  ;;  %v8703_v30 = vadd.f32 %v5097_v6, %v5080_v53 }
 0x335   :  { %v8705_v4 = vadd.f32 %v5097_v6, %v5081_v3  ;;  %v8707_v63 = vadd.f32 %v5097_v6, %v5082_v27  ;;  %v8709_v24 = vadd.f32 %v5097_v6, %v5083_v40  ;;  %v8711_v60 = vadd.f32 %v5097_v6, %v5084_v59 }
 0x336   :  { %v8713_v47 = vadd.f32 %v5097_v6, %v5085_v25  ;;  %v8715_v26 = vadd.f32 %v5097_v6, %v5086_v10  ;;  %v8717_v57 = vadd.f32 %v5097_v6, %v5087_v36  ;;  %v8719_v50 = vadd.f32 %v5097_v6, %v5088_v56 }
 0x337   :  { %v8721_v9 = vadd.f32 %v5097_v6, %v5089_v48  ;;  %v8723_v2 = vadd.f32 %v5097_v6, %v5090_v39  ;;  %v8725_v53 = vadd.f32 %v5097_v6, %v5091_v61  ;;  %v8727_v3 = vadd.f32 %v5097_v6, %v5092_v34 }
 0x338   :  { %v5147_v27 = vmax.f32 %v5099_v1, 0.0  ;;  %v5148_v40 = vmax.f32 %v5100_v13, 0.0  ;;  %v5149_v59 = vmax.f32 %v5101_v19, 0.0  ;;  %v5150_v17 = vmax.f32 %v5102_v12, 0.0 }
 0x339   :  { %v5151_v25 = vmax.f32 %v8629_v33, 0.0  ;;  %v5152_v52 = vmax.f32 %v8632_v20, 0.0  ;;  %v5153_v49 = vmax.f32 %v8635_v16, 0.0  ;;  %v5154_v10 = vmax.f32 %v8638_v5, 0.0 }
 0x33a   :  { %v5155_v29 = vmax.f32 %v8641_v31, 0.0  ;;  %v5156_v36 = vmax.f32 %v8644_v41, 0.0  ;;  %v5157_v56 = vmax.f32 %v8647_v32, 0.0  ;;  %v5158_v6 = vmax.f32 %v8650_v35, 0.0  ;;  %5195 = vst [vmem:[%s8920_s5] sm:$0xff] %v5147_v27  ;;  %5196 = vst [vmem:[%s8920_s5 + $0x8] sm:$0xf] %v5148_v40 }
 0x33b   :  { %5197 = vst [vmem:[%s8920_s5 + $0x10] sm:$0xff] %v5149_v59  ;;  %5198 = vst [vmem:[%s8920_s5 + $0x18] sm:$0xf] %v5150_v17  ;;  %v5159_v48 = vmax.f32 %v8653_v28, 0.0  ;;  %v5160_v39 = vmax.f32 %v8656_v37, 0.0  ;;  %v5161_v61 = vmax.f32 %v8659_v11, 0.0 }
 0x33c   :  { %v5162_v34 = vmax.f32 %v8662_v55, 0.0  ;;  %5199 = vst [vmem:[%s8920_s5 + $0x20] sm:$0xff] %v5151_v25  ;;  %5200 = vst [vmem:[%s8920_s5 + $0x28] sm:$0xf] %v5152_v52  ;;  %v5163_v1 = vmax.f32 %v8665_v45, 0.0  ;;  %v5164_v13 = vmax.f32 %v8667_v43, 0.0 }
 0x33d   :  { %5201 = vst [vmem:[%s8920_s5 + $0x30] sm:$0xff] %v5153_v49  ;;  %5202 = vst [vmem:[%s8920_s5 + $0x38] sm:$0xf] %v5154_v10  ;;  %v5165_v19 = vmax.f32 %v8669_v23, 0.0  ;;  %v5166_v12 = vmax.f32 %v8671_v62, 0.0  ;;  %v5167_v33 = vmax.f32 %v8673_v21, 0.0 }
 0x33e   :  { %5203 = vst [vmem:[%s8920_s5 + $0x40] sm:$0xff] %v5155_v29  ;;  %5204 = vst [vmem:[%s8920_s5 + $0x48] sm:$0xf] %v5156_v36  ;;  %v5168_v20 = vmax.f32 %v8675_v14, 0.0  ;;  %v5169_v16 = vmax.f32 %v8677_v15, 0.0  ;;  %v5170_v5 = vmax.f32 %v8679_v18, 0.0 }
 0x33f   :  { %5205 = vst [vmem:[%s8920_s5 + $0x50] sm:$0xff] %v5157_v56  ;;  %5206 = vst [vmem:[%s8920_s5 + $0x58] sm:$0xf] %v5158_v6  ;;  %v5171_v31 = vmax.f32 %v8681_v0, 0.0  ;;  %v5172_v41 = vmax.f32 %v8683_v42, 0.0  ;;  %v5173_v32 = vmax.f32 %v8685_v46, 0.0 }
 0x340   :  { %5207 = vst [vmem:[%s8920_s5 + $0x60] sm:$0xff] %v5159_v48  ;;  %5208 = vst [vmem:[%s8920_s5 + $0x68] sm:$0xf] %v5160_v39  ;;  %v5174_v35 = vmax.f32 %v8687_v22, 0.0  ;;  %v5175_v28 = vmax.f32 %v8689_v44, 0.0  ;;  %v5176_v37 = vmax.f32 %v8691_v51, 0.0 }
 0x341   :  { %5209 = vst [vmem:[%s8920_s5 + $0x70] sm:$0xff] %v5161_v61  ;;  %5210 = vst [vmem:[%s8920_s5 + $0x78] sm:$0xf] %v5162_v34  ;;  %v5177_v11 = vmax.f32 %v8693_v58, 0.0  ;;  %v5178_v55 = vmax.f32 %v8695_v8, 0.0  ;;  %v5179_v45 = vmax.f32 %v8697_v54, 0.0 }
 0x342   :  { %5211 = vst [vmem:[%s8920_s5 + $0x80] sm:$0xff] %v5163_v1  ;;  %5212 = vst [vmem:[%s8920_s5 + $0x88] sm:$0xf] %v5164_v13  ;;  %v5180_v43 = vmax.f32 %v8699_v38, 0.0  ;;  %v5181_v23 = vmax.f32 %v8701_v7, 0.0  ;;  %v5182_v62 = vmax.f32 %v8703_v30, 0.0 }
 0x343   :  { %5213 = vst [vmem:[%s8920_s5 + $0x90] sm:$0xff] %v5165_v19  ;;  %5214 = vst [vmem:[%s8920_s5 + $0x98] sm:$0xf] %v5166_v12  ;;  %v5183_v21 = vmax.f32 %v8705_v4, 0.0  ;;  %v5184_v14 = vmax.f32 %v8707_v63, 0.0  ;;  %v5185_v15 = vmax.f32 %v8709_v24, 0.0 }
 0x344   :  { %5215 = vst [vmem:[%s8920_s5 + $0xa0] sm:$0xff] %v5167_v33  ;;  %5216 = vst [vmem:[%s8920_s5 + $0xa8] sm:$0xf] %v5168_v20  ;;  %v5186_v18 = vmax.f32 %v8711_v60, 0.0  ;;  %v5187_v0 = vmax.f32 %v8713_v47, 0.0  ;;  %v5188_v42 = vmax.f32 %v8715_v26, 0.0 }
 0x345   :  { %5217 = vst [vmem:[%s8920_s5 + $0xb0] sm:$0xff] %v5169_v16  ;;  %5218 = vst [vmem:[%s8920_s5 + $0xb8] sm:$0xf] %v5170_v5  ;;  %v5189_v46 = vmax.f32 %v8717_v57, 0.0  ;;  %v5190_v22 = vmax.f32 %v8719_v50, 0.0  ;;  %v5191_v44 = vmax.f32 %v8721_v9, 0.0 }
 0x346   :  { %5219 = vst [vmem:[%s8920_s5 + $0xc0] sm:$0xff] %v5171_v31  ;;  %5220 = vst [vmem:[%s8920_s5 + $0xc8] sm:$0xf] %v5172_v41  ;;  %v5192_v51 = vmax.f32 %v8723_v2, 0.0  ;;  %v5193_v58 = vmax.f32 %v8725_v53, 0.0  ;;  %v5194_v8 = vmax.f32 %v8727_v3, 0.0 }
 0x347   :  { %5221 = vst [vmem:[%s8920_s5 + $0xd0] sm:$0xff] %v5173_v32  ;;  %5222 = vst [vmem:[%s8920_s5 + $0xd8] sm:$0xf] %v5174_v35 }
 0x348   :  { %5223 = vst [vmem:[%s8920_s5 + $0xe0] sm:$0xff] %v5175_v28  ;;  %5224 = vst [vmem:[%s8920_s5 + $0xe8] sm:$0xf] %v5176_v37 }
 0x349   :  { %5225 = vst [vmem:[%s8920_s5 + $0xf0] sm:$0xff] %v5177_v11  ;;  %5226 = vst [vmem:[%s8920_s5 + $0xf8] sm:$0xf] %v5178_v55 }
 0x34a   :  { %5227 = vst [vmem:[%s8920_s5 + $0x100] sm:$0xff] %v5179_v45  ;;  %5228 = vst [vmem:[%s8920_s5 + $0x108] sm:$0xf] %v5180_v43 }
 0x34b   :  { %5229 = vst [vmem:[%s8920_s5 + $0x110] sm:$0xff] %v5181_v23  ;;  %5230 = vst [vmem:[%s8920_s5 + $0x118] sm:$0xf] %v5182_v62 }
 0x34c   :  { %5231 = vst [vmem:[%s8920_s5 + $0x120] sm:$0xff] %v5183_v21  ;;  %5232 = vst [vmem:[%s8920_s5 + $0x128] sm:$0xf] %v5184_v14 }
 0x34d   :  { %5233 = vst [vmem:[%s8920_s5 + $0x130] sm:$0xff] %v5185_v15  ;;  %5234 = vst [vmem:[%s8920_s5 + $0x138] sm:$0xf] %v5186_v18 }
 0x34e   :  { %5235 = vst [vmem:[%s8920_s5 + $0x140] sm:$0xff] %v5187_v0  ;;  %5236 = vst [vmem:[%s8920_s5 + $0x148] sm:$0xf] %v5188_v42 }
 0x34f   :  { %5237 = vst [vmem:[%s8920_s5 + $0x150] sm:$0xff] %v5189_v46  ;;  %5238 = vst [vmem:[%s8920_s5 + $0x158] sm:$0xf] %v5190_v22 }
 0x350   :  { %5239 = vst [vmem:[%s8920_s5 + $0x160] sm:$0xff] %v5191_v44  ;;  %5240 = vst [vmem:[%s8920_s5 + $0x168] sm:$0xf] %v5192_v51 }
 0x351   :  { %5241 = vst [vmem:[%s8920_s5 + $0x170] sm:$0xff] %v5193_v58  ;;  %5242 = vst [vmem:[%s8920_s5 + $0x178] sm:$0xf] %v5194_v8 }

</bundles_post_ra>
